<compile_context>
chip_gen: v7x
topology: tpu7x:2x2x1
jax: 0.10.0
libtpu: 0.0.40
codegen_flags: <defaults>
</compile_context>

<pallas_src>
import functools

import jax
import jax.numpy as jnp
from jax.experimental import pallas as pl
from jax.experimental.pallas import tpu as pltpu


# ----------------------------------------------------------------------------
# Pallas kernel: one (batch, query-tile) block; K/V resident in VMEM per batch
# ----------------------------------------------------------------------------
def _spatial_attn_kernel(x_ref, scale_ref, shift_ref, wq_ref, bq_ref,
                         k_ref, v_ref, wp_ref, bp_ref, o_ref, *, tk):
    C = x_ref.shape[-1]
    n_keys = k_ref.shape[1]
    n_kt = n_keys // tk
    cd = wq_ref.dtype                       # MXU operand dtype (bf16 or f32)

    # x tile is used twice: GroupNorm+Q projection here, residual in epilogue.
    x = x_ref[0].astype(jnp.float32)                                   # (TQ, C)
    h = x * scale_ref[0] + shift_ref[0]                                # fused GN

    # Q projection; 1/sqrt(C) is pre-folded into wq/bq in the wrapper.
    # Kept in the compute dtype so the inner loop never re-casts it.
    q = (jnp.dot(h.astype(cd), wq_ref[...],
                 preferred_element_type=jnp.float32) + bq_ref[...]).astype(cd)
    tq = q.shape[0]

    # Flash/online-softmax loop over TK-wide slices of the VMEM-resident K/V.
    def body(kt, carry):
        m, l, acc = carry
        off = pl.multiple_of(kt * tk, tk)
        k = k_ref[0, pl.ds(off, tk), :]                                # (TK, C)
        v = v_ref[0, pl.ds(off, tk), :]                                # (TK, C)
        # logits = q @ k^T without materializing a transpose (NT matmul)
        s = jax.lax.dot_general(
            q, k, dimension_numbers=(((1,), (1,)), ((), ())),
            preferred_element_type=jnp.float32)                        # (TQ, TK)
        m_new = jnp.maximum(m, jnp.max(s, axis=-1, keepdims=True))
        alpha = jnp.exp(m - m_new)
        p = jnp.exp(s - m_new)
        l_new = alpha * l + jnp.sum(p, axis=-1, keepdims=True)
        acc_new = alpha * acc + jnp.dot(p.astype(cd), v,
                                        preferred_element_type=jnp.float32)
        return m_new, l_new, acc_new

    m0 = jnp.full((tq, 1), -jnp.inf, jnp.float32)
    l0 = jnp.zeros((tq, 1), jnp.float32)
    acc0 = jnp.zeros((tq, C), jnp.float32)
    m, l, acc = jax.lax.fori_loop(0, n_kt, body, (m0, l0, acc0))

    # Epilogue: exact normalization (once per q tile), proj_out, residual add.
    out = acc / l
    proj = jnp.dot(out.astype(cd), wp_ref[...],
                   preferred_element_type=jnp.float32) + bp_ref[...]
    o_ref[0] = (x + proj).astype(o_ref.dtype)


def spatial_self_attention_pallas(x_bnc, scale_bc, shift_bc, wq, bq, k, v,
                                  wp, bp, *, tq=256, tk=256):
    """x_bnc: (B, N, C); scale/shift: (B, 1, C); wq/wp: (C, C) compute dtype;
    k/v: (B, N, C) compute dtype; bq/bp: (1, C) f32."""
    B, N, C = x_bnc.shape
    tq = min(tq, N)
    tk = min(tk, N)
    assert N % tq == 0 and N % tk == 0, "N must be divisible by the tile sizes"
    # TODO(synk): pad/mask the last tile to support N not divisible by tq/tk.

    grid = (B, N // tq)

    x_spec = pl.BlockSpec((1, tq, C), lambda b, qi: (b, qi, 0))
    ss_spec = pl.BlockSpec((1, 1, C), lambda b, qi: (b, 0, 0))
    wq_spec = pl.BlockSpec((C, C), lambda b, qi: (0, 0))
    bq_spec = pl.BlockSpec((1, C), lambda b, qi: (0, 0))
    # Full per-batch K/V slabs: fetched once per batch (index constant across
    # the query-tile axis), reused by every query tile -> KV read once/batch.
    kv_spec = pl.BlockSpec((1, N, C), lambda b, qi: (b, 0, 0))
    wp_spec = pl.BlockSpec((C, C), lambda b, qi: (0, 0))
    bp_spec = pl.BlockSpec((1, C), lambda b, qi: (0, 0))
    out_spec = pl.BlockSpec((1, tq, C), lambda b, qi: (b, qi, 0))

    # Size the VMEM request from the actual footprint (review item for v7x).
    cd_b = jnp.dtype(k.dtype).itemsize
    x_b = jnp.dtype(x_bnc.dtype).itemsize
    est = (2 * 2 * N * C * cd_b          # resident K and V slabs, double-buffered
           + 2 * 2 * tq * C * x_b        # x and out tiles, double-buffered
           + 2 * 2 * C * C * cd_b        # wq, wp, double-buffered
           + 6 * tq * C * 4              # in-kernel q/h/acc/logits temporaries
           + (8 << 20))                  # compiler-internal scratch headroom
    vmem_limit = int(min(max(est, 16 << 20), 64 << 20))

    kernel = functools.partial(_spatial_attn_kernel, tk=tk)

    return pl.pallas_call(
        kernel,
        out_shape=jax.ShapeDtypeStruct((B, N, C), x_bnc.dtype),
        grid_spec=pltpu.PrefetchScalarGridSpec(
            num_scalar_prefetch=0,
            grid=grid,
            in_specs=[x_spec, ss_spec, ss_spec, wq_spec, bq_spec,
                      kv_spec, kv_spec, wp_spec, bp_spec],
            out_specs=out_spec),
        compiler_params=pltpu.CompilerParams(
            dimension_semantics=("parallel", "parallel"),
            vmem_limit_bytes=vmem_limit),
    )(x_bnc, scale_bc, shift_bc, wq, bq, k, v, wp, bp)


# ----------------------------------------------------------------------------
# Module-level forward (GN stats + once-per-batch K/V projection in plain JAX)
# ----------------------------------------------------------------------------
def spatial_self_attention_forward(x_nchw, params, *, num_groups=32, eps=1e-6,
                                    compute_dtype=jnp.bfloat16, tq=256, tk=256):
    """x_nchw: (B, C, H, W) — same NCHW convention as the PyTorch module."""
    B, C, H, W = x_nchw.shape
    N = H * W
    cd = compute_dtype

    # NCHW -> tokens-major (B, N, C); pure layout plumbing.
    x_bnc = jnp.transpose(x_nchw, (0, 2, 3, 1)).reshape(B, N, C)

    # GroupNorm folded into per-(batch, channel) scale/shift.
    Cg = C // num_groups
    xg = x_bnc.reshape(B, N, num_groups, Cg).astype(jnp.float32)
    mean = jnp.mean(xg, axis=(1, 3))                                    # (B, G)
    var = jnp.mean(jnp.square(xg - mean[:, None, :, None]), axis=(1, 3))
    rstd = jax.lax.rsqrt(var + eps)                                     # (B, G)
    g = params["gn_gamma"].astype(jnp.float32).reshape(1, num_groups, Cg)
    bta = params["gn_beta"].astype(jnp.float32).reshape(1, num_groups, Cg)
    scale = (g * rstd[:, :, None]).reshape(B, 1, C)
    shift = (bta - (mean * rstd)[:, :, None] * g).reshape(B, 1, C)

    # Conv2d 1x1 weights (C_out, C_in, 1, 1) -> matmul weights (C_in, C_out)
    def conv_w(w):
        return jnp.transpose(w.reshape(w.shape[0], w.shape[1]), (1, 0))

    inv_sqrt_c = jnp.float32(C) ** -0.5
    wq = (conv_w(params["wq"]).astype(jnp.float32) * inv_sqrt_c).astype(cd)
    bq = (params["bq"].astype(jnp.float32) * inv_sqrt_c).reshape(1, C)
    wp = conv_w(params["wp"]).astype(cd)
    bp = params["bp"].astype(jnp.float32).reshape(1, C)

    # K/V projection once per batch as plain XLA GEMMs (hoisted out of the
    # attention kernel per the perf review); f32 accumulation, outputs in the
    # compute dtype so the kernel streams them at half the bytes when bf16.
    h = x_bnc.astype(jnp.float32) * scale + shift
    wk = conv_w(params["wk"]).astype(cd)
    wv = conv_w(params["wv"]).astype(cd)
    k = (jnp.einsum("bnc,co->bno", h.astype(cd), wk,
                    preferred_element_type=jnp.float32)
         + params["bk"].astype(jnp.float32).reshape(1, 1, C)).astype(cd)
    v = (jnp.einsum("bnc,co->bno", h.astype(cd), wv,
                    preferred_element_type=jnp.float32)
         + params["bv"].astype(jnp.float32).reshape(1, 1, C)).astype(cd)

    out_bnc = spatial_self_attention_pallas(
        x_bnc, scale, shift, wq, bq, k, v, wp, bp, tq=tq, tk=tk)

    # (B, N, C) -> NCHW
    return jnp.transpose(out_bnc.reshape(B, H, W, C), (0, 3, 1, 2))


# ----------------------------------------------------------------------------
# Pure-JAX reference (mirrors the PyTorch forward exactly)
# ----------------------------------------------------------------------------
def _group_norm_nchw_ref(x_nchw, gamma, beta, num_groups=32, eps=1e-6):
    B, C, H, W = x_nchw.shape
    xg = x_nchw.reshape(B, num_groups, C // num_groups * H * W).astype(jnp.float32)
    mean = jnp.mean(xg, axis=-1, keepdims=True)
    var = jnp.mean((xg - mean) ** 2, axis=-1, keepdims=True)
    xn = ((xg - mean) / jnp.sqrt(var + eps)).reshape(B, C, H, W)
    return xn * gamma.reshape(1, C, 1, 1) + beta.reshape(1, C, 1, 1)


def reference_forward(x_nchw, params):
    B, C, H, W = x_nchw.shape
    h_ = _group_norm_nchw_ref(x_nchw, params["gn_gamma"], params["gn_beta"])

    def conv1x1(h, w, b):
        return jnp.einsum("bchw,oc->bohw", h, w.reshape(w.shape[0], w.shape[1])) \
            + b.reshape(1, -1, 1, 1)

    q = conv1x1(h_, params["wq"], params["bq"])
    k = conv1x1(h_, params["wk"], params["bk"])
    v = conv1x1(h_, params["wv"], params["bv"])

    q = jnp.transpose(q.reshape(B, C, H * W), (0, 2, 1))   # b (hw) c
    k = k.reshape(B, C, H * W)                              # b c (hw)
    w_ = jnp.einsum("bij,bjk->bik", q, k) * (C ** -0.5)
    w_ = jax.nn.softmax(w_, axis=2)
    v = v.reshape(B, C, H * W)
    w_t = jnp.transpose(w_, (0, 2, 1))
    hout = jnp.einsum("bij,bjk->bik", v, w_t).reshape(B, C, H, W)
    proj = conv1x1(hout, params["wp"], params["bp"])
    return x_nchw + proj


# ----------------------------------------------------------------------------
# Main
# ----------------------------------------------------------------------------
if __name__ == "__main__":
    # Accurate f32 reference matmuls so the f32 kernel check can be tight.
    jax.config.update("jax_default_matmul_precision", "highest")

    # GroupNorm(num_groups=32) requires C % 32 == 0 -> C = 64 (small demo).
    # N = H*W = 256 with tq=128 exercises the (B, N//tq) grid and the
    # in-kernel KV loop.  (Perf conclusions need C >= 512; this is a
    # correctness demo only.)
    B, C, H, W = 2, 64, 16, 16

    key = jax.random.PRNGKey(0)
    keys = jax.random.split(key, 12)

    def conv_init(k, c_out, c_in):
        return 0.1 * jax.random.normal(k, (c_out, c_in, 1, 1), jnp.float32)

    params = {
        "gn_gamma": 1.0 + 0.1 * jax.random.normal(keys[9], (C,), jnp.float32),
        "gn_beta": 0.05 * jax.random.normal(keys[10], (C,), jnp.float32),
        "wq": conv_init(keys[0], C, C), "bq": 0.01 * jax.random.normal(keys[1], (C,)),
        "wk": conv_init(keys[2], C, C), "bk": 0.01 * jax.random.normal(keys[3], (C,)),
        "wv": conv_init(keys[4], C, C), "bv": 0.01 * jax.random.normal(keys[5], (C,)),
        "wp": conv_init(keys[6], C, C), "bp": 0.01 * jax.random.normal(keys[7], (C,)),
    }

    x = jax.random.normal(keys[8], (B, C, H, W), jnp.float32)

    ref = jax.block_until_ready(reference_forward(x, params))

    # f32 compute path: tight correctness check (exact epilogue division).
    out_f32 = jax.block_until_ready(
        spatial_self_attention_forward(x, params, compute_dtype=jnp.float32,
                                       tq=128, tk=128))
    assert out_f32.shape == (B, C, H, W)
    err_f32 = float(jnp.max(jnp.abs(out_f32 - ref)))
    assert err_f32 < 5e-3, f"f32 max abs err {err_f32}"

    # bf16 production path (mandatory MXU operand dtype on v5e); f32 accumulate.
    out_bf16 = jax.block_until_ready(
        spatial_self_attention_forward(x, params, compute_dtype=jnp.bfloat16,
                                       tq=128, tk=64))
    err_bf16 = float(jnp.max(jnp.abs(out_bf16 - ref)))
    assert err_bf16 < 5e-2, f"bf16 max abs err {err_bf16}"

    print("KERNEL_OK")
</pallas_src>

<mosaic_0001>
module attributes {stable_mosaic.version = 11 : i64} {
  func.func @_spatial_attn_kernel(%arg0: i32, %arg1: i32, %arg2: memref<1x128x64xf32, #tpu.memory_space<vmem>>, %arg3: memref<1x1x64xf32, #tpu.memory_space<vmem>>, %arg4: memref<1x1x64xf32, #tpu.memory_space<vmem>>, %arg5: memref<64x64xf32, #tpu.memory_space<vmem>>, %arg6: memref<1x64xf32, #tpu.memory_space<vmem>>, %arg7: memref<1x256x64xf32, #tpu.memory_space<vmem>>, %arg8: memref<1x256x64xf32, #tpu.memory_space<vmem>>, %arg9: memref<64x64xf32, #tpu.memory_space<vmem>>, %arg10: memref<1x64xf32, #tpu.memory_space<vmem>>, %arg11: memref<1x128x64xf32, #tpu.memory_space<vmem>>) attributes {dimension_semantics = [#tpu.dimension_semantics<parallel>, #tpu.dimension_semantics<parallel>], iteration_bounds = array<i64: 2, 2>, scalar_prefetch = 0 : i64, scratch_operands = 0 : i64, tpu.core_type = #tpu.core_type<tc>, window_params = [{transform_indices = @transform_0, window_bounds = array<i64: 1, 128, 64>}, {transform_indices = @transform_1, window_bounds = array<i64: 1, 1, 64>}, {transform_indices = @transform_2, window_bounds = array<i64: 1, 1, 64>}, {pipeline_mode = #tpu.pipeline_mode<synchronous>, transform_indices = @transform_3, window_bounds = array<i64: 64, 64>}, {pipeline_mode = #tpu.pipeline_mode<synchronous>, transform_indices = @transform_4, window_bounds = array<i64: 1, 64>}, {transform_indices = @transform_5, window_bounds = array<i64: 1, 256, 64>}, {transform_indices = @transform_6, window_bounds = array<i64: 1, 256, 64>}, {pipeline_mode = #tpu.pipeline_mode<synchronous>, transform_indices = @transform_7, window_bounds = array<i64: 64, 64>}, {pipeline_mode = #tpu.pipeline_mode<synchronous>, transform_indices = @transform_8, window_bounds = array<i64: 1, 64>}, {transform_indices = @transform_9, window_bounds = array<i64: 1, 128, 64>}]} {
    %c0 = arith.constant 0 : index
    %c0_0 = arith.constant 0 : index
    %c0_1 = arith.constant 0 : index
    %0 = vector.load %arg2[%c0, %c0_0, %c0_1] : memref<1x128x64xf32, #tpu.memory_space<vmem>>, vector<1x128x64xf32>
    %1 = vector.shape_cast %0 : vector<1x128x64xf32> to vector<128x64xf32>
    %c0_2 = arith.constant 0 : index
    %c0_3 = arith.constant 0 : index
    %c0_4 = arith.constant 0 : index
    %2 = vector.load %arg3[%c0_2, %c0_3, %c0_4] : memref<1x1x64xf32, #tpu.memory_space<vmem>>, vector<1x1x64xf32>
    %3 = vector.shape_cast %2 : vector<1x1x64xf32> to vector<1x64xf32>
    %4 = vector.broadcast %3 : vector<1x64xf32> to vector<128x64xf32>
    %5 = arith.mulf %1, %4 : vector<128x64xf32>
    %c0_5 = arith.constant 0 : index
    %c0_6 = arith.constant 0 : index
    %c0_7 = arith.constant 0 : index
    %6 = vector.load %arg4[%c0_5, %c0_6, %c0_7] : memref<1x1x64xf32, #tpu.memory_space<vmem>>, vector<1x1x64xf32>
    %7 = vector.shape_cast %6 : vector<1x1x64xf32> to vector<1x64xf32>
    %8 = vector.broadcast %7 : vector<1x64xf32> to vector<128x64xf32>
    %9 = arith.addf %5, %8 : vector<128x64xf32>
    %c0_8 = arith.constant 0 : index
    %c0_9 = arith.constant 0 : index
    %10 = vector.load %arg5[%c0_8, %c0_9] : memref<64x64xf32, #tpu.memory_space<vmem>>, vector<64x64xf32>
    %cst = arith.constant dense<0.000000e+00> : vector<128x64xf32>
    %11 = tpu.matmul %9, %10, %cst {dimension_numbers = #tpu.dot_dimension_numbers<[1], [0], [0], [1], [0, 0, 1, 1], [], []>, precision = #tpu.contract_precision<fp32>} : vector<128x64xf32>, vector<64x64xf32>, vector<128x64xf32> -> vector<128x64xf32>
    %c0_10 = arith.constant 0 : index
    %c0_11 = arith.constant 0 : index
    %12 = vector.load %arg6[%c0_10, %c0_11] : memref<1x64xf32, #tpu.memory_space<vmem>>, vector<1x64xf32>
    %13 = vector.broadcast %12 : vector<1x64xf32> to vector<128x64xf32>
    %14 = arith.addf %11, %13 : vector<128x64xf32>
    %cst_12 = arith.constant 0xFF800000 : f32
    %15 = vector.broadcast %cst_12 : f32 to vector<128x1xf32>
    %cst_13 = arith.constant 0.000000e+00 : f32
    %16 = vector.broadcast %cst_13 : f32 to vector<128x1xf32>
    %cst_14 = arith.constant 0.000000e+00 : f32
    %17 = vector.broadcast %cst_14 : f32 to vector<128x64xf32>
    %c0_i32 = arith.constant 0 : i32
    %c2_i32 = arith.constant 2 : i32
    %18 = arith.addi %c0_i32, %c2_i32 : i32
    %c1_i32 = arith.constant 1 : i32
    %19:3 = scf.for %arg12 = %c0_i32 to %18 step %c1_i32 iter_args(%arg13 = %15, %arg14 = %16, %arg15 = %17) -> (vector<128x1xf32>, vector<128x1xf32>, vector<128x64xf32>)  : i32 {
      %c128_i32 = arith.constant 128 : i32
      %31 = arith.muli %arg12, %c128_i32 : i32
      %32 = tpu.assume_multiple %31, 128 : i32
      %c0_24 = arith.constant 0 : index
      %33 = arith.index_cast %32 : i32 to index
      %c0_25 = arith.constant 0 : index
      %34 = vector.load %arg7[%c0_24, %33, %c0_25] : memref<1x256x64xf32, #tpu.memory_space<vmem>>, vector<1x128x64xf32>
      %35 = vector.shape_cast %34 : vector<1x128x64xf32> to vector<128x64xf32>
      %c0_26 = arith.constant 0 : index
      %36 = arith.index_cast %32 : i32 to index
      %c0_27 = arith.constant 0 : index
      %37 = vector.load %arg8[%c0_26, %36, %c0_27] : memref<1x256x64xf32, #tpu.memory_space<vmem>>, vector<1x128x64xf32>
      %38 = vector.shape_cast %37 : vector<1x128x64xf32> to vector<128x64xf32>
      %cst_28 = arith.constant dense<0.000000e+00> : vector<128x128xf32>
      %39 = tpu.matmul %14, %35, %cst_28 {dimension_numbers = #tpu.dot_dimension_numbers<[1], [1], [0], [0], [0, 0, 1, 0], [], []>, precision = #tpu.contract_precision<fp32>} : vector<128x64xf32>, vector<128x64xf32>, vector<128x128xf32> -> vector<128x128xf32>
      %cst_29 = arith.constant dense<0xFF800000> : vector<128xf32>
      %40 = vector.multi_reduction <maximumf>, %39, %cst_29 [1] : vector<128x128xf32> to vector<128xf32>
      %41 = vector.shape_cast %40 : vector<128xf32> to vector<128x1xf32>
      %42 = arith.maximumf %arg13, %41 : vector<128x1xf32>
      %43 = arith.subf %arg13, %42 : vector<128x1xf32>
      %44 = math.exp %43 : vector<128x1xf32>
      %45 = vector.broadcast %42 : vector<128x1xf32> to vector<128x128xf32>
      %46 = arith.subf %39, %45 : vector<128x128xf32>
      %47 = math.exp %46 : vector<128x128xf32>
      %48 = arith.mulf %44, %arg14 : vector<128x1xf32>
      %cst_30 = arith.constant dense<0.000000e+00> : vector<128xf32>
      %49 = vector.multi_reduction <add>, %47, %cst_30 [1] : vector<128x128xf32> to vector<128xf32>
      %50 = vector.shape_cast %49 : vector<128xf32> to vector<128x1xf32>
      %51 = arith.addf %48, %50 : vector<128x1xf32>
      %52 = vector.broadcast %44 : vector<128x1xf32> to vector<128x64xf32>
      %53 = arith.mulf %52, %arg15 : vector<128x64xf32>
      %cst_31 = arith.constant dense<0.000000e+00> : vector<128x64xf32>
      %54 = tpu.matmul %47, %38, %cst_31 {dimension_numbers = #tpu.dot_dimension_numbers<[1], [0], [0], [1], [0, 0, 1, 1], [], []>, precision = #tpu.contract_precision<fp32>} : vector<128x128xf32>, vector<128x64xf32>, vector<128x64xf32> -> vector<128x64xf32>
      %55 = arith.addf %53, %54 : vector<128x64xf32>
      scf.yield %42, %51, %55 : vector<128x1xf32>, vector<128x1xf32>, vector<128x64xf32>
    }
    %c2_i32_15 = arith.constant 2 : i32
    %20 = vector.broadcast %19#1 : vector<128x1xf32> to vector<128x64xf32>
    %21 = arith.divf %19#2, %20 : vector<128x64xf32>
    %c0_16 = arith.constant 0 : index
    %c0_17 = arith.constant 0 : index
    %22 = vector.load %arg9[%c0_16, %c0_17] : memref<64x64xf32, #tpu.memory_space<vmem>>, vector<64x64xf32>
    %cst_18 = arith.constant dense<0.000000e+00> : vector<128x64xf32>
    %23 = tpu.matmul %21, %22, %cst_18 {dimension_numbers = #tpu.dot_dimension_numbers<[1], [0], [0], [1], [0, 0, 1, 1], [], []>, precision = #tpu.contract_precision<fp32>} : vector<128x64xf32>, vector<64x64xf32>, vector<128x64xf32> -> vector<128x64xf32>
    %c0_19 = arith.constant 0 : index
    %c0_20 = arith.constant 0 : index
    %24 = vector.load %arg10[%c0_19, %c0_20] : memref<1x64xf32, #tpu.memory_space<vmem>>, vector<1x64xf32>
    %25 = vector.broadcast %24 : vector<1x64xf32> to vector<128x64xf32>
    %26 = arith.addf %23, %25 : vector<128x64xf32>
    %27 = arith.addf %1, %26 : vector<128x64xf32>
    %c0_21 = arith.constant 0 : index
    %c0_22 = arith.constant 0 : index
    %c0_23 = arith.constant 0 : index
    %28 = vector.load %arg11[%c0_21, %c0_22, %c0_23] : memref<1x128x64xf32, #tpu.memory_space<vmem>>, vector<1x128x64xf32>
    %29 = vector.shape_cast %28 : vector<1x128x64xf32> to vector<128x64xf32>
    %30 = vector.shape_cast %27 : vector<128x64xf32> to vector<1x128x64xf32>
    tpu.vector_store %arg11[%c0_21, %c0_22, %c0_23], %30 {strides = array<i32>} : memref<1x128x64xf32, #tpu.memory_space<vmem>>, vector<1x128x64xf32>,
    return
  }
  func.func @transform_0(%arg0: i32, %arg1: i32) -> (i32, i32, i32) {
    %c0_i32 = arith.constant 0 : i32
    %c0_i32_0 = arith.constant 0 : i32
    return %arg0, %arg1, %c0_i32 : i32, i32, i32
  }
  func.func @transform_1(%arg0: i32, %arg1: i32) -> (i32, i32, i32) {
    %c0_i32 = arith.constant 0 : i32
    %c0_i32_0 = arith.constant 0 : i32
    %c0_i32_1 = arith.constant 0 : i32
    return %arg0, %c0_i32, %c0_i32_0 : i32, i32, i32
  }
  func.func @transform_2(%arg0: i32, %arg1: i32) -> (i32, i32, i32) {
    %c0_i32 = arith.constant 0 : i32
    %c0_i32_0 = arith.constant 0 : i32
    %c0_i32_1 = arith.constant 0 : i32
    return %arg0, %c0_i32, %c0_i32_0 : i32, i32, i32
  }
  func.func @transform_3(%arg0: i32, %arg1: i32) -> (i32, i32) {
    %c0_i32 = arith.constant 0 : i32
    %c0_i32_0 = arith.constant 0 : i32
    %c0_i32_1 = arith.constant 0 : i32
    return %c0_i32, %c0_i32_0 : i32, i32
  }
  func.func @transform_4(%arg0: i32, %arg1: i32) -> (i32, i32) {
    %c0_i32 = arith.constant 0 : i32
    %c0_i32_0 = arith.constant 0 : i32
    %c0_i32_1 = arith.constant 0 : i32
    return %c0_i32, %c0_i32_0 : i32, i32
  }
  func.func @transform_5(%arg0: i32, %arg1: i32) -> (i32, i32, i32) {
    %c0_i32 = arith.constant 0 : i32
    %c0_i32_0 = arith.constant 0 : i32
    %c0_i32_1 = arith.constant 0 : i32
    return %arg0, %c0_i32, %c0_i32_0 : i32, i32, i32
  }
  func.func @transform_6(%arg0: i32, %arg1: i32) -> (i32, i32, i32) {
    %c0_i32 = arith.constant 0 : i32
    %c0_i32_0 = arith.constant 0 : i32
    %c0_i32_1 = arith.constant 0 : i32
    return %arg0, %c0_i32, %c0_i32_0 : i32, i32, i32
  }
  func.func @transform_7(%arg0: i32, %arg1: i32) -> (i32, i32) {
    %c0_i32 = arith.constant 0 : i32
    %c0_i32_0 = arith.constant 0 : i32
    %c0_i32_1 = arith.constant 0 : i32
    return %c0_i32, %c0_i32_0 : i32, i32
  }
  func.func @transform_8(%arg0: i32, %arg1: i32) -> (i32, i32) {
    %c0_i32 = arith.constant 0 : i32
    %c0_i32_0 = arith.constant 0 : i32
    %c0_i32_1 = arith.constant 0 : i32
    return %c0_i32, %c0_i32_0 : i32, i32
  }
  func.func @transform_9(%arg0: i32, %arg1: i32) -> (i32, i32, i32) {
    %c0_i32 = arith.constant 0 : i32
    %c0_i32_0 = arith.constant 0 : i32
    return %arg0, %arg1, %c0_i32 : i32, i32, i32
  }
}

</mosaic_0001>

<bundles_post_ra>
// kernel: tpu_custom_call.1
= control target key start
LH: loop header
LB: loop body
LE: loop exit
PB: predicated region body
PF: predicated region fallthrough
CT: control target
= control target key end

     0   :  { %s10125_s30 = smov 0   ;;  %s10127_s10 = smov 0   ;;  %s13022_s0 = inlined_call_operand.vmem [shape: f32[2,256,64], index: 0, kind: input, shape index: {}]   ;;  %s13023_s1 = inlined_call_operand.vmem [shape: f32[2,1,64], index: 1, kind: input, shape index: {}]   ;;  %s13024_s2 = inlined_call_operand.vmem [shape: f32[2,1,64], index: 2, kind: input, shape index: {}]   ;;  %s13025_s3 = inlined_call_operand.vmem [shape: f32[64,64], index: 3, kind: input, shape index: {}]   ;;  %s13026_s4 = inlined_call_operand.vmem [shape: f32[1,64], index: 4, kind: input, shape index: {}]   ;;  %s13027_s5 = inlined_call_operand.vmem [shape: f32[2,256,64], index: 5, kind: input, shape index: {}]   ;;  %s13028_s6 = inlined_call_operand.vmem [shape: f32[2,256,64], index: 6, kind: input, shape index: {}]   ;;  %s13029_s7 = inlined_call_operand.vmem [shape: f32[64,64], index: 7, kind: input, shape index: {}]   ;;  %s13030_s8 = inlined_call_operand.vmem [shape: f32[1,64], index: 8, kind: input, shape index: {}]   ;;  %s13031_s9 = inlined_call_operand.vmem [shape: f32[2,256,64], index: 9, kind: output, shape index: {}]  }
   0x1   :  { %s10129_s11 = smov 0   ;;  %s10131_s12 = smov 0  }
   0x2   :  { %s10133_s13 = smov 0  }
   0x3 LB: > { %s28_s14 = sadd.s32 1, %s9869_s11  ;;  %s31_s15 = sadd.s32 1, %s9873_s12  ;;  %s9877_s13 = sphi %s10133_s13, %s19_s13   ;;  %s9873_s12 = sphi %s10131_s12, %s13622_s12   ;;  %s9869_s11 = sphi %s10129_s11, %s13621_s11   ;;  %s9865_s10 = sphi %s10127_s10, %s13620_s10   ;;  %s9861_s30 = sphi %s10125_s30, %s13619_s30  }
   0x4   : > { %p29_p0 = scmp.ge.s32.totalorder %s28_s14, 2  ;;  %p6343_p1 = scmp.ge.s32.totalorder %s9877_s13, 1 }
   0x5   : > { %p344_p2 = scmp.lt.s32.totalorder %s9877_s13, 5 }
   0x6   : > { %s13624_s14 = smov (%p29_p0, %s28_s14), 0  ;;  %s13626_s15 = smov (!%p29_p0, %s31_s15), %s9873_s12 }
   0x7   : > { %p345_p3 = pnand %p6343_p1, %p344_p2  ;;  %p33_p4 = scmp.ge.s32.totalorder %s13626_s15, 2 }
   0x9   : > { %s13628_s15 = smov (%p33_p4, %s13626_s15), 0  ;;  %348 = sbr.rel (%p345_p3) target bundleno = 1833 (0x729), region = 56 }
  0x10   : > { %v502_v0 = vld [vmem:[%s13025_s3] sm:$0xff]  ;;  %v503_v1 = vld [vmem:[%s13025_s3 + $0x8] sm:$0xff]  ;;  %v504_v2 = vld [vmem:[%s13025_s3 + $0x10] sm:$0xff]  ;;  %s6344_s22 = sshll.u32 %s9861_s30, 4  ;;  %p405_p5 = scmp.lt.s32.totalorder %s9865_s10, 1  ;;  %vm517_vm0 = vcmask 523264  }
  0x11   : > { %v567_v3 = vand.u32 4294901760, %v502_v0  ;;  %v570_v4 = vand.u32 4294901760, %v503_v1  ;;  %v505_v5 = vld [vmem:[%s13025_s3 + $0x18] sm:$0xff]  ;;  %v573_v6 = vand.u32 4294901760, %v504_v2  ;;  %v506_v7 = vld [vmem:[%s13025_s3 + $0x20] sm:$0xff]  ;;  %v507_v8 = vld [vmem:[%s13025_s3 + $0x28] sm:$0xff] }
  0x12   : > { %v576_v9 = vand.u32 4294901760, %v505_v5  ;;  %v579_v10 = vand.u32 4294901760, %v506_v7  ;;  %v582_v11 = vand.u32 4294901760, %v507_v8  ;;  %v508_v12 = vld [vmem:[%s13025_s3 + $0x30] sm:$0xff]  ;;  %v509_v13 = vld [vmem:[%s13025_s3 + $0x38] sm:$0xff]  ;;  %s13630_s10 = smov (!%p405_p5, %s9865_s10), 1 }
  0x13   : > { %v10188_v14 = vpack.c.bf16 %v570_v4, %v567_v3  ;;  %v585_v15 = vand.u32 4294901760, %v508_v12  ;;  %v588_v16 = vand.u32 4294901760, %v509_v13  ;;  %p407_p6 = scmp.lt.s32.totalorder %s6344_s22, 31  ;;  %v10190_v17 = vsub.f32 %v502_v0, %v567_v3  ;;  %s6345_s18 = sshll.u32 %s13630_s10, 5 }
  0x14   : > { %v10192_v18 = vpack.c.bf16 %v576_v9, %v573_v6  ;;  %v10194_v19 = vpack.c.bf16 %v582_v11, %v579_v10  ;;  %s416_s21 = scalar_lea.vmem %s13023_s1, %s13630_s10  ;;  %v10201_v20 = vsub.f32 %v503_v1, %v570_v4  ;;  %v10203_v21 = vsub.f32 %v504_v2, %v573_v6  ;;  %s419_s25 = scalar_lea.vmem %s13024_s2, %s13630_s10 }
  0x15   : > { %8236 = vmatprep.subr.bf16.mxu0 %v10188_v14  ;;  %8188 = vmatprep.subr.bf16.mxu1 %v10188_v14  ;;  %v10207_v22 = vpack.c.bf16 %v588_v16, %v585_v15  ;;  %s13632_s22 = smov (!%p407_p6, %s6344_s22), 31  ;;  %v802_v23 = vand.u32 4294901760, %v10190_v17  ;;  %v10210_v24 = vsub.f32 %v505_v5, %v576_v9  ;;  %v10212_v25 = vsub.f32 %v506_v7, %v579_v10  ;;  %s6361_s26 = sshll.u32 %s13630_s10, 8  ;;  %v10249_v34 = vld [vmem:[%s416_s21] ss:$0 sm:$0xff] }
  0x16   : > { %8238 = vmatpush3.bf16.msra.mxu0 %v10188_v14  ;;  %8190 = vmatpush3.bf16.msra.mxu1 %v10188_v14  ;;  %v809_v26 = vand.u32 4294901760, %v10201_v20  ;;  %v816_v27 = vand.u32 4294901760, %v10203_v21  ;;  %v10223_v28 = vsub.f32 %v507_v8, %v582_v11  ;;  %v10225_v29 = vsub.f32 %v508_v12, %v585_v15  ;;  %s410_s27 = sadd.s32 %s6345_s18, %s13632_s22  ;;  %s10232_s30 = scalar_lea.vmem %s13027_s5, %s6361_s26  ;;  %v10266_v39 = vld [vmem:[%s419_s25] ss:$0 sm:$0xff] }
  0x17   : > { %8240 = vmatprep.subr.bf16.mxu0 %v10192_v18  ;;  %8192 = vmatprep.subr.bf16.mxu1 %v10192_v18  ;;  %v803_v30 = vsub.f32 %v10190_v17, %v802_v23  ;;  %v823_v31 = vand.u32 4294901760, %v10210_v24  ;;  %v830_v32 = vand.u32 4294901760, %v10212_v25  ;;  %v10237_v33 = vsub.f32 %v509_v13, %v588_v16  ;;  %s6346_s16 = sshll.u32 %s410_s27, 3  ;;  %s10242_s20 = scalar_lea.vmem %s13028_s6, %s6361_s26 }
  0x18   : > { %v810_v35 = vsub.f32 %v10201_v20, %v809_v26  ;;  %v10252_v36 = vpack.c.bf16 %v809_v26, %v802_v23  ;;  %v817_v37 = vsub.f32 %v10203_v21, %v816_v27  ;;  %v837_v38 = vand.u32 4294901760, %v10223_v28  ;;  %s10259_s27 = scalar_lea.vmem %s13022_s0, %s6346_s16  ;;  %s10264_s10 = scalar_lea.vmem %s13031_s9, %s6346_s16 }
  0x19   : > { %v804_v40 = vand.u32 4294901760, %v803_v30  ;;  %v824_v41 = vsub.f32 %v10210_v24, %v823_v31  ;;  %v10269_v42 = vpack.c.bf16 %v823_v31, %v816_v27  ;;  %v10272_v43 = vsub.f32 %v10212_v25, %v830_v32  ;;  %v10277_v44 = vld [vmem:[%s10259_s27] sm:$0xff]  ;;  %v10280_v45 = vld [vmem:[%s10259_s27 + $0x8] sm:$0xff]  ;;  %v10283_v47 = vld [vmem:[%s10259_s27 + $0x10] sm:$0xff]  ;;  %s10750_s29 = smov 0  }
  0x1a   : > { %8242 = vmatpush3.bf16.msra.mxu0 %v10192_v18  ;;  %8194 = vmatpush3.bf16.msra.mxu1 %v10192_v18  ;;  %13184 = vst [vmem:[#allocation2_spill] sm:$0xff] %v10277_v44  ;;  %13185 = vst [vmem:[#allocation3_spill] sm:$0xff] %v10280_v45  ;;  %v811_v46 = vand.u32 4294901760, %v810_v35  ;;  %v818_v48 = vand.u32 4294901760, %v817_v37  ;;  %v10286_v49 = vsub.f32 %v10223_v28, %v837_v38  ;;  %v10299_v54 = vld [vmem:[%s10259_s27 + $0x18] sm:$0xff]  ;;  %v10302_v55 = vld [vmem:[%s10259_s27 + $0x20] sm:$0xff] }
  0x1b   : > { %13186 = vst [vmem:[#allocation4_spill] sm:$0xff] %v10283_v47  ;;  %v10288_v50 = vpack.c.bf16 %v837_v38, %v830_v32  ;;  %8244 = vmatprep.subr.bf16.mxu0 %v10194_v19  ;;  %8196 = vmatprep.subr.bf16.mxu1 %v10194_v19  ;;  %v463_v51 = vmul.f32 %v10249_v34, %v10277_v44  ;;  %13187 = vst [vmem:[#allocation5_spill] sm:$0xff] %v10299_v54  ;;  %v10305_v56 = vld [vmem:[%s10259_s27 + $0x28] sm:$0xff]  ;;  %v825_v57 = vand.u32 4294901760, %v824_v41  ;;  %v10316_v62 = vld [vmem:[%s10259_s27 + $0x30] sm:$0xff] }
  0x1c   : > { %v464_v52 = vmul.f32 %v10249_v34, %v10280_v45  ;;  %v465_v53 = vmul.f32 %v10249_v34, %v10283_v47  ;;  %13188 = vst [vmem:[#allocation6_spill] sm:$0xff] %v10302_v55  ;;  %13189 = vst [vmem:[#allocation7_spill] sm:$0xff] %v10305_v56  ;;  %v10307_v58 = vpack.c.bf16 %v811_v46, %v804_v40  ;;  %v10344_v16 = vld [vmem:[%s10259_s27 + $0x38] sm:$0xff] }
  0x1d   : > { %v466_v59 = vmul.f32 %v10249_v34, %v10299_v54  ;;  %v467_v60 = vmul.f32 %v10249_v34, %v10302_v55  ;;  %v468_v61 = vmul.f32 %v10249_v34, %v10305_v56  ;;  %13190 = vst [vmem:[#allocation8_spill] sm:$0xff] %v10316_v62  ;;  %v486_v63 = vadd.f32 %v10266_v39, %v463_v51  ;;  %v10507_v55 = vld [vmem:[%s10259_s27 + $0x78] sm:$0xff] }
  0x1e   : > { %v487_v0 = vadd.f32 %v10266_v39, %v464_v52  ;;  %v488_v1 = vadd.f32 %v10266_v39, %v465_v53  ;;  %v10321_v2 = vpack.c.bf16 %v825_v57, %v818_v48  ;;  %8246 = vmatpush3.bf16.msra.mxu0 %v10194_v19  ;;  %8198 = vmatpush3.bf16.msra.mxu1 %v10194_v19 }
  0x1f   : > { %v489_v3 = vadd.f32 %v10266_v39, %v466_v59  ;;  %v490_v4 = vadd.f32 %v10266_v39, %v467_v60  ;;  %v491_v5 = vadd.f32 %v10266_v39, %v468_v61  ;;  %8248 = vmatprep.subr.bf16.mxu0 %v10207_v22  ;;  %8200 = vmatprep.subr.bf16.mxu1 %v10207_v22  ;;  %v519_v7 = vsel %vm517_vm0, %v486_v63, 0 }
  0x20   : > { %v522_v8 = vsel %vm517_vm0, %v487_v0, 0  ;;  %v525_v9 = vsel %vm517_vm0, %v488_v1, 0  ;;  %v469_v10 = vmul.f32 %v10249_v34, %v10316_v62  ;;  %v10336_v11 = vand.u32 4294901760, %v519_v7  ;;  %13191 = vst [vmem:[#allocation9_spill] sm:$0xff] %v10344_v16  ;;  %13201 = vst [vmem:[#allocation17_spill] sm:$0xff] %v10507_v55 }
  0x21   : > { %v10338_v12 = vand.u32 4294901760, %v522_v8  ;;  %v10340_v13 = vand.u32 4294901760, %v525_v9  ;;  %v528_v15 = vsel %vm517_vm0, %v489_v3, 0  ;;  %v531_v26 = vsel %vm517_vm0, %v490_v4, 0 }
  0x22   : > { %v10346_v23 = vand.u32 4294901760, %v528_v15  ;;  %v534_v27 = vsel %vm517_vm0, %v491_v5, 0  ;;  %v492_v30 = vadd.f32 %v10266_v39, %v469_v10  ;;  %8250 = vmatpush3.bf16.msra.mxu0 %v10207_v22  ;;  %v10353_v31 = vsub.f32 %v519_v7, %v10336_v11  ;;  %8202 = vmatpush3.bf16.msra.mxu1 %v10207_v22  ;;  %v10401_v10 = vld [vmem:[%s10259_s27 + $0x48] sm:$0xff] }
  0x23   : > { %v10357_v32 = vsub.f32 %v522_v8, %v10338_v12  ;;  %v10360_v35 = vsub.f32 %v525_v9, %v10340_v13  ;;  %v10362_v37 = vand.u32 4294901760, %v531_v26  ;;  %8204 = vmatprep.subr.bf16.mxu1 %v10307_v58  ;;  %8252 = vmatprep.subr.bf16.mxu0 %v10252_v36  ;;  %v10369_v40 = vand.u32 4294901760, %v534_v27  ;;  %v10398_v9 = vld [vmem:[%s10259_s27 + $0x40] sm:$0xff]  ;;  %13193 = vst [vmem:[#allocation11_spill] sm:$0xff] %v10401_v10 }
  0x24   : > { %v10366_v38 = vsub.f32 %v528_v15, %v10346_v23  ;;  %v537_v41 = vsel %vm517_vm0, %v492_v30, 0  ;;  %v470_v46 = vmul.f32 %v10249_v34, %v10344_v16  ;;  %v641_v48 = vand.u32 4294901760, %v10353_v31  ;;  %13192 = vst [vmem:[#allocation10_spill] sm:$0xff] %v10398_v9 }
  0x25   : > { %v651_v51 = vand.u32 4294901760, %v10357_v32  ;;  %v661_v52 = vand.u32 4294901760, %v10360_v35  ;;  %v10378_v53 = vsub.f32 %v531_v26, %v10362_v37  ;;  %v10382_v59 = vsub.f32 %v534_v27, %v10369_v40 }
  0x26   : > { %v671_v57 = vand.u32 4294901760, %v10366_v38  ;;  %v10384_v60 = vand.u32 4294901760, %v537_v41  ;;  %v493_v61 = vadd.f32 %v10266_v39, %v470_v46  ;;  %7171 = vmatprep.mubr.f32.mxu0 %v641_v48  ;;  %v642_v63 = vsub.f32 %v10353_v31, %v641_v48  ;;  %v10406_v46 = vld [vmem:[%s10259_s27 + $0x50] sm:$0xff] }
  0x27   : > { %v652_v0 = vsub.f32 %v10357_v32, %v651_v51  ;;  %v662_v1 = vsub.f32 %v10360_v35, %v661_v52  ;;  %v681_v3 = vand.u32 4294901760, %v10378_v53  ;;  %7172 = vmatmul.mubr.f32.vlgmr.msra.gmra.mrb[0].mxu0 %v651_v51  ;;  %v691_v5 = vand.u32 4294901760, %v10382_v59  ;;  %13194 = vst [vmem:[#allocation12_spill] sm:$0xff] %v10406_v46 }
  0x28   : > { %v672_v4 = vsub.f32 %v10366_v38, %v671_v57  ;;  %v10394_v7 = vsub.f32 %v537_v41, %v10384_v60  ;;  %v540_v8 = vsel %vm517_vm0, %v493_v61, 0  ;;  %v643_v15 = vand.u32 4294901760, %v642_v63  ;;  %7174 = vmatprep.mubr.f32.mxu0 %v661_v52  ;;  %8254 = vmatpush3.bf16.msra.mxu0 %v10252_v36 }
  0x29   : > { %v653_v26 = vand.u32 4294901760, %v652_v0  ;;  %v663_v27 = vand.u32 4294901760, %v662_v1  ;;  %v682_v30 = vsub.f32 %v10378_v53, %v681_v3  ;;  %v692_v51 = vsub.f32 %v10382_v59, %v691_v5  ;;  %8256 = vmatprep.subr.bf16.mxu0 %v10269_v42  ;;  %v10419_v1 = vld [vmem:[%s10259_s27 + $0x58] sm:$0xff] }
  0x2a   : > { %v673_v48 = vand.u32 4294901760, %v672_v4  ;;  %v701_v41 = vand.u32 4294901760, %v10394_v7  ;;  %v10410_v61 = vand.u32 4294901760, %v540_v8  ;;  %7051 = vmatprep.mubr.f32.mxu1 %v643_v15  ;;  %v471_v36 = vmul.f32 %v10249_v34, %v10398_v9  ;;  %13195 = vst [vmem:[#allocation13_spill] sm:$0xff] %v10419_v1  ;;  %v10431_v9 = vld [vmem:[%s10259_s27 + $0x68] sm:$0xff] }
  0x2b   : > { %v683_v52 = vand.u32 4294901760, %v682_v30  ;;  %v472_v63 = vmul.f32 %v10249_v34, %v10401_v10  ;;  %v839_v0 = vand.u32 4294901760, %v10286_v49  ;;  %7052 = vmatmul.mubr.f32.vlgmr.msra.gmra.mrb[0].mxu1 %v653_v26  ;;  %7175 = vmatmul.mubr.f32.gmra.mrb[2].mxu0 %v671_v57  ;;  %v693_v4 = vand.u32 4294901760, %v692_v51  ;;  %v10428_v30 = vld [vmem:[%s10259_s27 + $0x60] sm:$0xff]  ;;  %13197 = vst [vmem:[#allocation15_spill] sm:$0xff] %v10431_v9 }
  0x2c   : > { %v10422_v6 = vsub.f32 %v540_v8, %v10410_v61  ;;  %v702_v62 = vsub.f32 %v10394_v7, %v701_v41  ;;  %v473_v15 = vmul.f32 %v10249_v34, %v10406_v46  ;;  %13196 = vst [vmem:[#allocation14_spill] sm:$0xff] %v10428_v30  ;;  %8206 = vmatpush3.bf16.msra.mxu1 %v10307_v58  ;;  %v13198_v26 = vand.u32 4294901760, %v10272_v43 }
  0x2d   : > { %7054 = vmatprep.mubr.f32.mxu1 %v663_v27  ;;  %v494_v49 = vadd.f32 %v10266_v39, %v471_v36  ;;  %v495_v57 = vadd.f32 %v10266_v39, %v472_v63  ;;  %7177 = vmatprep.mubr.f32.mxu0 %v681_v3  ;;  %v474_v58 = vmul.f32 %v10249_v34, %v10419_v1 }
  0x2e   : > { %v8211_v8 = vpack.c.bf16 %v839_v0, %v13198_v26  ;;  %8208 = vmatprep.subr.bf16.mxu1 %v10321_v2  ;;  %v711_v46 = vand.u32 4294901760, %v10422_v6  ;;  %v703_v10 = vand.u32 4294901760, %v702_v62  ;;  %v496_v16 = vadd.f32 %v10266_v39, %v473_v15  ;;  %8258 = vmatpush3.bf16.msra.mxu0 %v10269_v42 }
  0x2f   : > { %v543_v27 = vsel %vm517_vm0, %v494_v49, 0  ;;  %v546_v43 = vsel %vm517_vm0, %v495_v57, 0  ;;  %v475_v36 = vmul.f32 %v10249_v34, %v10428_v30  ;;  %v476_v3 = vmul.f32 %v10249_v34, %v10431_v9  ;;  %7055 = vmatmul.mubr.f32.gmra.mrb[2].mxu1 %v673_v48  ;;  %7178 = vmatmul.mubr.f32.gmra.mrb[4].mxu0 %v691_v5 }
  0x30   : > { %v10451_v62 = vand.u32 4294901760, %v543_v27  ;;  %v712_v63 = vsub.f32 %v10422_v6, %v711_v46  ;;  %v10454_v0 = vand.u32 4294901760, %v546_v43  ;;  %v549_v42 = vsel %vm517_vm0, %v496_v16, 0  ;;  %7057 = vmatprep.mubr.f32.mxu1 %v683_v52  ;;  %7180 = vmatprep.mubr.f32.mxu0 %v701_v41 }
  0x31   : > { %v10457_v15 = vand.u32 4294901760, %v549_v42  ;;  %v497_v49 = vadd.f32 %v10266_v39, %v474_v58  ;;  %v498_v57 = vadd.f32 %v10266_v39, %v475_v36  ;;  %v499_v26 = vadd.f32 %v10266_v39, %v476_v3  ;;  %8210 = vmatpush3.bf16.msra.mxu1 %v10321_v2  ;;  %8260 = vmatprep.subr.bf16.mxu0 %v10288_v50 }
  0x32   : > { %v10464_v5 = vsub.f32 %v543_v27, %v10451_v62  ;;  %v713_v48 = vand.u32 4294901760, %v712_v63  ;;  %v10467_v51 = vsub.f32 %v546_v43, %v10454_v0  ;;  %v13199_v16 = vand.u32 4294901760, %v10225_v29  ;;  %8212 = vmatprep.subr.bf16.mxu1 %v8211_v8  ;;  %8262 = vmatpush3.bf16.msra.mxu0 %v10288_v50 }
  0x33   : > { %v10474_v52 = vsub.f32 %v549_v42, %v10457_v15  ;;  %v552_v2 = vsel %vm517_vm0, %v497_v49, 0  ;;  %v555_v58 = vsel %vm517_vm0, %v498_v57, 0  ;;  %v558_v27 = vsel %vm517_vm0, %v499_v26, 0  ;;  %7058 = vmatmul.mubr.f32.gmra.mrb[4].mxu1 %v693_v4  ;;  %7181 = vmatmul.mubr.f32.gmra.mrb[6].mxu0 %v711_v46  ;;  %v10491_v57 = vld [vmem:[%s10259_s27 + $0x70] sm:$0xff] }
  0x34   : > { %v845_v41 = vsub.f32 %v10225_v29, %v13199_v16  ;;  %v721_v43 = vand.u32 4294901760, %v10464_v5  ;;  %v731_v36 = vand.u32 4294901760, %v10467_v51  ;;  %v10482_v3 = vand.u32 4294901760, %v552_v2  ;;  %7060 = vmatprep.mubr.f32.mxu1 %v703_v10  ;;  %13200 = vst [vmem:[#allocation16_spill] sm:$0xff] %v10491_v57 }
  0x35   : > { %v10484_v63 = vand.u32 4294901760, %v555_v58  ;;  %v741_v42 = vand.u32 4294901760, %v10474_v52  ;;  %v10487_v49 = vand.u32 4294901760, %v558_v27  ;;  %v851_v50 = vand.u32 4294901760, %v10237_v33  ;;  %8214 = vmatpush3.bf16.msra.mxu1 %v8211_v8 }
  0x36   : > { %7183 = vmatprep.mubr.f32.mxu0 %v721_v43  ;;  %v722_v46 = vsub.f32 %v10464_v5, %v721_v43  ;;  %v732_v4 = vsub.f32 %v10467_v51, %v731_v36  ;;  %v10496_v26 = vsub.f32 %v552_v2, %v10482_v3  ;;  %v846_v16 = vand.u32 4294901760, %v845_v41 }
  0x37   : > { %v742_v10 = vsub.f32 %v10474_v52, %v741_v42  ;;  %v10500_v30 = vsub.f32 %v555_v58, %v10484_v63  ;;  %v10503_v9 = vsub.f32 %v558_v27, %v10487_v49  ;;  %v852_v1 = vsub.f32 %v10237_v33, %v851_v50  ;;  %7061 = vmatmul.mubr.f32.gmra.mrb[6].mxu1 %v713_v48 }
  0x38   : > { %7184 = vmatmul.mubr.f32.gmra.mrb[8].mxu0 %v731_v36  ;;  %v723_v43 = vand.u32 4294901760, %v722_v46  ;;  %v733_v8 = vand.u32 4294901760, %v732_v4  ;;  %v751_v2 = vand.u32 4294901760, %v10496_v26  ;;  %v477_v41 = vmul.f32 %v10249_v34, %v10491_v57 }
  0x39   : > { %7186 = vmatprep.mubr.f32.mxu0 %v741_v42  ;;  %v743_v56 = vand.u32 4294901760, %v742_v10  ;;  %v761_v58 = vand.u32 4294901760, %v10500_v30  ;;  %v771_v27 = vand.u32 4294901760, %v10503_v9  ;;  %v853_v47 = vand.u32 4294901760, %v852_v1 }
  0x3a   : > { %7063 = vmatprep.mubr.f32.mxu1 %v723_v43  ;;  %v752_v54 = vsub.f32 %v10496_v26, %v751_v2  ;;  %v500_v48 = vadd.f32 %v10266_v39, %v477_v41  ;;  %v478_v36 = vmul.f32 %v10249_v34, %v10507_v55  ;;  %v13202_v46 = vand.u32 4294901760, %v10225_v29 }
  0x3b   : > { %v762_v57 = vsub.f32 %v10500_v30, %v761_v58  ;;  %v8215_v42 = vpack.c.bf16 %v853_v47, %v846_v16  ;;  %7064 = vmatmul.mubr.f32.gmra.mrb[8].mxu1 %v733_v8  ;;  %v772_v1 = vsub.f32 %v10503_v9, %v771_v27  ;;  %v8219_v34 = vpack.c.bf16 %v10201_v20, %v10190_v17 }
  0x3c   : > { %v8263_v4 = vpack.c.bf16 %v851_v50, %v13202_v46  ;;  %7187 = vmatmul.mubr.f32.gmra.mrb[10].mxu0 %v751_v2  ;;  %v753_v10 = vand.u32 4294901760, %v752_v54  ;;  %v561_v44 = vsel %vm517_vm0, %v500_v48, 0  ;;  %v501_v43 = vadd.f32 %v10266_v39, %v478_v36  ;;  %7066 = vmatprep.mubr.f32.mxu1 %v743_v56 }
  0x3d   : > { %7189 = vmatprep.mubr.f32.mxu0 %v761_v58  ;;  %v763_v41 = vand.u32 4294901760, %v762_v57  ;;  %v10524_v45 = vand.u32 4294901760, %v561_v44  ;;  %8216 = vmatprep.subr.bf16.mxu1 %v8215_v42  ;;  %v773_v39 = vand.u32 4294901760, %v772_v1  ;;  %v8223_v2 = vpack.c.bf16 %v10210_v24, %v10203_v21 }
  0x3e   : > { %v564_v47 = vsel %vm517_vm0, %v501_v43, 0  ;;  %8264 = vmatprep.subr.bf16.mxu0 %v8263_v4  ;;  %8218 = vmatpush3.bf16.msra.mxu1 %v8215_v42  ;;  %v10748_v55 = vmov -inf  }
  0x3f   : > { %v10530_v54 = vsub.f32 %v561_v44, %v10524_v45  ;;  %v10532_v50 = vand.u32 4294901760, %v564_v47  ;;  %8266 = vmatpush3.bf16.msra.mxu0 %v8263_v4  ;;  %7067 = vmatmul.mubr.f32.gmra.mrb[10].mxu1 %v753_v10 }
  0x40   : > { %7190 = vmatmul.mubr.f32.gmra.mrb[12].mxu0 %v771_v27  ;;  %7069 = vmatprep.mubr.f32.mxu1 %v763_v41 }
  0x41   : > { %v781_v56 = vand.u32 4294901760, %v10530_v54  ;;  %v10536_v57 = vsub.f32 %v564_v47, %v10532_v50  ;;  %8220 = vmatprep.subr.bf16.mxu1 %v8219_v34  ;;  %8268 = vmatprep.subr.bf16.mxu0 %v10188_v14 }
  0x43   : > { %7192 = vmatprep.mubr.f32.mxu0 %v781_v56  ;;  %v791_v17 = vand.u32 4294901760, %v10536_v57  ;;  %v782_v20 = vsub.f32 %v10530_v54, %v781_v56  ;;  %7070 = vmatmul.mubr.f32.gmra.mrb[12].mxu1 %v773_v39 }
  0x45   : > { %7193 = vmatmul.mubr.f32.gmra.mrb[14].mxu0 %v791_v17  ;;  %v783_v44 = vand.u32 4294901760, %v782_v20  ;;  %v792_v16 = vsub.f32 %v10536_v57, %v791_v17 }
  0x46   : > { %7211 = vmatprep.mubr.f32.mxu0 %v10336_v11 }
  0x47   : > { %7072 = vmatprep.mubr.f32.mxu1 %v783_v44  ;;  %v793_v8 = vand.u32 4294901760, %v792_v16 }
  0x49   : > { %7073 = vmatmul.mubr.f32.gmra.mrb[14].mxu1 %v793_v8  ;;  %7212 = vmatmul.mubr.f32.vlgmr.msra.gmra.mrb[0].mxu0 %v10338_v12 }
  0x4a   : > { %7091 = vmatprep.mubr.f32.mxu1 %v10336_v11  ;;  %7214 = vmatprep.mubr.f32.mxu0 %v10340_v13 }
  0x4b   : > { %8270 = vmatpush3.bf16.msra.mxu0 %v10188_v14  ;;  %v8227_v14 = vpack.c.bf16 %v10223_v28, %v10212_v25 }
  0x4c   : > { %8272 = vmatprep.subr.bf16.mxu0 %v10192_v18 }
  0x4d   : > { %7092 = vmatmul.mubr.f32.vlgmr.msra.gmra.mrb[0].mxu1 %v10338_v12  ;;  %7215 = vmatmul.mubr.f32.gmra.mrb[2].mxu0 %v10346_v23 }
  0x4e   : > { %8222 = vmatpush3.bf16.msra.mxu1 %v8219_v34  ;;  %7094 = vmatprep.mubr.f32.mxu1 %v10340_v13 }
  0x4f   : > { %7217 = vmatprep.mubr.f32.mxu0 %v10362_v37  ;;  %8224 = vmatprep.subr.bf16.mxu1 %v8223_v2 }
  0x50   : > { %8274 = vmatpush3.bf16.msra.mxu0 %v10192_v18  ;;  %v8231_v18 = vpack.c.bf16 %v10237_v33, %v10225_v29 }
  0x51   : > { %7095 = vmatmul.mubr.f32.gmra.mrb[2].mxu1 %v10346_v23  ;;  %7218 = vmatmul.mubr.f32.gmra.mrb[4].mxu0 %v10369_v40 }
  0x52   : > { %7097 = vmatprep.mubr.f32.mxu1 %v10362_v37  ;;  %7220 = vmatprep.mubr.f32.mxu0 %v10384_v60 }
  0x53   : > { %8226 = vmatpush3.bf16.msra.mxu1 %v8223_v2  ;;  %8276 = vmatprep.subr.bf16.mxu0 %v10194_v19 }
  0x54   : > { %8228 = vmatprep.subr.bf16.mxu1 %v8227_v14  ;;  %8278 = vmatpush3.bf16.msra.mxu0 %v10194_v19 }
  0x55   : > { %7098 = vmatmul.mubr.f32.gmra.mrb[4].mxu1 %v10369_v40  ;;  %7221 = vmatmul.mubr.f32.gmra.mrb[6].mxu0 %v10410_v61 }
  0x56   : > { %7100 = vmatprep.mubr.f32.mxu1 %v10384_v60  ;;  %7223 = vmatprep.mubr.f32.mxu0 %v10451_v62 }
  0x57   : > { %8230 = vmatpush3.bf16.msra.mxu1 %v8227_v14  ;;  %8280 = vmatprep.subr.bf16.mxu0 %v10207_v22 }
  0x58   : > { %8232 = vmatprep.subr.bf16.mxu1 %v8231_v18  ;;  %8282 = vmatpush3.bf16.msra.mxu0 %v10207_v22  ;;  %v6356_v22 = vld [vmem:[%s13026_s4] ss:$0 sm:$0xff] }
  0x59   : > { %7101 = vmatmul.mubr.f32.gmra.mrb[6].mxu1 %v10410_v61  ;;  %7224 = vmatmul.mubr.f32.gmra.mrb[8].mxu0 %v10454_v0 }
  0x5a   : > { %7103 = vmatprep.mubr.f32.mxu1 %v10451_v62  ;;  %7226 = vmatprep.mubr.f32.mxu0 %v10457_v15 }
  0x5b   : > { %8234 = vmatpush3.bf16.msra.mxu1 %v8231_v18 }
  0x5d   : > { %7104 = vmatmul.mubr.f32.gmra.mrb[8].mxu1 %v10454_v0  ;;  %7227 = vmatmul.mubr.f32.gmra.mrb[10].mxu0 %v10482_v3 }
  0x5e   : > { %7106 = vmatprep.mubr.f32.mxu1 %v10457_v15  ;;  %7229 = vmatprep.mubr.f32.mxu0 %v10484_v63 }
  0x61   : > { %7107 = vmatmul.mubr.f32.gmra.mrb[10].mxu1 %v10482_v3  ;;  %7230 = vmatmul.mubr.f32.gmra.mrb[12].mxu0 %v10487_v49 }
  0x62   : > { %7109 = vmatprep.mubr.f32.mxu1 %v10484_v63  ;;  %7232 = vmatprep.mubr.f32.mxu0 %v10524_v45 }
  0x65   : > { %7110 = vmatmul.mubr.f32.gmra.mrb[12].mxu1 %v10487_v49  ;;  %7233 = vmatmul.mubr.f32.gmra.mrb[14].mxu0 %v10532_v50 }
  0x66   : > { %7112 = vmatprep.mubr.f32.mxu1 %v10524_v45  ;;  %7251 = vmatprep.mubr.f32.mxu0 %v10336_v11 }
  0x69   : > { %7113 = vmatmul.mubr.f32.gmra.mrb[14].mxu1 %v10532_v50  ;;  %7252 = vmatmul.mubr.f32.vlgmr.msra.gmra.mrb[0].mxu0 %v10338_v12 }
  0x6a   : > { %7131 = vmatprep.mubr.f32.mxu1 %v10353_v31  ;;  %7254 = vmatprep.mubr.f32.mxu0 %v10340_v13 }
  0x6d   : > { %7132 = vmatmul.mubr.f32.vlgmr.msra.gmra.mrb[0].mxu1 %v10357_v32  ;;  %7255 = vmatmul.mubr.f32.gmra.mrb[2].mxu0 %v10346_v23 }
  0x6e   : > { %7134 = vmatprep.mubr.f32.mxu1 %v10360_v35  ;;  %7257 = vmatprep.mubr.f32.mxu0 %v10362_v37 }
  0x71   : > { %7135 = vmatmul.mubr.f32.gmra.mrb[2].mxu1 %v10366_v38  ;;  %7258 = vmatmul.mubr.f32.gmra.mrb[4].mxu0 %v10369_v40 }
  0x72   : > { %7137 = vmatprep.mubr.f32.mxu1 %v10378_v53  ;;  %7260 = vmatprep.mubr.f32.mxu0 %v10384_v60 }
  0x75   : > { %7138 = vmatmul.mubr.f32.gmra.mrb[4].mxu1 %v10382_v59  ;;  %7261 = vmatmul.mubr.f32.gmra.mrb[6].mxu0 %v10410_v61 }
  0x76   : > { %7140 = vmatprep.mubr.f32.mxu1 %v10394_v7  ;;  %7263 = vmatprep.mubr.f32.mxu0 %v10451_v62 }
  0x79   : > { %7141 = vmatmul.mubr.f32.gmra.mrb[6].mxu1 %v10422_v6  ;;  %7264 = vmatmul.mubr.f32.gmra.mrb[8].mxu0 %v10454_v0 }
  0x7a   : > { %7143 = vmatprep.mubr.f32.mxu1 %v10464_v5  ;;  %7266 = vmatprep.mubr.f32.mxu0 %v10457_v15 }
  0x7d   : > { %7144 = vmatmul.mubr.f32.gmra.mrb[8].mxu1 %v10467_v51  ;;  %7267 = vmatmul.mubr.f32.gmra.mrb[10].mxu0 %v10482_v3 }
  0x7e   : > { %7146 = vmatprep.mubr.f32.mxu1 %v10474_v52  ;;  %7269 = vmatprep.mubr.f32.mxu0 %v10484_v63 }
  0x81   : > { %7147 = vmatmul.mubr.f32.gmra.mrb[10].mxu1 %v10496_v26  ;;  %7270 = vmatmul.mubr.f32.gmra.mrb[12].mxu0 %v10487_v49 }
  0x82   : > { %7149 = vmatprep.mubr.f32.mxu1 %v10500_v30  ;;  %7272 = vmatprep.mubr.f32.mxu0 %v10524_v45 }
  0x85   : > { %7150 = vmatmul.mubr.f32.gmra.mrb[12].mxu1 %v10503_v9  ;;  %7273 = vmatmul.mubr.f32.gmra.mrb[14].mxu0 %v10532_v50 }
  0x86   : > { %7152 = vmatprep.mubr.f32.mxu1 %v10530_v54 }
  0x89   : > { %7153 = vmatmul.mubr.f32.gmra.mrb[14].mxu1 %v10536_v57 }
 0x13c   : > { %v7253_v19 = vpop.f32.mrb[0].mxu0 }
 0x13d   : > { %v1654_v21 = vpop.f32.mrb[1].mxu0 }
 0x140   : > { %v7133_v24 = vpop.f32.mrb[0].mxu1  ;;  %v7256_v25 = vpop.f32.mrb[2].mxu0 }
 0x141   : > { %v8763_v28 = vadd.f32 %v7133_v24, %v6356_v22  ;;  %v1084_v29 = vpop.f32.mrb[1].mxu1  ;;  %v1666_v33 = vpop.f32.mrb[3].mxu0  ;;  %v10654_v24 = vmov 0.0  }
 0x142   : > { %v8765_v45 = vadd.f32 %v6356_v22, %v1084_v29  ;;  %v10660_v29 = vmov 0.0  }
 0x143   : > { %v10622_v6 = vadd.f32 %v8763_v28, %v7253_v19  ;;  %v10658_v28 = vmov 0.0  }
 0x144   : > { %v10624_v11 = vadd.f32 %v8765_v45, %v1654_v21  ;;  %v7136_v12 = vpop.f32.mrb[2].mxu1  ;;  %v7259_v13 = vpop.f32.mrb[4].mxu0  ;;  %v10664_v45 = vmov 0.0  }
 0x145   : > { %13203 = vst [vmem:[#allocation18_spill] sm:$0xff] %v10622_v6  ;;  %v8767_v23 = vadd.f32 %v7136_v12, %v6356_v22  ;;  %v1098_v31 = vpop.f32.mrb[3].mxu1  ;;  %v1678_v32 = vpop.f32.mrb[5].mxu0  ;;  %v10666_v12 = vmov 0.0  }
 0x146   : > { %13204 = vst [vmem:[#allocation19_spill] sm:$0xff] %v10624_v11  ;;  %v8769_v35 = vadd.f32 %v6356_v22, %v1098_v31  ;;  %v10674_v31 = vmov 0.0  }
 0x147   : > { %v10626_v37 = vadd.f32 %v8767_v23, %v7256_v25  ;;  %v10656_v25 = vmov 0.0   ;;  %v10672_v23 = vmov 0.0  }
 0x148   : > { %v10628_v38 = vadd.f32 %v8769_v35, %v1666_v33  ;;  %v7139_v40 = vpop.f32.mrb[4].mxu1  ;;  %v7262_v53 = vpop.f32.mrb[6].mxu0  ;;  %v10662_v33 = vmov 0.0   ;;  %v10678_v35 = vmov 0.0  }
 0x149   : > { %13205 = vst [vmem:[#allocation20_spill] sm:$0xff] %v10626_v37  ;;  %v8771_v59 = vadd.f32 %v7139_v40, %v6356_v22  ;;  %v1112_v60 = vpop.f32.mrb[5].mxu1  ;;  %v1690_v7 = vpop.f32.mrb[7].mxu0  ;;  %v10680_v40 = vmov 0.0  }
 0x14a   : > { %13206 = vst [vmem:[#allocation21_spill] sm:$0xff] %v10628_v38  ;;  %v8773_v9 = vadd.f32 %v6356_v22, %v1112_v60  ;;  %v10686_v60 = vmov 0.0  }
 0x14b   : > { %v10630_v61 = vadd.f32 %v8771_v59, %v7259_v13  ;;  %v10668_v13 = vmov 0.0   ;;  %v10684_v59 = vmov 0.0  }
 0x14c   : > { %v10632_v30 = vadd.f32 %v8773_v9, %v1678_v32  ;;  %v7142_v51 = vpop.f32.mrb[6].mxu1  ;;  %v7265_v62 = vpop.f32.mrb[8].mxu0  ;;  %v10676_v32 = vmov 0.0   ;;  %v10690_v9 = vmov 0.0  }
 0x14d   : > { %13207 = vst [vmem:[#allocation22_spill] sm:$0xff] %v10630_v61  ;;  %v8775_v0 = vadd.f32 %v7142_v51, %v6356_v22  ;;  %v1126_v15 = vpop.f32.mrb[7].mxu1  ;;  %v1702_v5 = vpop.f32.mrb[9].mxu0  ;;  %v10692_v51 = vmov 0.0  }
 0x14e   : > { %13208 = vst [vmem:[#allocation23_spill] sm:$0xff] %v10632_v30  ;;  %v8777_v52 = vadd.f32 %v6356_v22, %v1126_v15  ;;  %v10698_v15 = vmov 0.0  }
 0x14f   : > { %v10634_v3 = vadd.f32 %v8775_v0, %v7262_v53  ;;  %v10682_v53 = vmov 0.0   ;;  %v10696_v0 = vmov 0.0  }
 0x150   : > { %v10636_v63 = vadd.f32 %v8777_v52, %v1690_v7  ;;  %v7145_v49 = vpop.f32.mrb[8].mxu1  ;;  %v7268_v26 = vpop.f32.mrb[10].mxu0  ;;  %v10688_v7 = vmov 0.0   ;;  %v10702_v52 = vmov 0.0  }
 0x151   : > { %13209 = vst [vmem:[#allocation24_spill] sm:$0xff] %v10634_v3  ;;  %v8779_v58 = vadd.f32 %v7145_v49, %v6356_v22  ;;  %v1140_v27 = vpop.f32.mrb[9].mxu1  ;;  %v1714_v48 = vpop.f32.mrb[11].mxu0  ;;  %v10704_v49 = vmov 0.0  }
 0x152   : > { %13210 = vst [vmem:[#allocation25_spill] sm:$0xff] %v10636_v63  ;;  %v8781_v36 = vadd.f32 %v6356_v22, %v1140_v27  ;;  %v10710_v27 = vmov 0.0  }
 0x153   : > { %v10638_v46 = vadd.f32 %v8779_v58, %v7265_v62  ;;  %v10694_v62 = vmov 0.0   ;;  %v10708_v58 = vmov 0.0  }
 0x154   : > { %v10640_v4 = vadd.f32 %v8781_v36, %v1702_v5  ;;  %v7148_v42 = vpop.f32.mrb[10].mxu1  ;;  %v7271_v10 = vpop.f32.mrb[12].mxu0  ;;  %v10700_v5 = vmov 0.0   ;;  %v10714_v36 = vmov 0.0  }
 0x155   : > { %13211 = vst [vmem:[#allocation26_spill] sm:$0xff] %v10638_v46  ;;  %v8783_v1 = vadd.f32 %v7148_v42, %v6356_v22  ;;  %v1154_v43 = vpop.f32.mrb[11].mxu1  ;;  %v1726_v41 = vpop.f32.mrb[13].mxu0  ;;  %v10716_v42 = vmov 0.0  }
 0x156   : > { %13212 = vst [vmem:[#allocation27_spill] sm:$0xff] %v10640_v4  ;;  %v8785_v34 = vadd.f32 %v6356_v22, %v1154_v43  ;;  %v10722_v43 = vmov -inf  }
 0x157   : > { %v10642_v47 = vadd.f32 %v8783_v1, %v7268_v26  ;;  %v10706_v26 = vmov 0.0   ;;  %v10720_v1 = vmov -inf  }
 0x158   : > { %v10644_v54 = vadd.f32 %v8785_v34, %v1714_v48  ;;  %v7151_v50 = vpop.f32.mrb[12].mxu1  ;;  %v7274_v39 = vpop.f32.mrb[14].mxu0  ;;  %v10712_v48 = vmov 0.0   ;;  %v10726_v34 = vmov -inf  }
 0x159   : > { %13213 = vst [vmem:[#allocation28_spill] sm:$0xff] %v10642_v47  ;;  %v8787_v56 = vadd.f32 %v7151_v50, %v6356_v22  ;;  %v1168_v57 = vpop.f32.mrb[13].mxu1  ;;  %v1738_v17 = vpop.f32.mrb[15].mxu0  ;;  %v10728_v50 = vmov -inf  }
 0x15a   : > { %13214 = vst [vmem:[#allocation29_spill] sm:$0xff] %v10644_v54  ;;  %v8789_v20 = vadd.f32 %v6356_v22, %v1168_v57  ;;  %v10734_v57 = vmov -inf  }
 0x15b   : > { %v10646_v44 = vadd.f32 %v8787_v56, %v7271_v10  ;;  %v10718_v10 = vmov -inf   ;;  %v10732_v56 = vmov -inf  }
 0x15c   : > { %v10648_v16 = vadd.f32 %v8789_v20, %v1726_v41  ;;  %v7154_v8 = vpop.f32.mrb[14].mxu1  ;;  %v10724_v41 = vmov -inf   ;;  %v10738_v20 = vmov -inf  }
 0x15d   : > { %13215 = vst [vmem:[#allocation30_spill] sm:$0xff] %v10646_v44  ;;  %v8791_v2 = vadd.f32 %v7154_v8, %v6356_v22  ;;  %v1182_v14 = vpop.f32.mrb[15].mxu1  ;;  %v10740_v8 = vmov -inf  }
 0x15e   : > { %13216 = vst [vmem:[#allocation31_spill] sm:$0xff] %v10648_v16  ;;  %v8793_v18 = vadd.f32 %v6356_v22, %v1182_v14  ;;  %v10670_v22 = vmov 0.0   ;;  %v10744_v14 = vmov -inf  }
 0x15f   : > { %v10650_v19 = vadd.f32 %v8791_v2, %v7274_v39  ;;  %v10730_v39 = vmov -inf   ;;  %v10742_v2 = vmov -inf  }
 0x160   : > { %v10652_v21 = vadd.f32 %v8793_v18, %v1738_v17  ;;  %v10736_v17 = vmov -inf   ;;  %v10746_v18 = vmov -inf  }
 0x161   : > { %13217 = vst [vmem:[#allocation32_spill] sm:$0xff] %v10650_v19 }
 0x162   : > { %13218 = vst [vmem:[#allocation33_spill] sm:$0xff] %v10652_v21 }
 0x163 LB: >> { %13219 = vst [vmem:[#allocation34_spill] sm:$0xff] %v9881_v24  ;;  %13220 = vst [vmem:[#allocation35_spill] sm:$0xff] %v9885_v25  ;;  %v13267_v11 = vld [vmem:[#allocation19_spill] sm:$0xff]  ;;  %s6357_s16 = sshll.u32 %s10073_s29, 7  ;;  %v13272_v6 = vld [vmem:[#allocation18_spill] sm:$0xff]  ;;  %s1753_s22 = sadd.s32 1, %s10073_s29   ;;  %s10073_s29 = sphi %s10750_s29, %s13580_s29   ;;  %v10069_v55 = vphi %v10748_v55, %v13579_v55   ;;  %v10065_v18 = vphi %v10746_v18, %v13578_v18   ;;  %v10061_v14 = vphi %v10744_v14, %v13577_v14   ;;  %v10057_v2 = vphi %v10742_v2, %v13576_v2   ;;  %v10053_v8 = vphi %v10740_v8, %v13575_v8   ;;  %v10049_v20 = vphi %v10738_v20, %v13574_v20   ;;  %v10045_v17 = vphi %v10736_v17, %v13573_v17   ;;  %v10041_v57 = vphi %v10734_v57, %v13428_v57   ;;  %v10037_v56 = vphi %v10732_v56, %v13572_v56   ;;  %v10033_v39 = vphi %v10730_v39, %v13571_v39   ;;  %v10029_v50 = vphi %v10728_v50, %v13570_v50   ;;  %v10025_v34 = vphi %v10726_v34, %v13450_v34   ;;  %v10021_v41 = vphi %v10724_v41, %v13569_v41   ;;  %v10017_v43 = vphi %v10722_v43, %v13568_v43   ;;  %v10013_v1 = vphi %v10720_v1, %v13567_v1   ;;  %v10009_v10 = vphi %v10718_v10, %v13473_v10   ;;  %v10005_v42 = vphi %v10716_v42, %v13566_v42   ;;  %v10001_v36 = vphi %v10714_v36, %v13565_v36   ;;  %v9997_v48 = vphi %v10712_v48, %v13564_v48   ;;  %v9993_v27 = vphi %v10710_v27, %v13563_v27   ;;  %v9989_v58 = vphi %v10708_v58, %v13562_v58   ;;  %v9985_v26 = vphi %v10706_v26, %v13561_v26   ;;  %v9981_v49 = vphi %v10704_v49, %v13560_v49   ;;  %v9977_v52 = vphi %v10702_v52, %v13559_v52   ;;  %v9973_v5 = vphi %v10700_v5, %v13558_v5   ;;  %v9969_v15 = vphi %v10698_v15, %v13557_v15   ;;  %v9965_v0 = vphi %v10696_v0, %v13556_v0   ;;  %v9961_v62 = vphi %v10694_v62, %v13555_v62   ;;  %v9957_v51 = vphi %v10692_v51, %v13554_v51   ;;  %v9953_v9 = vphi %v10690_v9, %v13553_v9   ;;  %v9949_v7 = vphi %v10688_v7, %v13552_v7   ;;  %v9945_v60 = vphi %v10686_v60, %v13551_v60   ;;  %v9941_v59 = vphi %v10684_v59, %v13550_v59   ;;  %v9937_v53 = vphi %v10682_v53, %v13549_v53   ;;  %v9933_v40 = vphi %v10680_v40, %v13548_v40   ;;  %v9929_v35 = vphi %v10678_v35, %v13547_v35   ;;  %v9925_v32 = vphi %v10676_v32, %v13546_v32   ;;  %v9921_v31 = vphi %v10674_v31, %v13545_v31   ;;  %v9917_v23 = vphi %v10672_v23, %v13544_v23   ;;  %v9913_v22 = vphi %v10670_v22, %v13543_v22   ;;  %v9909_v13 = vphi %v10668_v13, %v13542_v13   ;;  %v9905_v12 = vphi %v10666_v12, %v13541_v12   ;;  %v9901_v45 = vphi %v10664_v45, %v13540_v45   ;;  %v9897_v33 = vphi %v10662_v33, %v13539_v33   ;;  %v9893_v29 = vphi %v10660_v29, %v13538_v29   ;;  %v9889_v28 = vphi %v10658_v28, %v13536_v28   ;;  %v9885_v25 = vphi %v10656_v25, %v13535_v25   ;;  %v9881_v24 = vphi %v10654_v24, %v13534_v24  }
 0x164   : >> { %13221 = vst [vmem:[#allocation36_spill] sm:$0xff] %v9889_v28  ;;  %13222 = vst [vmem:[#allocation37_spill] sm:$0xff] %v9893_v29  ;;  %v10901_v25 = vsel %vm517_vm0, %v13267_v11, 0  ;;  %s10910_s17 = scalar_lea.vmem %s10232_s30, %s6357_s16  ;;  %v13275_v38 = vld [vmem:[#allocation21_spill] sm:$0xff]  ;;  %v13276_v37 = vld [vmem:[#allocation20_spill] sm:$0xff]  ;;  %s11409_s19 = scalar_lea.vmem %s10242_s20, %s6357_s16 }
 0x165   : >> { %13223 = vst [vmem:[#allocation38_spill] sm:$0xff] %v9897_v33  ;;  %13224 = vst [vmem:[#allocation39_spill] sm:$0xff] %v9901_v45  ;;  %v10904_v24 = vand.u32 4294901760, %v10901_v25  ;;  %v1804_v29 = vld [vmem:[%s10910_s17] sm:$0xff]  ;;  %v1805_v28 = vld [vmem:[%s10910_s17 + $0x8] sm:$0xff]  ;;  %p12424_p7 = scmp.ge.s32.totalorder %s1753_s22, 2   ;;  %s13580_s29 = smov %s1753_s22 }
 0x166   : >> { %13225 = vst [vmem:[#allocation40_spill] sm:$0xff] %v9905_v12  ;;  %13226 = vst [vmem:[#allocation41_spill] sm:$0xff] %v9909_v13  ;;  %v1806_v11 = vld [vmem:[%s10910_s17 + $0x10] sm:$0xff]  ;;  %v1886_v45 = vsel %vm517_vm0, %v1804_v29, 0  ;;  %v1889_v33 = vsel %vm517_vm0, %v1805_v28, 0  ;;  %v1807_v13 = vld [vmem:[%s10910_s17 + $0x18] sm:$0xff] }
 0x167   : >> { %13227 = vst [vmem:[#allocation42_spill] sm:$0xff] %v9913_v22  ;;  %13228 = vst [vmem:[#allocation43_spill] sm:$0xff] %v9917_v23  ;;  %7363 = vmatprep.mubr.f32.mxu0 %v10904_v24  ;;  %v1892_v12 = vsel %vm517_vm0, %v1806_v11, 0  ;;  %v1808_v23 = vld [vmem:[%s10910_s17 + $0x20] sm:$0xff]  ;;  %v1809_v22 = vld [vmem:[%s10910_s17 + $0x28] sm:$0xff] }
 0x168   : >> { %13229 = vst [vmem:[#allocation44_spill] sm:$0xff] %v9921_v31  ;;  %13230 = vst [vmem:[#allocation45_spill] sm:$0xff] %v9925_v32  ;;  %v1934_v32 = vand.u32 4294901760, %v1886_v45  ;;  %v1937_v31 = vand.u32 4294901760, %v1889_v33  ;;  %v13277_v30 = vld [vmem:[#allocation23_spill] sm:$0xff]  ;;  %v13278_v61 = vld [vmem:[#allocation22_spill] sm:$0xff] }
 0x169   : >> { %13231 = vst [vmem:[#allocation46_spill] sm:$0xff] %v9929_v35  ;;  %13232 = vst [vmem:[#allocation47_spill] sm:$0xff] %v9933_v40  ;;  %v1895_v40 = vsel %vm517_vm0, %v1807_v13, 0  ;;  %v1940_v35 = vand.u32 4294901760, %v1892_v12  ;;  %v13279_v63 = vld [vmem:[#allocation25_spill] sm:$0xff]  ;;  %v13280_v3 = vld [vmem:[#allocation24_spill] sm:$0xff] }
 0x16a   : >> { %13233 = vst [vmem:[#allocation48_spill] sm:$0xff] %v9937_v53  ;;  %13234 = vst [vmem:[#allocation49_spill] sm:$0xff] %v9941_v59  ;;  %v1810_v59 = vld [vmem:[%s10910_s17 + $0x30] sm:$0xff]  ;;  %v1943_v53 = vand.u32 4294901760, %v1895_v40  ;;  %v10930_v28 = vpack.c.bf16 %v1937_v31, %v1934_v32  ;;  %v10932_v11 = vsub.f32 %v1886_v45, %v1934_v32  ;;  %v13281_v4 = vld [vmem:[#allocation27_spill] sm:$0xff] }
 0x16b   : >> { %13235 = vst [vmem:[#allocation50_spill] sm:$0xff] %v9945_v60  ;;  %13236 = vst [vmem:[#allocation51_spill] sm:$0xff] %v9949_v7  ;;  %v1898_v60 = vsel %vm517_vm0, %v1808_v23, 0  ;;  %v1901_v7 = vsel %vm517_vm0, %v1809_v22, 0  ;;  %v10928_v29 = vsel %vm517_vm0, %v1810_v59, 0  ;;  %v13282_v46 = vld [vmem:[#allocation26_spill] sm:$0xff] }
 0x16c   : >> { %13237 = vst [vmem:[#allocation52_spill] sm:$0xff] %v9953_v9  ;;  %13238 = vst [vmem:[#allocation53_spill] sm:$0xff] %v9957_v51  ;;  %v1811_v9 = vld [vmem:[%s10910_s17 + $0x38] sm:$0xff]  ;;  %v10934_v51 = vsub.f32 %v1889_v33, %v1937_v31  ;;  %v10938_v13 = vpack.c.bf16 %v1943_v53, %v1940_v35  ;;  %v1949_v23 = vand.u32 4294901760, %v1901_v7  ;;  %v13048_v22 = vand.u32 4294901760, %v10932_v11  ;;  %8284 = vmatprep.subr.bf16.mxu1 %v10930_v28  ;;  %v13284_v47 = vld [vmem:[#allocation28_spill] sm:$0xff] }
 0x16d   : >> { %13239 = vst [vmem:[#allocation54_spill] sm:$0xff] %v9961_v62  ;;  %13240 = vst [vmem:[#allocation55_spill] sm:$0xff] %v9965_v0  ;;  %v10936_v62 = vsub.f32 %v1892_v12, %v1940_v35  ;;  %v10940_v0 = vsub.f32 %v1895_v40, %v1943_v53  ;;  %8286 = vmatpush3.bf16.xpose.msra.mxu1 %v10930_v28  ;;  %v1952_v40 = vand.u32 4294901760, %v10928_v29  ;;  %v13283_v54 = vld [vmem:[#allocation29_spill] sm:$0xff]  ;;  %v13285_v16 = vld [vmem:[#allocation31_spill] sm:$0xff] }
 0x16e   : >> { %13241 = vst [vmem:[#allocation56_spill] sm:$0xff] %v9969_v15  ;;  %13242 = vst [vmem:[#allocation57_spill] sm:$0xff] %v9973_v5  ;;  %v1946_v15 = vand.u32 4294901760, %v1898_v60  ;;  %v13049_v5 = vand.u32 4294901760, %v10934_v51  ;;  %v10950_v12 = vsub.f32 %v1901_v7, %v1949_v23  ;;  %v2178_v31 = vsub.f32 %v10932_v11, %v13048_v22  ;;  %8288 = vmatprep.subr.bf16.mxu1 %v10938_v13  ;;  %v13286_v44 = vld [vmem:[#allocation30_spill] sm:$0xff]  ;;  %v13287_v21 = vld [vmem:[#allocation33_spill] sm:$0xff] }
 0x16f   : >> { %13243 = vst [vmem:[#allocation58_spill] sm:$0xff] %v9977_v52  ;;  %13244 = vst [vmem:[#allocation59_spill] sm:$0xff] %v9981_v49  ;;  %v13050_v59 = vand.u32 4294901760, %v10936_v62  ;;  %v1907_v52 = vsel %vm517_vm0, %v1811_v9, 0  ;;  %v13051_v33 = vand.u32 4294901760, %v10940_v0  ;;  %v13288_v19 = vld [vmem:[#allocation32_spill] sm:$0xff] }
 0x170   : >> { %13245 = vst [vmem:[#allocation60_spill] sm:$0xff] %v9985_v26  ;;  %13246 = vst [vmem:[#allocation61_spill] sm:$0xff] %v9989_v58  ;;  %v10948_v45 = vsub.f32 %v1898_v60, %v1946_v15  ;;  %v2185_v32 = vsub.f32 %v10934_v51, %v13049_v5  ;;  %v13053_v7 = vand.u32 4294901760, %v10950_v12  ;;  %v1955_v9 = vand.u32 4294901760, %v1907_v52  ;;  %v1813_v58 = vld [vmem:[%s10910_s17 + $0x48] sm:$0xff] }
 0x171   : >> { %13247 = vst [vmem:[#allocation62_spill] sm:$0xff] %v9993_v27  ;;  %13248 = vst [vmem:[#allocation63_spill] sm:$0xff] %v9997_v48  ;;  %v2192_v35 = vsub.f32 %v10936_v62, %v13050_v59  ;;  %v2199_v53 = vsub.f32 %v10940_v0, %v13051_v33  ;;  %v2179_v22 = vand.u32 4294901760, %v2178_v31  ;;  %v10970_v26 = vsub.f32 %v10928_v29, %v1952_v40  ;;  %v1812_v59 = vld [vmem:[%s10910_s17 + $0x40] sm:$0xff] }
 0x172   : >> { %13249 = vst [vmem:[#allocation64_spill] sm:$0xff] %v10001_v36  ;;  %13250 = vst [vmem:[#allocation65_spill] sm:$0xff] %v10005_v42  ;;  %v13052_v60 = vand.u32 4294901760, %v10948_v45  ;;  %v2186_v49 = vand.u32 4294901760, %v2185_v32  ;;  %v2213_v33 = vsub.f32 %v10950_v12, %v13053_v7  ;;  %v10980_v42 = vsub.f32 %v1907_v52, %v1955_v9 }
 0x173   : >> { %13251 = vst [vmem:[#allocation66_spill] sm:$0xff] %v10009_v10  ;;  %13252 = vst [vmem:[#allocation67_spill] sm:$0xff] %v10013_v1  ;;  %v2193_v5 = vand.u32 4294901760, %v2192_v35  ;;  %v2200_v27 = vand.u32 4294901760, %v2199_v53  ;;  %v13059_v29 = vand.u32 4294901760, %v10970_v26  ;;  %v1910_v32 = vsel %vm517_vm0, %v1812_v59, 0 }
 0x174   : >> { %13253 = vst [vmem:[#allocation68_spill] sm:$0xff] %v10017_v43  ;;  %13254 = vst [vmem:[#allocation69_spill] sm:$0xff] %v10021_v41  ;;  %v2206_v48 = vsub.f32 %v10948_v45, %v13052_v60  ;;  %v8315_v36 = vpack.c.bf16 %v2186_v49, %v2179_v22  ;;  %v1913_v35 = vsel %vm517_vm0, %v1813_v58, 0  ;;  %v10985_v53 = vpack.c.bf16 %v1949_v23, %v1946_v15  ;;  %v1814_v49 = vld [vmem:[%s10910_s17 + $0x50] sm:$0xff]  ;;  %v1815_v22 = vld [vmem:[%s10910_s17 + $0x58] sm:$0xff] }
 0x175   : >> { %13255 = vst [vmem:[#allocation70_spill] sm:$0xff] %v10025_v34  ;;  %13256 = vst [vmem:[#allocation71_spill] sm:$0xff] %v10029_v50  ;;  %v8319_v31 = vpack.c.bf16 %v2200_v27, %v2193_v5  ;;  %v13063_v60 = vand.u32 4294901760, %v10980_v42  ;;  %v2214_v52 = vand.u32 4294901760, %v2213_v33  ;;  %8290 = vmatpush3.bf16.xpose.msra.mxu1 %v10938_v13  ;;  %v1958_v5 = vand.u32 4294901760, %v1910_v32  ;;  %v1816_v58 = vld [vmem:[%s10910_s17 + $0x60] sm:$0xff] }
 0x176   : >> { %13257 = vst [vmem:[#allocation72_spill] sm:$0xff] %v10033_v39  ;;  %13258 = vst [vmem:[#allocation73_spill] sm:$0xff] %v10037_v56  ;;  %8316 = vmatprep.subr.bf16.mxu0 %v8315_v36  ;;  %v2207_v7 = vand.u32 4294901760, %v2206_v48  ;;  %v1961_v27 = vand.u32 4294901760, %v1913_v35  ;;  %8292 = vmatprep.subr.bf16.mxu1 %v10985_v53  ;;  %v2220_v15 = vsub.f32 %v10970_v26, %v13059_v29  ;;  %v1817_v23 = vld [vmem:[%s10910_s17 + $0x68] sm:$0xff]  ;;  %v1919_v33 = vsel %vm517_vm0, %v1815_v22, 0 }
 0x177   : >> { %13259 = vst [vmem:[#allocation74_spill] sm:$0xff] %v10041_v57  ;;  %13260 = vst [vmem:[#allocation75_spill] sm:$0xff] %v10045_v17  ;;  %8318 = vmatpush3.bf16.xpose.msra.mxu0 %v8315_v36  ;;  %v2227_v48 = vsub.f32 %v10980_v42, %v13063_v60  ;;  %v1916_v36 = vsel %vm517_vm0, %v1814_v49, 0  ;;  %v1818_v10 = vld [vmem:[%s10910_s17 + $0x70] sm:$0xff]  ;;  %v1819_v1 = vld [vmem:[%s10910_s17 + $0x78] sm:$0xff]  ;;  %v11004_v43 = vsub.f32 %v1910_v32, %v1958_v5  ;;  %v1922_v34 = vsel %vm517_vm0, %v1816_v58, 0 }
 0x178   : >> { %13261 = vst [vmem:[#allocation76_spill] sm:$0xff] %v10049_v20  ;;  %13262 = vst [vmem:[#allocation77_spill] sm:$0xff] %v10053_v8  ;;  %8320 = vmatprep.subr.bf16.mxu0 %v8319_v31  ;;  %v8323_v59 = vpack.c.bf16 %v2214_v52, %v2207_v7  ;;  %v11006_v41 = vsub.f32 %v1913_v35, %v1961_v27  ;;  %v1925_v29 = vsel %vm517_vm0, %v1817_v23, 0  ;;  %v2221_v39 = vand.u32 4294901760, %v2220_v15 }
 0x179   : >> { %13263 = vst [vmem:[#allocation78_spill] sm:$0xff] %v10057_v2  ;;  %13264 = vst [vmem:[#allocation79_spill] sm:$0xff] %v10061_v14  ;;  %v11010_v50 = vpack.c.bf16 %v1955_v9, %v1952_v40  ;;  %v1964_v56 = vand.u32 4294901760, %v1916_v36  ;;  %v2228_v60 = vand.u32 4294901760, %v2227_v48  ;;  %v1967_v57 = vand.u32 4294901760, %v1919_v33 }
 0x17a   : >> { %13265 = vst [vmem:[#allocation80_spill] sm:$0xff] %v10065_v18  ;;  %13266 = vst [vmem:[#allocation81_spill] sm:$0xff] %v10069_v55  ;;  %v11013_v7 = vsel %vm517_vm0, %v1818_v10, 0  ;;  %v11016_v52 = vsel %vm517_vm0, %v1819_v1, 0  ;;  %v1970_v32 = vand.u32 4294901760, %v1922_v34  ;;  %v1973_v35 = vand.u32 4294901760, %v1925_v29 }
 0x17b   : >> { %v13066_v49 = vand.u32 4294901760, %v11004_v43  ;;  %v11023_v9 = vpack.c.bf16 %v10934_v51, %v10932_v11  ;;  %v1976_v10 = vand.u32 4294901760, %v11013_v7  ;;  %v1979_v1 = vand.u32 4294901760, %v11016_v52 }
 0x17c   : >> { %v11028_v22 = vsub.f32 %v1916_v36, %v1964_v56  ;;  %v11030_v15 = vsub.f32 %v1919_v33, %v1967_v57  ;;  %v11032_v58 = vsub.f32 %v1922_v34, %v1970_v32  ;;  %v11034_v23 = vsub.f32 %v1925_v29, %v1973_v35 }
 0x17d   : >> { %8294 = vmatpush3.bf16.xpose.msra.mxu1 %v10985_v53  ;;  %v11038_v48 = vpack.c.bf16 %v10940_v0, %v10936_v62  ;;  %v11042_v40 = vpack.c.bf16 %v10950_v12, %v10948_v45  ;;  %v11052_v34 = vpack.c.bf16 %v10980_v42, %v10970_v26  ;;  %v11056_v29 = vpack.c.bf16 %v11006_v41, %v11004_v43 }
 0x17e   : >> { %8296 = vmatprep.subr.bf16.mxu1 %v11010_v50  ;;  %v11059_v33 = vsub.f32 %v11013_v7, %v1976_v10  ;;  %v11062_v17 = vsub.f32 %v11016_v52, %v1979_v1  ;;  %v11072_v20 = vpack.c.bf16 %v1961_v27, %v1958_v5  ;;  %v13073_v2 = vand.u32 4294901760, %v11028_v22 }
 0x17f   : >> { %8322 = vmatpush3.bf16.xpose.msra.mxu0 %v8319_v31  ;;  %v8327_v31 = vpack.c.bf16 %v2228_v60, %v2221_v39  ;;  %v2234_v39 = vsub.f32 %v11004_v43, %v13066_v49  ;;  %v13268_v60 = vand.u32 4294901760, %v11006_v41  ;;  %v11066_v49 = vpack.c.bf16 %v11030_v15, %v11028_v22 }
 0x180   : >> { %8324 = vmatprep.subr.bf16.mxu0 %v8323_v59  ;;  %13269 = vst [vmem:[#allocation82_spill] sm:$0xff] %v11072_v20  ;;  %v11076_v8 = vpack.c.bf16 %v11062_v17, %v11059_v33  ;;  %v13078_v14 = vand.u32 4294901760, %v11030_v15  ;;  %v2248_v5 = vsub.f32 %v11028_v22, %v13073_v2  ;;  %v13074_v55 = vand.u32 4294901760, %v11032_v58 }
 0x181   : >> { %v2241_v36 = vsub.f32 %v11006_v41, %v13268_v60  ;;  %v11070_v60 = vpack.c.bf16 %v11034_v23, %v11032_v58  ;;  %v2235_v7 = vand.u32 4294901760, %v2234_v39 }
 0x182   : >> { %v2255_v27 = vsub.f32 %v11030_v15, %v13078_v14  ;;  %v2249_v39 = vand.u32 4294901760, %v2248_v5  ;;  %v2262_v2 = vsub.f32 %v11032_v58, %v13074_v55  ;;  %v1865_v14 = vsel %vm517_vm0, %v13282_v46, 0 }
 0x183   : >> { %v2242_v52 = vand.u32 4294901760, %v2241_v36  ;;  %v1877_v46 = vsel %vm517_vm0, %v13286_v44, 0 }
 0x184   : >> { %v2256_v36 = vand.u32 4294901760, %v2255_v27  ;;  %v13076_v27 = vand.u32 4294901760, %v11059_v33 }
 0x185   : >> { %8298 = vmatpush3.bf16.xpose.msra.mxu1 %v11010_v50  ;;  %v8331_v18 = vpack.c.bf16 %v2242_v52, %v2235_v7  ;;  %v13077_v7 = vand.u32 4294901760, %v11034_v23 }
 0x186   : >> { %8300 = vmatprep.subr.bf16.mxu1 %v11072_v20  ;;  %v8335_v52 = vpack.c.bf16 %v2256_v36, %v2249_v39  ;;  %v13075_v39 = vand.u32 4294901760, %v11062_v17  ;;  %v2276_v55 = vsub.f32 %v11059_v33, %v13076_v27 }
 0x187   : >> { %8326 = vmatpush3.bf16.xpose.msra.mxu0 %v8323_v59  ;;  %v11088_v59 = vpack.c.bf16 %v1967_v57, %v1964_v56  ;;  %v2269_v56 = vsub.f32 %v11034_v23, %v13077_v7  ;;  %v11100_v57 = vpack.c.bf16 %v1973_v35, %v1970_v32  ;;  %v11112_v32 = vpack.c.bf16 %v1979_v1, %v1976_v10 }
 0x188   : >> { %8328 = vmatprep.subr.bf16.mxu0 %v8327_v31  ;;  %v13273_v10 = vand.u32 4294901760, %v10932_v11  ;;  %v13274_v1 = vand.u32 4294901760, %v10934_v51  ;;  %v11142_v51 = vsel %vm517_vm0, %v13277_v30, 0  ;;  %v1874_v30 = vsel %vm517_vm0, %v13285_v16, 0 }
 0x189   : >> { %13270 = vst [vmem:[#allocation83_spill] sm:$0xff] %v11088_v59  ;;  %13271 = vst [vmem:[#allocation84_spill] sm:$0xff] %v11100_v57  ;;  %v2270_v5 = vand.u32 4294901760, %v2269_v56  ;;  %v11202_v16 = vand.u32 4294901760, %v1877_v46 }
 0x18d   : >> { %8302 = vmatpush3.bf16.xpose.msra.mxu1 %v11072_v20 }
 0x18e   : >> { %8304 = vmatprep.subr.bf16.mxu1 %v11088_v59 }
 0x18f   : >> { %8330 = vmatpush3.bf16.xpose.msra.mxu0 %v8327_v31  ;;  %v2263_v31 = vand.u32 4294901760, %v2262_v2  ;;  %v2277_v2 = vand.u32 4294901760, %v2276_v55  ;;  %v11130_v55 = vsel %vm517_vm0, %v13275_v38, 0  ;;  %v11194_v38 = vand.u32 4294901760, %v1874_v30 }
 0x190   : >> { %8332 = vmatprep.subr.bf16.mxu0 %v8331_v18 }
 0x191   : >> { %v8339_v36 = vpack.c.bf16 %v2270_v5, %v2263_v31  ;;  %v11119_v31 = vsel %vm517_vm0, %v13272_v6, 0 }
 0x192   : >> { %v11133_v5 = vand.u32 4294901760, %v11119_v31 }
 0x195   : >> { %8306 = vmatpush3.bf16.xpose.msra.mxu1 %v11088_v59 }
 0x196   : >> { %8308 = vmatprep.subr.bf16.mxu1 %v11100_v57 }
 0x197   : >> { %8334 = vmatpush3.bf16.xpose.msra.mxu0 %v8331_v18  ;;  %v2283_v18 = vsub.f32 %v11062_v17, %v13075_v39  ;;  %v1862_v39 = vsel %vm517_vm0, %v13281_v4, 0  ;;  %v11180_v4 = vand.u32 4294901760, %v1865_v14 }
 0x198   : >> { %8336 = vmatprep.subr.bf16.mxu0 %v8335_v52  ;;  %v11172_v7 = vand.u32 4294901760, %v1862_v39 }
 0x199   : >> { %v2284_v35 = vand.u32 4294901760, %v2283_v18  ;;  %v1847_v18 = vsel %vm517_vm0, %v13276_v37, 0 }
 0x19a   : >> { %v11145_v11 = vand.u32 4294901760, %v1847_v18 }
 0x19b   : >> { %v8343_v56 = vpack.c.bf16 %v2284_v35, %v2277_v2  ;;  %v11150_v2 = vand.u32 4294901760, %v11142_v51  ;;  %v1853_v35 = vsel %vm517_vm0, %v13278_v61, 0 }
 0x19d   : >> { %8310 = vmatpush3.bf16.xpose.msra.mxu1 %v11100_v57 }
 0x19e   : >> { %8312 = vmatprep.subr.bf16.mxu1 %v11112_v32 }
 0x19f   : >> { %8338 = vmatpush3.bf16.xpose.msra.mxu0 %v8335_v52  ;;  %v11125_v52 = vpack.c.bf16 %v13274_v1, %v13273_v10  ;;  %v11158_v10 = vand.u32 4294901760, %v1853_v35  ;;  %v1859_v1 = vsel %vm517_vm0, %v13280_v3, 0  ;;  %v1868_v3 = vsel %vm517_vm0, %v13283_v54, 0 }
 0x1a0   : >> { %8340 = vmatprep.subr.bf16.mxu0 %v8339_v36  ;;  %v11168_v27 = vand.u32 4294901760, %v1859_v1  ;;  %v11183_v6 = vand.u32 4294901760, %v1868_v3 }
 0x1a5   : >> { %8314 = vmatpush3.bf16.xpose.msra.mxu1 %v11112_v32 }
 0x1a7   : >> { %8342 = vmatpush3.bf16.xpose.msra.mxu0 %v8339_v36  ;;  %v11136_v36 = vand.u32 4294901760, %v11130_v55 }
 0x1a8   : >> { %8344 = vmatprep.subr.bf16.mxu0 %v8343_v56 }
 0x1af   : >> { %8346 = vmatpush3.bf16.xpose.msra.mxu0 %v8343_v56  ;;  %v1856_v56 = vsel %vm517_vm0, %v13279_v63, 0  ;;  %v13290_v63 = vand.u32 4294901760, %v10936_v62 }
 0x1b0   : >> { %8348 = vmatprep.subr.bf16.mxu0 %v11023_v9 }
 0x1b6   : >> { %7364 = vmatmul.mubr.f32.vlgmr.msra.gmra.mrb[0].mxu0 %v11133_v5 }
 0x1b7   : >> { %8350 = vmatpush3.bf16.xpose.msra.mxu0 %v11023_v9  ;;  %7366 = vmatprep.mubr.f32.mxu0 %v11136_v36  ;;  %v11161_v9 = vand.u32 4294901760, %v1856_v56 }
 0x1b8   : >> { %8352 = vmatprep.subr.bf16.mxu0 %v11038_v48 }
 0x1ba   : >> { %7367 = vmatmul.mubr.f32.gmra.mrb[2].mxu0 %v11145_v11 }
 0x1bb   : >> { %7369 = vmatprep.mubr.f32.mxu0 %v11150_v2 }
 0x1be   : >> { %7370 = vmatmul.mubr.f32.gmra.mrb[4].mxu0 %v11158_v10 }
 0x1bf   : >> { %8354 = vmatpush3.bf16.xpose.msra.mxu0 %v11038_v48  ;;  %7372 = vmatprep.mubr.f32.mxu0 %v11161_v9  ;;  %v1871_v48 = vsel %vm517_vm0, %v13284_v47, 0  ;;  %v1880_v47 = vsel %vm517_vm0, %v13287_v21, 0  ;;  %v2015_v21 = vsub.f32 %v10901_v25, %v10904_v24  ;;  %v2025_v25 = vsub.f32 %v11119_v31, %v11133_v5 }
 0x1c0   : >> { %8356 = vmatprep.subr.bf16.mxu0 %v11042_v40  ;;  %v11190_v37 = vand.u32 4294901760, %v1871_v48  ;;  %v11205_v54 = vand.u32 4294901760, %v1880_v47  ;;  %v11249_v31 = vsub.f32 %v1859_v1, %v11168_v27 }
 0x1c2   : >> { %7373 = vmatmul.mubr.f32.gmra.mrb[6].mxu0 %v11168_v27 }
 0x1c3   : >> { %7375 = vmatprep.mubr.f32.mxu0 %v11172_v7 }
 0x1c6   : >> { %7376 = vmatmul.mubr.f32.gmra.mrb[8].mxu0 %v11180_v4 }
 0x1c7   : >> { %8358 = vmatpush3.bf16.xpose.msra.mxu0 %v11042_v40  ;;  %7378 = vmatprep.mubr.f32.mxu0 %v11183_v6  ;;  %v1883_v40 = vsel %vm517_vm0, %v13288_v19, 0 }
 0x1c8   : >> { %8360 = vmatprep.subr.bf16.mxu0 %v11052_v34  ;;  %v11210_v61 = vand.u32 4294901760, %v1883_v40 }
 0x1ca   : >> { %7379 = vmatmul.mubr.f32.gmra.mrb[10].mxu0 %v11190_v37  ;;  %13289 = vst [vmem:[#allocation85_spill] sm:$0xff] %v11210_v61 }
 0x1cb   : >> { %7381 = vmatprep.mubr.f32.mxu0 %v11194_v38 }
 0x1ce   : >> { %7382 = vmatmul.mubr.f32.gmra.mrb[12].mxu0 %v11202_v16 }
 0x1cf   : >> { %8362 = vmatpush3.bf16.xpose.msra.mxu0 %v11052_v34  ;;  %7384 = vmatprep.mubr.f32.mxu0 %v11205_v54  ;;  %v2035_v34 = vsub.f32 %v11130_v55, %v11136_v36  ;;  %v11254_v55 = vsub.f32 %v1862_v39, %v11172_v7  ;;  %v11272_v39 = vsub.f32 %v1874_v30, %v11194_v38  ;;  %v2016_v30 = vand.u32 4294901760, %v2015_v21 }
 0x1d0   : >> { %8364 = vmatprep.subr.bf16.mxu0 %v11056_v29 }
 0x1d1   : >> { %v2036_v19 = vand.u32 4294901760, %v2035_v34 }
 0x1d2   : >> { %7385 = vmatmul.mubr.f32.gmra.mrb[14].mxu0 %v11210_v61 }
 0x1d3   : >> { %7419 = vmatprep.mubr.f32.mxu0 %v2015_v21 }
 0x1d7   : >> { %8366 = vmatpush3.bf16.xpose.msra.mxu0 %v11056_v29  ;;  %v11231_v29 = vsub.f32 %v1847_v18, %v11145_v11  ;;  %v11259_v18 = vsub.f32 %v1865_v14, %v11180_v4  ;;  %v11277_v14 = vsub.f32 %v1877_v46, %v11202_v16  ;;  %v2026_v46 = vand.u32 4294901760, %v2025_v25 }
 0x1d8   : >> { %8368 = vmatprep.subr.bf16.mxu0 %v11066_v49 }
 0x1d9   : >> { %v2027_v1 = vsub.f32 %v2025_v25, %v2026_v46  ;;  %v2046_v44 = vand.u32 4294901760, %v11231_v29 }
 0x1df   : >> { %8370 = vmatpush3.bf16.xpose.msra.mxu0 %v11066_v49  ;;  %v11236_v49 = vsub.f32 %v11142_v51, %v11150_v2  ;;  %v11263_v51 = vsub.f32 %v1868_v3, %v11183_v6  ;;  %v11281_v3 = vsub.f32 %v1880_v47, %v11205_v54  ;;  %v2017_v47 = vsub.f32 %v2015_v21, %v2016_v30 }
 0x1e0   : >> { %8372 = vmatprep.subr.bf16.mxu0 %v11070_v60 }
 0x1e7   : >> { %8374 = vmatpush3.bf16.xpose.msra.mxu0 %v11070_v60  ;;  %v11245_v60 = vsub.f32 %v1856_v56, %v11161_v9  ;;  %v11285_v56 = vsub.f32 %v1883_v40, %v11210_v61  ;;  %v2028_v40 = vand.u32 4294901760, %v2027_v1  ;;  %v2037_v61 = vsub.f32 %v2035_v34, %v2036_v19 }
 0x1e8   : >> { %8376 = vmatprep.subr.bf16.mxu0 %v11076_v8  ;;  %v2116_v1 = vand.u32 4294901760, %v11263_v51 }
 0x1e9   : >> { %v2038_v21 = vand.u32 4294901760, %v2037_v61 }
 0x1ef   : >> { %8378 = vmatpush3.bf16.xpose.msra.mxu0 %v11076_v8  ;;  %v11241_v8 = vsub.f32 %v1853_v35, %v11158_v10  ;;  %v11267_v35 = vsub.f32 %v1871_v48, %v11190_v37  ;;  %v2018_v48 = vand.u32 4294901760, %v2017_v47 }
 0x1f0   : >> { %8380 = vmatprep.subr.bf16.mxu0 %v10930_v28 }
 0x1f1   : >> { %7307 = vmatprep.mubr.f32.mxu1 %v2018_v48  ;;  %v2066_v47 = vand.u32 4294901760, %v11241_v8  ;;  %v13295_v48 = vand.u32 4294901760, %v10980_v42 }
 0x1f2   : >> { %7308 = vmatmul.mubr.f32.vlgmr.msra.gmra.mrb[0].mxu1 %v2028_v40 }
 0x1f3   : >> { %7310 = vmatprep.mubr.f32.mxu1 %v2038_v21  ;;  %v2126_v21 = vand.u32 4294901760, %v11267_v35 }
 0x1f6   : >> { %7420 = vmatmul.mubr.f32.vlgmr.msra.gmra.mrb[0].mxu0 %v2025_v25  ;;  %v2056_v25 = vand.u32 4294901760, %v11236_v49 }
 0x1f7   : >> { %8382 = vmatpush3.bf16.xpose.msra.mxu0 %v10930_v28  ;;  %7422 = vmatprep.mubr.f32.mxu0 %v2035_v34 }
 0x1f8   : >> { %8384 = vmatprep.subr.bf16.mxu0 %v10938_v13  ;;  %v2057_v62 = vsub.f32 %v11236_v49, %v2056_v25 }
 0x1fa   : >> { %7423 = vmatmul.mubr.f32.gmra.mrb[2].mxu0 %v11231_v29  ;;  %v2058_v61 = vand.u32 4294901760, %v2057_v62 }
 0x1fb   : >> { %7425 = vmatprep.mubr.f32.mxu0 %v11236_v49  ;;  %v2096_v49 = vand.u32 4294901760, %v11254_v55 }
 0x1fe   : >> { %7426 = vmatmul.mubr.f32.gmra.mrb[4].mxu0 %v11241_v8 }
 0x1ff   : >> { %8386 = vmatpush3.bf16.xpose.msra.mxu0 %v10938_v13  ;;  %7428 = vmatprep.mubr.f32.mxu0 %v11245_v60 }
 0x200   : >> { %8388 = vmatprep.subr.bf16.mxu0 %v10985_v53 }
 0x202   : >> { %7429 = vmatmul.mubr.f32.gmra.mrb[6].mxu0 %v11249_v31 }
 0x203   : >> { %7431 = vmatprep.mubr.f32.mxu0 %v11254_v55 }
 0x206   : >> { %7432 = vmatmul.mubr.f32.gmra.mrb[8].mxu0 %v11259_v18 }
 0x207   : >> { %8390 = vmatpush3.bf16.xpose.msra.mxu0 %v10985_v53  ;;  %7434 = vmatprep.mubr.f32.mxu0 %v11263_v51 }
 0x208   : >> { %8392 = vmatprep.subr.bf16.mxu0 %v11010_v50 }
 0x20a   : >> { %7435 = vmatmul.mubr.f32.gmra.mrb[10].mxu0 %v11267_v35 }
 0x20b   : >> { %7437 = vmatprep.mubr.f32.mxu0 %v11272_v39 }
 0x20e   : >> { %7438 = vmatmul.mubr.f32.gmra.mrb[12].mxu0 %v11277_v14 }
 0x20f   : >> { %8394 = vmatpush3.bf16.xpose.msra.mxu0 %v11010_v50  ;;  %7440 = vmatprep.mubr.f32.mxu0 %v11281_v3 }
 0x210   : >> { %8396 = vmatprep.subr.bf16.mxu0 %v11072_v20 }
 0x212   : >> { %7441 = vmatmul.mubr.f32.gmra.mrb[14].mxu0 %v11285_v56 }
 0x213   : >> { %7475 = vmatprep.mubr.f32.mxu0 %v2016_v30 }
 0x217   : >> { %8398 = vmatpush3.bf16.xpose.msra.mxu0 %v11072_v20  ;;  %v2047_v20 = vsub.f32 %v11231_v29, %v2046_v44 }
 0x218   : >> { %8400 = vmatprep.subr.bf16.mxu0 %v11088_v59 }
 0x219   : >> { %v2048_v30 = vand.u32 4294901760, %v2047_v20  ;;  %v2086_v20 = vand.u32 4294901760, %v11249_v31 }
 0x21b   : >> { %7311 = vmatmul.mubr.f32.gmra.mrb[2].mxu1 %v2048_v30  ;;  %v2117_v30 = vsub.f32 %v11263_v51, %v2116_v1 }
 0x21c   : >> { %7313 = vmatprep.mubr.f32.mxu1 %v2058_v61  ;;  %v13297_v61 = vand.u32 4294901760, %v11006_v41  ;;  %v13299_v41 = vand.u32 4294901760, %v11030_v15 }
 0x21f   : >> { %8402 = vmatpush3.bf16.xpose.msra.mxu0 %v11088_v59  ;;  %v13291_v59 = vand.u32 4294901760, %v10940_v0  ;;  %v2076_v0 = vand.u32 4294901760, %v11245_v60 }
 0x220   : >> { %8404 = vmatprep.subr.bf16.mxu0 %v11100_v57 }
 0x221   : >> { %v2077_v29 = vsub.f32 %v11245_v60, %v2076_v0 }
 0x227   : >> { %8406 = vmatpush3.bf16.xpose.msra.mxu0 %v11100_v57  ;;  %v8415_v57 = vpack.c.bf16 %v13291_v59, %v13290_v63  ;;  %v2067_v63 = vsub.f32 %v11241_v8, %v2066_v47  ;;  %v13292_v59 = vand.u32 4294901760, %v10948_v45  ;;  %v2078_v8 = vand.u32 4294901760, %v2077_v29 }
 0x228   : >> { %8408 = vmatprep.subr.bf16.mxu0 %v11112_v32  ;;  %v2106_v45 = vand.u32 4294901760, %v11259_v18 }
 0x229   : >> { %v2068_v34 = vand.u32 4294901760, %v2067_v63  ;;  %v2156_v63 = vand.u32 4294901760, %v11281_v3 }
 0x22a   : >> { %v2107_v60 = vsub.f32 %v11259_v18, %v2106_v45  ;;  %v2136_v18 = vand.u32 4294901760, %v11272_v39 }
 0x22b   : >> { %7314 = vmatmul.mubr.f32.gmra.mrb[4].mxu1 %v2068_v34 }
 0x22c   : >> { %7316 = vmatprep.mubr.f32.mxu1 %v2078_v8  ;;  %v2137_v62 = vsub.f32 %v11272_v39, %v2136_v18  ;;  %v13303_v8 = vand.u32 4294901760, %v11062_v17  ;;  %v13304_v17 = vld [vmem:[#allocation82_spill] sm:$0xff] }
 0x22f   : >> { %8410 = vmatpush3.bf16.xpose.msra.mxu0 %v11112_v32 }
 0x230   : >> { %8412 = vmatprep.subr.bf16.mxu0 %v11125_v52 }
 0x236   : >> { %7476 = vmatmul.mubr.f32.vlgmr.msra.gmra.mrb[0].mxu0 %v2026_v46  ;;  %v2097_v46 = vsub.f32 %v11254_v55, %v2096_v49  ;;  %v2127_v55 = vsub.f32 %v11267_v35, %v2126_v21  ;;  %v2138_v35 = vand.u32 4294901760, %v2137_v62 }
 0x237   : >> { %8414 = vmatpush3.bf16.xpose.msra.mxu0 %v11125_v52  ;;  %7478 = vmatprep.mubr.f32.mxu0 %v2036_v19  ;;  %v13293_v19 = vand.u32 4294901760, %v10950_v12 }
 0x238   : >> { %8416 = vmatprep.subr.bf16.mxu0 %v8415_v57  ;;  %v2128_v42 = vand.u32 4294901760, %v2127_v55 }
 0x239   : >> { %v8419_v52 = vpack.c.bf16 %v13293_v19, %v13292_v59  ;;  %v2166_v19 = vand.u32 4294901760, %v11285_v56 }
 0x23a   : >> { %7479 = vmatmul.mubr.f32.gmra.mrb[2].mxu0 %v2046_v44  ;;  %v2087_v44 = vsub.f32 %v11249_v31, %v2086_v20  ;;  %v2098_v31 = vand.u32 4294901760, %v2097_v46 }
 0x23b   : >> { %7481 = vmatprep.mubr.f32.mxu0 %v2056_v25  ;;  %v2108_v25 = vand.u32 4294901760, %v2107_v60  ;;  %v2167_v39 = vsub.f32 %v11285_v56, %v2166_v19  ;;  %v13301_v56 = vand.u32 4294901760, %v11034_v23 }
 0x23c   : >> { %v2088_v12 = vand.u32 4294901760, %v2087_v44 }
 0x23d   : >> { %v2168_v34 = vand.u32 4294901760, %v2167_v39 }
 0x23e   : >> { %7482 = vmatmul.mubr.f32.gmra.mrb[4].mxu0 %v2066_v47  ;;  %7317 = vmatmul.mubr.f32.gmra.mrb[6].mxu1 %v2088_v12  ;;  %v2118_v47 = vand.u32 4294901760, %v2117_v30 }
 0x23f   : >> { %8418 = vmatpush3.bf16.xpose.msra.mxu0 %v8415_v57  ;;  %7484 = vmatprep.mubr.f32.mxu0 %v2076_v0  ;;  %v13294_v57 = vand.u32 4294901760, %v10970_v26  ;;  %v2146_v26 = vand.u32 4294901760, %v11277_v14  ;;  %v13296_v0 = vand.u32 4294901760, %v11004_v43  ;;  %v13298_v43 = vand.u32 4294901760, %v11028_v22 }
 0x240   : >> { %8420 = vmatprep.subr.bf16.mxu0 %v8419_v52  ;;  %7319 = vmatprep.mubr.f32.mxu1 %v2098_v31 }
 0x241   : >> { %v8423_v40 = vpack.c.bf16 %v13295_v48, %v13294_v57  ;;  %v2147_v51 = vsub.f32 %v11277_v14, %v2146_v26  ;;  %v8427_v59 = vpack.c.bf16 %v13297_v61, %v13296_v0  ;;  %v8431_v29 = vpack.c.bf16 %v13299_v41, %v13298_v43  ;;  %v11480_v43 = vld [vmem:[%s11409_s19 + $0x28] sm:$0xff] }
 0x242   : >> { %7485 = vmatmul.mubr.f32.gmra.mrb[6].mxu0 %v2086_v20  ;;  %7320 = vmatmul.mubr.f32.gmra.mrb[8].mxu1 %v2108_v25  ;;  %v2157_v20 = vsub.f32 %v11281_v3, %v2156_v63  ;;  %v13300_v3 = vand.u32 4294901760, %v11032_v58 }
 0x243   : >> { %7487 = vmatprep.mubr.f32.mxu0 %v2096_v49  ;;  %7322 = vmatprep.mubr.f32.mxu1 %v2118_v47  ;;  %v13302_v49 = vand.u32 4294901760, %v11059_v33 }
 0x244   : >> { %v2158_v14 = vand.u32 4294901760, %v2157_v20  ;;  %v8435_v44 = vpack.c.bf16 %v13301_v56, %v13300_v3  ;;  %v3459_v3 = vand.u32 4294901760, %v11480_v43 }
 0x246   : >> { %7488 = vmatmul.mubr.f32.gmra.mrb[8].mxu0 %v2106_v45  ;;  %7323 = vmatmul.mubr.f32.gmra.mrb[10].mxu1 %v2128_v42  ;;  %v8439_v45 = vpack.c.bf16 %v13303_v8, %v13302_v49 }
 0x247   : >> { %8422 = vmatpush3.bf16.xpose.msra.mxu0 %v8419_v52  ;;  %7490 = vmatprep.mubr.f32.mxu0 %v2116_v1  ;;  %v2148_v52 = vand.u32 4294901760, %v2147_v51 }
 0x248   : >> { %8424 = vmatprep.subr.bf16.mxu0 %v8423_v40  ;;  %7325 = vmatprep.mubr.f32.mxu1 %v2138_v35  ;;  %v11456_v35 = vld [vmem:[%s11409_s19 + $0x18] sm:$0xff] }
 0x24a   : >> { %7491 = vmatmul.mubr.f32.gmra.mrb[10].mxu0 %v2126_v21  ;;  %7326 = vmatmul.mubr.f32.gmra.mrb[12].mxu1 %v2148_v52 }
 0x24b   : >> { %7493 = vmatprep.mubr.f32.mxu0 %v2136_v18  ;;  %7328 = vmatprep.mubr.f32.mxu1 %v2158_v14 }
 0x24e   : >> { %7494 = vmatmul.mubr.f32.gmra.mrb[12].mxu0 %v2146_v26  ;;  %7329 = vmatmul.mubr.f32.gmra.mrb[14].mxu1 %v2168_v34  ;;  %v11477_v34 = vld [vmem:[%s11409_s19 + $0x20] sm:$0xff] }
 0x24f   : >> { %8426 = vmatpush3.bf16.xpose.msra.mxu0 %v8423_v40  ;;  %7496 = vmatprep.mubr.f32.mxu0 %v2156_v63  ;;  %v11453_v63 = vld [vmem:[%s11409_s19 + $0x10] sm:$0xff] }
 0x250   : >> { %8428 = vmatprep.subr.bf16.mxu0 %v8427_v59  ;;  %v3450_v61 = vand.u32 4294901760, %v11453_v63 }
 0x252   : >> { %7497 = vmatmul.mubr.f32.gmra.mrb[14].mxu0 %v2166_v19 }
 0x253   : >> { %7531 = vmatprep.mubr.f32.mxu0 %v10904_v24 }
 0x257   : >> { %8430 = vmatpush3.bf16.xpose.msra.mxu0 %v8427_v59  ;;  %v3453_v59 = vand.u32 4294901760, %v11456_v35 }
 0x258   : >> { %8432 = vmatprep.subr.bf16.mxu0 %v8431_v29 }
 0x259   : >> { %v11468_v52 = vpack.c.bf16 %v3453_v59, %v3450_v61 }
 0x25f   : >> { %8434 = vmatpush3.bf16.xpose.msra.mxu0 %v8431_v29  ;;  %v3456_v29 = vand.u32 4294901760, %v11477_v34 }
 0x260   : >> { %8436 = vmatprep.subr.bf16.mxu0 %v8435_v44 }
 0x261   : >> { %v11494_v8 = vpack.c.bf16 %v3459_v3, %v3456_v29 }
 0x267   : >> { %8438 = vmatpush3.bf16.xpose.msra.mxu0 %v8435_v44 }
 0x268   : >> { %8440 = vmatprep.subr.bf16.mxu0 %v8439_v45 }
 0x26f   : >> { %8442 = vmatpush3.bf16.xpose.msra.mxu0 %v8439_v45  ;;  %v11497_v45 = vld [vmem:[%s11409_s19 + $0x30] sm:$0xff] }
 0x270   : >> { %8444 = vmatprep.subr.bf16.mxu0 %v10930_v28 }
 0x276   : >> { %7532 = vmatmul.mubr.f32.vlgmr.msra.gmra.mrb[0].mxu0 %v11133_v5 }
 0x277   : >> { %8446 = vmatpush3.bf16.xpose.msra.mxu0 %v10930_v28  ;;  %7534 = vmatprep.mubr.f32.mxu0 %v11136_v36  ;;  %v13305_v28 = vld [vmem:[#allocation85_spill] sm:$0xff] }
 0x278   : >> { %8448 = vmatprep.subr.bf16.mxu0 %v10938_v13 }
 0x27a   : >> { %7535 = vmatmul.mubr.f32.gmra.mrb[2].mxu0 %v11145_v11 }
 0x27b   : >> { %7537 = vmatprep.mubr.f32.mxu0 %v11150_v2 }
 0x27e   : >> { %7538 = vmatmul.mubr.f32.gmra.mrb[4].mxu0 %v11158_v10 }
 0x27f   : >> { %8450 = vmatpush3.bf16.xpose.msra.mxu0 %v10938_v13  ;;  %7540 = vmatprep.mubr.f32.mxu0 %v11161_v9  ;;  %v13306_v13 = vld [vmem:[#allocation83_spill] sm:$0xff] }
 0x280   : >> { %8452 = vmatprep.subr.bf16.mxu0 %v10985_v53 }
 0x282   : >> { %7541 = vmatmul.mubr.f32.gmra.mrb[6].mxu0 %v11168_v27 }
 0x283   : >> { %7543 = vmatprep.mubr.f32.mxu0 %v11172_v7 }
 0x286   : >> { %7544 = vmatmul.mubr.f32.gmra.mrb[8].mxu0 %v11180_v4 }
 0x287   : >> { %8454 = vmatpush3.bf16.xpose.msra.mxu0 %v10985_v53  ;;  %7546 = vmatprep.mubr.f32.mxu0 %v11183_v6  ;;  %v13307_v53 = vld [vmem:[#allocation84_spill] sm:$0xff] }
 0x288   : >> { %8456 = vmatprep.subr.bf16.mxu0 %v11010_v50 }
 0x28a   : >> { %7547 = vmatmul.mubr.f32.gmra.mrb[10].mxu0 %v11190_v37 }
 0x28b   : >> { %7549 = vmatprep.mubr.f32.mxu0 %v11194_v38 }
 0x28e   : >> { %7550 = vmatmul.mubr.f32.gmra.mrb[12].mxu0 %v11202_v16 }
 0x28f   : >> { %8458 = vmatpush3.bf16.xpose.msra.mxu0 %v11010_v50  ;;  %7552 = vmatprep.mubr.f32.mxu0 %v11205_v54 }
 0x290   : >> { %8460 = vmatprep.subr.bf16.mxu0 %v13304_v17 }
 0x292   : >> { %7553 = vmatmul.mubr.f32.gmra.mrb[14].mxu0 %v13305_v28 }
 0x293   : >> { %7587 = vmatprep.mubr.f32.mxu0 %v10904_v24 }
 0x297   : >> { %8462 = vmatpush3.bf16.xpose.msra.mxu0 %v13304_v17  ;;  %v11500_v17 = vld [vmem:[%s11409_s19 + $0x38] sm:$0xff] }
 0x298   : >> { %8464 = vmatprep.subr.bf16.mxu0 %v13306_v13 }
 0x29f   : >> { %8466 = vmatpush3.bf16.xpose.msra.mxu0 %v13306_v13  ;;  %v3462_v13 = vand.u32 4294901760, %v11497_v45 }
 0x2a0   : >> { %8468 = vmatprep.subr.bf16.mxu0 %v13307_v53 }
 0x2a7   : >> { %8470 = vmatpush3.bf16.xpose.msra.mxu0 %v13307_v53  ;;  %v3465_v53 = vand.u32 4294901760, %v11500_v17 }
 0x2a8   : >> { %8472 = vmatprep.subr.bf16.mxu0 %v11112_v32 }
 0x2af   : >> { %8474 = vmatpush3.bf16.xpose.msra.mxu0 %v11112_v32 }
 0x2b6   : >> { %7588 = vmatmul.mubr.f32.vlgmr.msra.gmra.mrb[0].mxu0 %v11133_v5  ;;  %v11412_v5 = vld [vmem:[%s11409_s19] sm:$0xff] }
 0x2b7   : >> { %7590 = vmatprep.mubr.f32.mxu0 %v11136_v36  ;;  %v11415_v36 = vld [vmem:[%s11409_s19 + $0x8] sm:$0xff] }
 0x2ba   : >> { %7591 = vmatmul.mubr.f32.gmra.mrb[2].mxu0 %v11145_v11  ;;  %v3444_v11 = vand.u32 4294901760, %v11412_v5 }
 0x2bb   : >> { %7593 = vmatprep.mubr.f32.mxu0 %v11150_v2  ;;  %v3447_v2 = vand.u32 4294901760, %v11415_v36 }
 0x2be   : >> { %7594 = vmatmul.mubr.f32.gmra.mrb[4].mxu0 %v11158_v10  ;;  %v11423_v10 = vpack.c.bf16 %v3447_v2, %v3444_v11 }
 0x2bf   : >> { %7596 = vmatprep.mubr.f32.mxu0 %v11161_v9 }
 0x2c0   : >> { %8476 = vmatprep.subr.bf16.mxu1 %v11423_v10 }
 0x2c1   : >> { %8478 = vmatpush3.bf16.msra.mxu1 %v11423_v10 }
 0x2c2   : >> { %7597 = vmatmul.mubr.f32.gmra.mrb[6].mxu0 %v11168_v27  ;;  %8480 = vmatprep.subr.bf16.mxu1 %v11468_v52 }
 0x2c3   : >> { %7599 = vmatprep.mubr.f32.mxu0 %v11172_v7 }
 0x2c5   : >> { %v7309_v24 = vpop.f32.mrb[0].mxu1  ;;  %8482 = vmatpush3.bf16.msra.mxu1 %v11468_v52 }
 0x2c6   : >> { %7600 = vmatmul.mubr.f32.gmra.mrb[8].mxu0 %v11180_v4  ;;  %v2020_v50 = vpop.f32.mrb[1].mxu1  ;;  %8484 = vmatprep.subr.bf16.mxu1 %v11494_v8 }
 0x2c7   : >> { %7602 = vmatprep.mubr.f32.mxu0 %v11183_v6 }
 0x2c9   : >> { %8486 = vmatpush3.bf16.msra.mxu1 %v11494_v8 }
 0x2ca   : >> { %7603 = vmatmul.mubr.f32.gmra.mrb[10].mxu0 %v11190_v37 }
 0x2cb   : >> { %7605 = vmatprep.mubr.f32.mxu0 %v11194_v38 }
 0x2ce   : >> { %7606 = vmatmul.mubr.f32.gmra.mrb[12].mxu0 %v11202_v16 }
 0x2cf   : >> { %7608 = vmatprep.mubr.f32.mxu0 %v11205_v54 }
 0x2d2   : >> { %7609 = vmatmul.mubr.f32.gmra.mrb[14].mxu0 %v13305_v28 }
 0x2ee   : >> { %v7312_v22 = vpop.f32.mrb[2].mxu1 }
 0x2ef   : >> { %v2040_v15 = vpop.f32.mrb[3].mxu1 }
 0x2fe   : >> { %v7315_v58 = vpop.f32.mrb[4].mxu1 }
 0x2ff   : >> { %v2060_v4 = vpop.f32.mrb[5].mxu1 }
 0x311   : >> { %v7318_v23 = vpop.f32.mrb[6].mxu1 }
 0x312   : >> { %v2080_v6 = vpop.f32.mrb[7].mxu1 }
 0x315   : >> { %v7321_v33 = vpop.f32.mrb[8].mxu1 }
 0x316   : >> { %v2100_v37 = vpop.f32.mrb[9].mxu1 }
 0x319   : >> { %v7324_v7 = vpop.f32.mrb[10].mxu1 }
 0x31a   : >> { %v2120_v38 = vpop.f32.mrb[11].mxu1 }
 0x31d   : >> { %v7327_v27 = vpop.f32.mrb[12].mxu1 }
 0x31e   : >> { %v2140_v16 = vpop.f32.mrb[13].mxu1 }
 0x321   : >> { %v11402_v32 = vpop.f32.mrb[14].mxu1 }
 0x322   : >> { %v11404_v54 = vpop.f32.mrb[15].mxu1 }
 0x389   : >> { %v7589_v9 = vpop.f32.mrb[0].mxu0 }
 0x38a   : >> { %v11427_v12 = vadd.f32 %v7589_v9, %v7309_v24  ;;  %v3125_v46 = vpop.f32.mrb[1].mxu0 }
 0x38b   : >> { %v11429_v60 = vadd.f32 %v3125_v46, %v2020_v50 }
 0x38d   : >> { %v7592_v1 = vpop.f32.mrb[2].mxu0  ;;  %3219 = vmax.xlane.f32.xlu0 %v11429_v60 }
 0x38e   : >> { %v11432_v31 = vadd.f32 %v7592_v1, %v7312_v22  ;;  %v3137_v57 = vpop.f32.mrb[3].mxu0 }
 0x38f   : >> { %v11434_v48 = vadd.f32 %v3137_v57, %v2040_v15  ;;  %v11518_v15 = vpack.c.bf16 %v3465_v53, %v3462_v13  ;;  %v11564_v57 = vld [vmem:[%s11409_s19 + $0x70] sm:$0xff] }
 0x391   : >> { %v7595_v40 = vpop.f32.mrb[4].mxu0  ;;  %3221 = vmax.xlane.f32.xlu0 %v11427_v12  ;;  %3223 = vmax.xlane.f32.xlu1 %v11434_v48 }
 0x392   : >> { %v11438_v21 = vadd.f32 %v7595_v40, %v7315_v58  ;;  %v3149_v25 = vpop.f32.mrb[5].mxu0  ;;  %v11521_v58 = vld [vmem:[%s11409_s19 + $0x40] sm:$0xff]  ;;  %8488 = vmatprep.subr.bf16.mxu1 %v11518_v15  ;;  %v11567_v40 = vld [vmem:[%s11409_s19 + $0x78] sm:$0xff] }
 0x393   : >> { %v11440_v30 = vadd.f32 %v3149_v25, %v2060_v4  ;;  %v11524_v4 = vld [vmem:[%s11409_s19 + $0x48] sm:$0xff]  ;;  %8490 = vmatpush3.bf16.msra.mxu1 %v11518_v15  ;;  %v3486_v25 = vand.u32 4294901760, %v11564_v57 }
 0x395   : >> { %v7598_v55 = vpop.f32.mrb[6].mxu0  ;;  %3225 = vmax.xlane.f32.xlu1 %v11432_v31  ;;  %3227 = vmax.xlane.f32.xlu0 %v11440_v30 }
 0x396   : >> { %v11444_v18 = vadd.f32 %v7598_v55, %v7318_v23  ;;  %v3161_v47 = vpop.f32.mrb[7].mxu0  ;;  %v3468_v23 = vand.u32 4294901760, %v11521_v58  ;;  %v3489_v55 = vand.u32 4294901760, %v11567_v40 }
 0x397   : >> { %v11446_v26 = vadd.f32 %v3161_v47, %v2080_v6  ;;  %v3471_v6 = vand.u32 4294901760, %v11524_v4 }
 0x398   : >> { %v11577_v47 = vpack.c.bf16 %v3489_v55, %v3486_v25 }
 0x399   : >> { %v7601_v42 = vpop.f32.mrb[8].mxu0  ;;  %3229 = vmax.xlane.f32.xlu1 %v11438_v21  ;;  %3231 = vmax.xlane.f32.xlu0 %v11446_v26 }
 0x39a   : >> { %v11450_v62 = vadd.f32 %v7601_v42, %v7321_v33  ;;  %v3173_v51 = vpop.f32.mrb[9].mxu0  ;;  %v11532_v33 = vpack.c.bf16 %v3471_v6, %v3468_v23  ;;  %13308 = vst [vmem:[#allocation82_spill] sm:$0xff] %v11577_v47  ;;  %v11582_v42 = vsub.f32 %v11412_v5, %v3444_v11 }
 0x39b   : >> { %v11458_v0 = vadd.f32 %v3173_v51, %v2100_v37  ;;  %v11535_v37 = vld [vmem:[%s11409_s19 + $0x50] sm:$0xff]  ;;  %v11587_v51 = vsub.f32 %v11415_v36, %v3447_v2  ;;  %v11605_v2 = vsub.f32 %v11453_v63, %v3450_v61  ;;  %v11623_v63 = vsub.f32 %v11477_v34, %v3456_v29 }
 0x39c   : >> { %8492 = vmatprep.subr.bf16.mxu1 %v11532_v33  ;;  %13309 = vst [vmem:[#allocation85_spill] sm:$0xff] %v11582_v42  ;;  %v11648_v29 = vsub.f32 %v11500_v17, %v3465_v53 }
 0x39d   : >> { %v7604_v19 = vpop.f32.mrb[10].mxu0  ;;  %3233 = vmax.xlane.f32.xlu1 %v11444_v18  ;;  %3235 = vmax.xlane.f32.xlu0 %v11458_v0  ;;  %13310 = vst [vmem:[#allocation83_spill] sm:$0xff] %v11587_v51  ;;  %13311 = vst [vmem:[#allocation84_spill] sm:$0xff] %v11605_v2 }
 0x39e   : >> { %v11470_v20 = vadd.f32 %v7604_v19, %v7324_v7  ;;  %v3185_v39 = vpop.f32.mrb[11].mxu0  ;;  %v11538_v7 = vld [vmem:[%s11409_s19 + $0x58] sm:$0xff]  ;;  %8494 = vmatpush3.bf16.msra.mxu1 %v11532_v33  ;;  %v13102_v19 = vand.u32 4294901760, %v11582_v42  ;;  %13313 = vst [vmem:[#allocation87_spill] sm:$0xff] %v11623_v63  ;;  %13316 = vst [vmem:[#allocation90_spill] sm:$0xff] %v11648_v29 }
 0x39f   : >> { %v11472_v14 = vadd.f32 %v3185_v39, %v2120_v38  ;;  %v3474_v38 = vand.u32 4294901760, %v11535_v37  ;;  %v13087_v39 = vand.u32 4294901760, %v11587_v51 }
 0x3a1   : >> { %v7607_v41 = vpop.f32.mrb[12].mxu0  ;;  %3237 = vmax.xlane.f32.xlu1 %v11450_v62  ;;  %3239 = vmax.xlane.f32.xlu0 %v11472_v14  ;;  %v3695_v5 = vsub.f32 %v11587_v51, %v13087_v39 }
 0x3a2   : >> { %v11486_v56 = vadd.f32 %v7607_v41, %v7327_v27  ;;  %v3197_v44 = vpop.f32.mrb[13].mxu0  ;;  %v3477_v27 = vand.u32 4294901760, %v11538_v7  ;;  %v3688_v41 = vsub.f32 %v11582_v42, %v13102_v19 }
 0x3a3   : >> { %v11488_v49 = vadd.f32 %v3197_v44, %v2140_v16  ;;  %v3696_v44 = vand.u32 4294901760, %v3695_v5 }
 0x3a4   : >> { %v11545_v16 = vpack.c.bf16 %v3477_v27, %v3474_v38  ;;  %v3689_v11 = vand.u32 4294901760, %v3688_v41 }
 0x3a5   : >> { %v7610_v28 = vpop.f32.mrb[14].mxu0  ;;  %3241 = vmax.xlane.f32.xlu1 %v11470_v20  ;;  %3243 = vmax.xlane.f32.xlu0 %v11488_v49 }
 0x3a6   : >> { %v11507_v24 = vadd.f32 %v7610_v28, %v11402_v32  ;;  %v3209_v50 = vpop.f32.mrb[15].mxu0  ;;  %v11548_v32 = vld [vmem:[%s11409_s19 + $0x60] sm:$0xff]  ;;  %8496 = vmatprep.subr.bf16.mxu1 %v11545_v16  ;;  %v11599_v36 = vpack.c.bf16 %v3696_v44, %v3689_v11  ;;  %v11610_v28 = vsub.f32 %v11456_v35, %v3453_v59  ;;  %v11628_v35 = vsub.f32 %v11480_v43, %v3459_v3 }
 0x3a7   : >> { %v11511_v22 = vadd.f32 %v3209_v50, %v11404_v54  ;;  %v11551_v54 = vld [vmem:[%s11409_s19 + $0x68] sm:$0xff]  ;;  %v3480_v9 = vand.u32 4294901760, %v11548_v32  ;;  %8498 = vmatpush3.bf16.msra.mxu1 %v11545_v16  ;;  %v13088_v50 = vand.u32 4294901760, %v11605_v2  ;;  %v13093_v11 = vand.u32 4294901760, %v11623_v63 }
 0x3a8   : >> { %v3483_v46 = vand.u32 4294901760, %v11551_v54  ;;  %13312 = vst [vmem:[#allocation86_spill] sm:$0xff] %v11610_v28  ;;  %v13089_v39 = vand.u32 4294901760, %v11610_v28  ;;  %13314 = vst [vmem:[#allocation88_spill] sm:$0xff] %v11628_v35  ;;  %v13090_v44 = vand.u32 4294901760, %v11628_v35  ;;  %v11643_v43 = vsub.f32 %v11497_v45, %v3462_v13 }
 0x3a9   : >> { %3245 = vmax.xlane.f32.xlu1 %v11486_v56  ;;  %3247 = vmax.xlane.f32.xlu0 %v11511_v22  ;;  %v3702_v41 = vsub.f32 %v11605_v2, %v13088_v50  ;;  %v11658_v45 = vsub.f32 %v11521_v58, %v3468_v23  ;;  %v11661_v13 = vsub.f32 %v11524_v4, %v3471_v6 }
 0x3aa   : >> { %v11561_v1 = vpack.c.bf16 %v3483_v46, %v3480_v9  ;;  %v3709_v5 = vsub.f32 %v11610_v28, %v13089_v39  ;;  %v3716_v39 = vsub.f32 %v11623_v63, %v13093_v11  ;;  %v3723_v34 = vsub.f32 %v11628_v35, %v13090_v44  ;;  %13315 = vst [vmem:[#allocation89_spill] sm:$0xff] %v11643_v43 }
 0x3ab   : >> { %v3703_v61 = vand.u32 4294901760, %v3702_v41  ;;  %13317 = vst [vmem:[#allocation91_spill] sm:$0xff] %v11658_v45  ;;  %13318 = vst [vmem:[#allocation92_spill] sm:$0xff] %v11661_v13  ;;  %v11675_v4 = vsub.f32 %v11535_v37, %v3474_v38  ;;  %v11678_v23 = vsub.f32 %v11538_v7, %v3477_v27  ;;  %v11695_v7 = vsub.f32 %v11548_v32, %v3480_v9 }
 0x3ac   : >> { %8500 = vmatprep.subr.bf16.mxu1 %v11561_v1  ;;  %v3710_v59 = vand.u32 4294901760, %v3709_v5  ;;  %v3717_v3 = vand.u32 4294901760, %v3716_v39  ;;  %v3724_v41 = vand.u32 4294901760, %v3723_v34  ;;  %v13092_v5 = vand.u32 4294901760, %v11643_v43 }
 0x3ad   : >> { %3249 = vmax.xlane.f32.xlu1 %v11507_v24  ;;  %8502 = vmatpush3.bf16.msra.mxu1 %v11561_v1  ;;  %v13101_v39 = vand.u32 4294901760, %v11658_v45  ;;  %v13094_v34 = vand.u32 4294901760, %v11661_v13  ;;  %13319 = vst [vmem:[#allocation93_spill] sm:$0xff] %v11675_v4  ;;  %13320 = vst [vmem:[#allocation94_spill] sm:$0xff] %v11678_v23  ;;  %v11700_v38 = vsub.f32 %v11551_v54, %v3483_v46 }
 0x3ae   : >> { %8504 = vmatprep.subr.bf16.mxu1 %v11577_v47  ;;  %v11632_v50 = vpack.c.bf16 %v3710_v59, %v3703_v61  ;;  %v13091_v61 = vand.u32 4294901760, %v11648_v29  ;;  %v11652_v59 = vpack.c.bf16 %v3724_v41, %v3717_v3  ;;  %v3730_v44 = vsub.f32 %v11643_v43, %v13092_v5  ;;  %13321 = vst [vmem:[#allocation95_spill] sm:$0xff] %v11695_v7 }
 0x3af   : >> { %v3744_v41 = vsub.f32 %v11658_v45, %v13101_v39  ;;  %v3751_v58 = vsub.f32 %v11661_v13, %v13094_v34  ;;  %v13099_v5 = vand.u32 4294901760, %v11678_v23  ;;  %13322 = vst [vmem:[#allocation96_spill] sm:$0xff] %v11700_v38  ;;  %v11712_v32 = vsub.f32 %v11564_v57, %v3486_v25 }
 0x3b0   : >> { %v3737_v17 = vsub.f32 %v11648_v29, %v13091_v61  ;;  %v3731_v53 = vand.u32 4294901760, %v3730_v44  ;;  %v11717_v54 = vsub.f32 %v11567_v40, %v3489_v55 }
 0x3b1   : >> { %8506 = vmatpush3.bf16.msra.mxu1 %v11577_v47  ;;  %v3745_v44 = vand.u32 4294901760, %v3744_v41  ;;  %v3752_v61 = vand.u32 4294901760, %v3751_v58  ;;  %v3765_v37 = vsub.f32 %v11678_v23, %v13099_v5  ;;  %13323 = vst [vmem:[#allocation97_spill] sm:$0xff] %v11712_v32 }
 0x3b2   : >> { %8508 = vmatprep.subr.bf16.mxu1 %v11599_v36  ;;  %v3738_v3 = vand.u32 4294901760, %v3737_v17  ;;  %v13100_v17 = vand.u32 4294901760, %v11675_v4  ;;  %13324 = vst [vmem:[#allocation98_spill] sm:$0xff] %v11717_v54 }
 0x3b3   : >> { %v11684_v11 = vpack.c.bf16 %v3752_v61, %v3745_v44  ;;  %v3766_v61 = vand.u32 4294901760, %v3765_v37  ;;  %v13096_v44 = vand.u32 4294901760, %v11717_v54 }
 0x3b4   : >> { %v11680_v6 = vpack.c.bf16 %v3738_v3, %v3731_v53  ;;  %v3758_v34 = vsub.f32 %v11675_v4, %v13100_v17  ;;  %v13098_v53 = vand.u32 4294901760, %v11695_v7  ;;  %v13097_v3 = vand.u32 4294901760, %v11700_v38 }
 0x3b5   : >> { %v3793_v25 = vsub.f32 %v11717_v54, %v13096_v44  ;;  %v13325_v44 = vld [vmem:[#allocation81_spill] sm:$0xff] }
 0x3b6   : >> { %v3759_v27 = vand.u32 4294901760, %v3758_v34  ;;  %v3772_v58 = vsub.f32 %v11695_v7, %v13098_v53  ;;  %v3779_v9 = vsub.f32 %v11700_v38, %v13097_v3  ;;  %v13095_v34 = vand.u32 4294901760, %v11712_v32 }
 0x3b8   : >> { %v11704_v41 = vpack.c.bf16 %v3766_v61, %v3759_v27  ;;  %v3773_v46 = vand.u32 4294901760, %v3772_v58  ;;  %v3780_v37 = vand.u32 4294901760, %v3779_v9  ;;  %v3786_v57 = vsub.f32 %v11712_v32, %v13095_v34 }
 0x3b9   : >> { %v3794_v27 = vand.u32 4294901760, %v3793_v25  ;;  %v11736_v58 = vpack.c.bf16 %v11587_v51, %v11582_v42  ;;  %v11740_v9 = vpack.c.bf16 %v11610_v28, %v11605_v2  ;;  %v11744_v34 = vpack.c.bf16 %v11628_v35, %v11623_v63 }
 0x3ba   : >> { %v11730_v40 = vpack.c.bf16 %v3780_v37, %v3773_v46  ;;  %v3787_v55 = vand.u32 4294901760, %v3786_v57  ;;  %v11748_v46 = vpack.c.bf16 %v11648_v29, %v11643_v43  ;;  %v11752_v37 = vpack.c.bf16 %v11661_v13, %v11658_v45  ;;  %v13331_v13 = vld [vmem:[#allocation78_spill] sm:$0xff]  ;;  %v13334_v29 = vld [vmem:[#allocation77_spill] sm:$0xff] }
 0x3bb   : >> { %v11756_v57 = vpack.c.bf16 %v11678_v23, %v11675_v4  ;;  %v11760_v25 = vpack.c.bf16 %v11700_v38, %v11695_v7  ;;  %v13327_v23 = vld [vmem:[#allocation80_spill] sm:$0xff]  ;;  %v13329_v7 = vld [vmem:[#allocation79_spill] sm:$0xff] }
 0x3bc   : >> { %v11732_v61 = vpack.c.bf16 %v3794_v27, %v3787_v55  ;;  %v11764_v55 = vpack.c.bf16 %v11717_v54, %v11712_v32 }
 0x41a   : >> { %v3220_v27 = vpop.xlane.xlu0 %3219 }
 0x41b   : >> { %v11767_v3 = vmax.f32 %v13325_v44, %v3220_v27  }
 0x41d   : >> { %13326 = vst [vmem:[#allocation99_spill] sm:$0xff] %v11767_v3  ;;  %v3315_v5 = vsub.f32 %v11429_v60, %v11767_v3 }
 0x41e   : >> { %v3222_v17 = vpop.xlane.xlu0 %3221  ;;  %v3224_v39 = vpop.xlane.xlu1 %3223 }
 0x41f   : >> { %v3331_v19 = vmul.f32 1.442695, %v3315_v5  ;;  %v11774_v38 = vmax.f32 %v13327_v23, %v3222_v17   ;;  %v11777_v4 = vmax.f32 %v13329_v7, %v3224_v39  }
 0x421   : >> { %13328 = vst [vmem:[#allocation100_spill] sm:$0xff] %v11774_v38  ;;  %13330 = vst [vmem:[#allocation101_spill] sm:$0xff] %v11777_v4  ;;  %v3316_v27 = vsub.f32 %v11427_v12, %v11774_v38  ;;  %9547 = vpow2.f32 %v3331_v19  ;;  %v3317_v60 = vsub.f32 %v11434_v48, %v11777_v4 }
 0x422   : >> { %v3226_v5 = vpop.xlane.xlu1 %3225  ;;  %v3228_v32 = vpop.xlane.xlu0 %3227 }
 0x423   : >> { %v3333_v17 = vmul.f32 1.442695, %v3316_v27  ;;  %v11788_v45 = vmax.f32 %v13331_v13, %v3226_v5   ;;  %v3335_v39 = vmul.f32 1.442695, %v3317_v60  ;;  %v11791_v43 = vmax.f32 %v13334_v29, %v3228_v32   ;;  %v13337_v60 = vld [vmem:[#allocation76_spill] sm:$0xff]  ;;  %v13339_v32 = vld [vmem:[#allocation75_spill] sm:$0xff] }
 0x425   : >> { %13332 = vst [vmem:[#allocation102_spill] sm:$0xff] %v11788_v45  ;;  %v13333_v3 = vmov %v11788_v45  ;;  %13335 = vst [vmem:[#allocation103_spill] sm:$0xff] %v11791_v43  ;;  %v13336_v54 = vmov %v11791_v43  ;;  %9549 = vpow2.f32 %v3333_v17 }
 0x426   : >> { %v3318_v53 = vsub.f32 %v11432_v31, %v13333_v3  ;;  %v3319_v19 = vsub.f32 %v11440_v30, %v13336_v54  ;;  %v3230_v27 = vpop.xlane.xlu1 %3229  ;;  %v3232_v5 = vpop.xlane.xlu0 %3231  ;;  %9551 = vpow2.f32 %v3335_v39  ;;  %v13343_v31 = vld [vmem:[#allocation73_spill] sm:$0xff] }
 0x427   : >> { %v11802_v4 = vmax.f32 %v13337_v60, %v3230_v27   ;;  %v11805_v17 = vmax.f32 %v13339_v32, %v3232_v5  }
 0x428   : >> { %v3337_v45 = vmul.f32 1.442695, %v3318_v53  ;;  %v3339_v43 = vmul.f32 1.442695, %v3319_v19  ;;  %v13341_v19 = vld [vmem:[#allocation74_spill] sm:$0xff] }
 0x429   : >> { %13338 = vst [vmem:[#allocation104_spill] sm:$0xff] %v11802_v4  ;;  %13340 = vst [vmem:[#allocation105_spill] sm:$0xff] %v11805_v17  ;;  %v3320_v48 = vsub.f32 %v11438_v21, %v11802_v4  ;;  %v3321_v53 = vsub.f32 %v11446_v26, %v11805_v17  ;;  %v13353_v17 = vld [vmem:[#allocation69_spill] sm:$0xff] }
 0x42a   : >> { %9553 = vpow2.f32 %v3337_v45  ;;  %v3234_v27 = vpop.xlane.xlu1 %3233  ;;  %v3236_v12 = vpop.xlane.xlu0 %3235 }
 0x42b   : >> { %v3341_v39 = vmul.f32 1.442695, %v3320_v48  ;;  %v11816_v54 = vmax.f32 %v13341_v19, %v3234_v27   ;;  %v9548_v5 = vpop.eup %9547  ;;  %9555 = vpow2.f32 %v3339_v43  ;;  %v3343_v29 = vmul.f32 1.442695, %v3321_v53 }
 0x42c   : >> { %v11819_v60 = vmax.f32 %v13343_v31, %v3236_v12   ;;  %3379 = vadd.xlane.f32.xlu0 %v9548_v5  ;;  %v11825_v26 = vand.u32 4294901760, %v9548_v5 }
 0x42d   : >> { %13342 = vst [vmem:[#allocation106_spill] sm:$0xff] %v11816_v54  ;;  %v3322_v45 = vsub.f32 %v11444_v18, %v11816_v54  ;;  %9557 = vpow2.f32 %v3341_v39  ;;  %v13348_v18 = vld [vmem:[#allocation71_spill] sm:$0xff] }
 0x42e   : >> { %13344 = vst [vmem:[#allocation107_spill] sm:$0xff] %v11819_v60  ;;  %v13345_v3 = vmov %v11819_v60  ;;  %v3238_v53 = vpop.xlane.xlu1 %3237  ;;  %v3240_v27 = vpop.xlane.xlu0 %3239  ;;  %v13346_v60 = vld [vmem:[#allocation72_spill] sm:$0xff]  ;;  %9559 = vpow2.f32 %v3343_v29 }
 0x42f   : >> { %v3323_v43 = vsub.f32 %v11458_v0, %v13345_v3  ;;  %v3345_v12 = vmul.f32 1.442695, %v3322_v45  ;;  %v11832_v39 = vmax.f32 %v13346_v60, %v3238_v53   ;;  %v9550_v21 = vpop.eup %9549  ;;  %v11835_v54 = vmax.f32 %v13348_v18, %v3240_v27   ;;  %v13350_v60 = vld [vmem:[#allocation70_spill] sm:$0xff]  ;;  %v13356_v53 = vld [vmem:[#allocation68_spill] sm:$0xff] }
 0x430   : >> { %3381 = vadd.xlane.f32.xlu1 %v9550_v21  ;;  %v11842_v0 = vsub.f32 %v9548_v5, %v11825_v26  ;;  %v9552_v45 = vpop.eup %9551  ;;  %v11848_v3 = vand.u32 4294901760, %v9550_v21 }
 0x431   : >> { %13347 = vst [vmem:[#allocation108_spill] sm:$0xff] %v11832_v39  ;;  %v3347_v30 = vmul.f32 1.442695, %v3323_v43  ;;  %13349 = vst [vmem:[#allocation109_spill] sm:$0xff] %v11835_v54  ;;  %v3324_v48 = vsub.f32 %v11450_v62, %v11832_v39  ;;  %9561 = vpow2.f32 %v3345_v12  ;;  %v3325_v29 = vsub.f32 %v11472_v14, %v11835_v54  ;;  %3383 = vadd.xlane.f32.xlu0 %v9552_v45 }
 0x432   : >> { %v3242_v43 = vpop.xlane.xlu1 %3241  ;;  %v3244_v27 = vpop.xlane.xlu0 %3243 }
 0x433   : >> { %v3349_v19 = vmul.f32 1.442695, %v3324_v48  ;;  %v11851_v62 = vmax.f32 %v13350_v60, %v3242_v43   ;;  %9563 = vpow2.f32 %v3347_v30  ;;  %v3351_v5 = vmul.f32 1.442695, %v3325_v29 }
 0x434   : >> { %v9554_v31 = vpop.eup %9553  ;;  %v11854_v12 = vmax.f32 %v13353_v17, %v3244_v27  }
 0x435   : >> { %13351 = vst [vmem:[#allocation110_spill] sm:$0xff] %v11851_v62  ;;  %v13352_v39 = vmov %v11851_v62  ;;  %3385 = vadd.xlane.f32.xlu1 %v9554_v31  ;;  %v9556_v48 = vpop.eup %9555  ;;  %9565 = vpow2.f32 %v3349_v19  ;;  %v11866_v62 = vsub.f32 %v9550_v21, %v11848_v3  ;;  %v13358_v19 = vld [vmem:[#allocation67_spill] sm:$0xff]  ;;  %v13361_v21 = vand.u32 4294901760, %v11842_v0 }
 0x436   : >> { %13354 = vst [vmem:[#allocation111_spill] sm:$0xff] %v11854_v12  ;;  %v13355_v4 = vmov %v11854_v12  ;;  %v3326_v14 = vsub.f32 %v11470_v20, %v13352_v39  ;;  %v3246_v29 = vpop.xlane.xlu1 %3245  ;;  %v3248_v27 = vpop.xlane.xlu0 %3247  ;;  %3387 = vadd.xlane.f32.xlu0 %v9556_v48  ;;  %9567 = vpow2.f32 %v3351_v5  ;;  %v11892_v5 = vand.u32 4294901760, %v9552_v45 }
 0x437   : >> { %v3327_v30 = vsub.f32 %v11488_v49, %v13355_v4  ;;  %v11869_v20 = vmax.f32 %v13356_v53, %v3246_v29   ;;  %v9558_v39 = vpop.eup %9557  ;;  %v11872_v60 = vmax.f32 %v13358_v19, %v3248_v27   ;;  %v13149_v29 = vand.u32 4294901760, %v11866_v62  ;;  %v13362_v53 = vld [vmem:[#allocation66_spill] sm:$0xff] }
 0x438   : >> { %v3353_v12 = vmul.f32 1.442695, %v3326_v14  ;;  %v3527_v14 = vsub.f32 %v11842_v0, %v13361_v21  ;;  %v9560_v4 = vpop.eup %9559 }
 0x439   : >> { %13357 = vst [vmem:[#allocation112_spill] sm:$0xff] %v11869_v20  ;;  %v3355_v54 = vmul.f32 1.442695, %v3327_v30  ;;  %13359 = vst [vmem:[#allocation113_spill] sm:$0xff] %v11872_v60  ;;  %v13360_v18 = vmov %v11872_v60  ;;  %v3328_v49 = vsub.f32 %v11486_v56, %v11869_v20  ;;  %3389 = vadd.xlane.f32.xlu1 %v9558_v39 }
 0x43a   : >> { %9569 = vpow2.f32 %v3353_v12  ;;  %v3329_v30 = vsub.f32 %v11511_v22, %v13360_v18  ;;  %v3250_v60 = vpop.xlane.xlu1 %3249  ;;  %v3528_v43 = vand.u32 4294901760, %v3527_v14  ;;  %3391 = vadd.xlane.f32.xlu0 %v9560_v4  ;;  %v3537_v12 = vsub.f32 %v11866_v62, %v13149_v29 }
 0x43b   : >> { %v3357_v27 = vmul.f32 1.442695, %v3328_v49  ;;  %v9562_v56 = vpop.eup %9561  ;;  %9571 = vpow2.f32 %v3355_v54  ;;  %v11887_v21 = vmax.f32 %v13362_v53, %v3250_v60   ;;  %v11894_v22 = vand.u32 4294901760, %v9554_v31 }
 0x43c   : >> { %v3359_v20 = vmul.f32 1.442695, %v3329_v30  ;;  %7643 = vmatprep.mubr.f32.mxu1 %v3528_v43  ;;  %v11900_v14 = vand.u32 4294901760, %v9556_v48  ;;  %v3538_v43 = vand.u32 4294901760, %v3537_v12  ;;  %v11903_v30 = vsub.f32 %v9552_v45, %v11892_v5 }
 0x43d   : >> { %13363 = vst [vmem:[#allocation114_spill] sm:$0xff] %v11887_v21  ;;  %3393 = vadd.xlane.f32.xlu1 %v9562_v56  ;;  %v9564_v18 = vpop.eup %9563  ;;  %9573 = vpow2.f32 %v3357_v27  ;;  %v3330_v54 = vsub.f32 %v11507_v24, %v11887_v21  ;;  %v11906_v60 = vsub.f32 %v9554_v31, %v11894_v22  ;;  %v11913_v12 = vand.u32 4294901760, %v9558_v39 }
 0x43e   : >> { %3395 = vadd.xlane.f32.xlu0 %v9564_v18  ;;  %9575 = vpow2.f32 %v3359_v20  ;;  %v11909_v27 = vsub.f32 %v9556_v48, %v11900_v14  ;;  %7644 = vmatmul.mubr.f32.vlgmr.msra.gmra.mrb[16].mxu1 %v3538_v43  ;;  %v13155_v49 = vand.u32 4294901760, %v11903_v30  ;;  %v11915_v45 = vand.u32 4294901760, %v9560_v4 }
 0x43f   : >> { %v9566_v29 = vpop.eup %9565  ;;  %v3361_v19 = vmul.f32 1.442695, %v3330_v54  ;;  %v13158_v24 = vand.u32 4294901760, %v11906_v60  ;;  %8510 = vmatpush3.bf16.msra.mxu1 %v11599_v36  ;;  %v11919_v20 = vand.u32 4294901760, %v9562_v56  ;;  %v11921_v54 = vand.u32 4294901760, %v9564_v18 }
 0x440   : >> { %v9568_v21 = vpop.eup %9567  ;;  %v3547_v48 = vsub.f32 %v11903_v30, %v13155_v49  ;;  %8512 = vmatprep.subr.bf16.mxu1 %v11632_v50  ;;  %v11931_v36 = vsub.f32 %v9558_v39, %v11913_v12  ;;  %v13364_v53 = vand.u32 4294901760, %v11909_v27  ;;  %v11946_v39 = vand.u32 4294901760, %v9566_v29 }
 0x441   : >> { %3397 = vadd.xlane.f32.xlu1 %v9566_v29  ;;  %9577 = vpow2.f32 %v3361_v19  ;;  %v3557_v43 = vsub.f32 %v11906_v60, %v13158_v24  ;;  %v11937_v19 = vsub.f32 %v9560_v4, %v11915_v45  ;;  %v11940_v49 = vsub.f32 %v9562_v56, %v11919_v20 }
 0x442   : >> { %3399 = vadd.xlane.f32.xlu0 %v9568_v21  ;;  %v3567_v17 = vsub.f32 %v11909_v27, %v13364_v53  ;;  %v11943_v32 = vsub.f32 %v9564_v18, %v11921_v54  ;;  %v3548_v13 = vand.u32 4294901760, %v3547_v48  ;;  %v13163_v7 = vand.u32 4294901760, %v11931_v36 }
 0x443   : >> { %v3558_v24 = vand.u32 4294901760, %v3557_v43  ;;  %8514 = vmatpush3.bf16.msra.mxu1 %v11632_v50  ;;  %v13167_v4 = vand.u32 4294901760, %v11937_v19  ;;  %v13169_v23 = vand.u32 4294901760, %v11940_v49  ;;  %v11957_v48 = vsub.f32 %v9566_v29, %v11946_v39 }
 0x444   : >> { %v9570_v31 = vpop.eup %9569  ;;  %v3568_v53 = vand.u32 4294901760, %v3567_v17  ;;  %7646 = vmatprep.mubr.f32.mxu1 %v3548_v13  ;;  %8516 = vmatprep.subr.bf16.mxu1 %v11652_v59  ;;  %v3577_v18 = vsub.f32 %v11931_v36, %v13163_v7  ;;  %v11959_v43 = vand.u32 4294901760, %v9568_v21  ;;  %v13365_v7 = vand.u32 4294901760, %v11943_v32 }
 0x445   : >> { %3401 = vadd.xlane.f32.xlu1 %v9570_v31  ;;  %v9572_v38 = vpop.eup %9571  ;;  %v11961_v50 = vand.u32 4294901760, %v9570_v31  ;;  %7647 = vmatmul.mubr.f32.gmra.mrb[18].mxu1 %v3558_v24  ;;  %v3587_v56 = vsub.f32 %v11937_v19, %v13167_v4  ;;  %v3597_v13 = vsub.f32 %v11940_v49, %v13169_v23  ;;  %v13173_v24 = vand.u32 4294901760, %v11957_v48 }
 0x446   : >> { %3403 = vadd.xlane.f32.xlu0 %v9572_v38  ;;  %v3607_v29 = vsub.f32 %v11943_v32, %v13365_v7  ;;  %v11972_v44 = vand.u32 4294901760, %v9572_v38  ;;  %7649 = vmatprep.mubr.f32.mxu1 %v3568_v53  ;;  %v3578_v35 = vand.u32 4294901760, %v3577_v18  ;;  %v11976_v63 = vsub.f32 %v9568_v21, %v11959_v43 }
 0x447   : >> { %v9574_v17 = vpop.eup %9573  ;;  %v11979_v4 = vsub.f32 %v9570_v31, %v11961_v50  ;;  %8518 = vmatpush3.bf16.msra.mxu1 %v11652_v59  ;;  %v3588_v23 = vand.u32 4294901760, %v3587_v56  ;;  %v3598_v18 = vand.u32 4294901760, %v3597_v13  ;;  %v3617_v21 = vsub.f32 %v11957_v48, %v13173_v24 }
 0x448   : >> { %v9576_v28 = vpop.eup %9575  ;;  %v11983_v2 = vsub.f32 %v9572_v38, %v11972_v44  ;;  %8520 = vmatprep.subr.bf16.mxu1 %v11680_v6  ;;  %v13174_v7 = vand.u32 4294901760, %v11976_v63  ;;  %v11987_v53 = vand.u32 4294901760, %v9574_v17  ;;  %v3608_v38 = vand.u32 4294901760, %v3607_v29 }
 0x449   : >> { %3405 = vadd.xlane.f32.xlu1 %v9574_v17  ;;  %7650 = vmatmul.mubr.f32.gmra.mrb[20].mxu1 %v3578_v35  ;;  %v3636_v31 = vand.u32 4294901760, %v11979_v4  ;;  %v11993_v59 = vand.u32 4294901760, %v9576_v28 }
 0x44a   : >> { %3407 = vadd.xlane.f32.xlu0 %v9576_v28  ;;  %7652 = vmatprep.mubr.f32.mxu1 %v3588_v23  ;;  %v3627_v51 = vsub.f32 %v11976_v63, %v13174_v7  ;;  %v3646_v42 = vand.u32 4294901760, %v11983_v2  ;;  %v12000_v35 = vsub.f32 %v9574_v17, %v11987_v53  ;;  %v3618_v23 = vand.u32 4294901760, %v3617_v21 }
 0x44b   : >> { %v9578_v56 = vpop.eup %9577  ;;  %8522 = vmatpush3.bf16.msra.mxu1 %v11680_v6  ;;  %v12004_v13 = vsub.f32 %v9576_v28, %v11993_v59  ;;  %v3637_v29 = vsub.f32 %v11979_v4, %v3636_v31 }
 0x44c   : >> { %v12006_v24 = vand.u32 4294901760, %v9578_v56  ;;  %8524 = vmatprep.subr.bf16.mxu1 %v11684_v11  ;;  %v3656_v7 = vand.u32 4294901760, %v12000_v35  ;;  %v3628_v6 = vand.u32 4294901760, %v3627_v51  ;;  %v3647_v28 = vsub.f32 %v11983_v2, %v3646_v42 }
 0x44d   : >> { %3409 = vadd.xlane.f32.xlu1 %v9578_v56  ;;  %7653 = vmatmul.mubr.f32.gmra.mrb[22].mxu1 %v3598_v18  ;;  %v13177_v47 = vand.u32 4294901760, %v12004_v13  ;;  %v3638_v18 = vand.u32 4294901760, %v3637_v29 }
 0x44e   : >> { %v12014_v17 = vsub.f32 %v9578_v56, %v12006_v24  ;;  %7655 = vmatprep.mubr.f32.mxu1 %v3608_v38  ;;  %v3657_v21 = vsub.f32 %v12000_v35, %v3656_v7  ;;  %v3648_v51 = vand.u32 4294901760, %v3647_v28 }
 0x44f   : >> { %8526 = vmatpush3.bf16.msra.mxu1 %v11684_v11  ;;  %v3667_v38 = vsub.f32 %v12004_v13, %v13177_v47 }
 0x450   : >> { %8528 = vmatprep.subr.bf16.mxu1 %v11704_v41  ;;  %v3676_v56 = vand.u32 4294901760, %v12014_v17  ;;  %v3658_v11 = vand.u32 4294901760, %v3657_v21  ;;  %v13377_v21 = vand.u32 4294901760, %v11903_v30 }
 0x451   : >> { %7656 = vmatmul.mubr.f32.gmra.mrb[24].mxu1 %v3618_v23  ;;  %v3668_v29 = vand.u32 4294901760, %v3667_v38 }
 0x452   : >> { %7658 = vmatprep.mubr.f32.mxu1 %v3628_v6  ;;  %v3677_v23 = vsub.f32 %v12014_v17, %v3676_v56 }
 0x453   : >> { %8530 = vmatpush3.bf16.msra.mxu1 %v11704_v41  ;;  %v13366_v41 = vld [vmem:[#allocation82_spill] sm:$0xff] }
 0x454   : >> { %8532 = vmatprep.subr.bf16.mxu1 %v11730_v40  ;;  %v3678_v6 = vand.u32 4294901760, %v3677_v23 }
 0x455   : >> { %7659 = vmatmul.mubr.f32.gmra.mrb[26].mxu1 %v3638_v18  ;;  %v13376_v18 = vand.u32 4294901760, %v11866_v62 }
 0x456   : >> { %7661 = vmatprep.mubr.f32.mxu1 %v3648_v51  ;;  %v13378_v51 = vld [vmem:[#allocation87_spill] sm:$0xff] }
 0x457   : >> { %8534 = vmatpush3.bf16.msra.mxu1 %v11730_v40  ;;  %v13379_v38 = vand.u32 4294901760, %v13378_v51 }
 0x458   : >> { %8536 = vmatprep.subr.bf16.mxu1 %v11732_v61 }
 0x459   : >> { %7662 = vmatmul.mubr.f32.gmra.mrb[28].mxu1 %v3658_v11  ;;  %v13380_v11 = vld [vmem:[#allocation88_spill] sm:$0xff] }
 0x45a   : >> { %7664 = vmatprep.mubr.f32.mxu1 %v3668_v29  ;;  %v13381_v23 = vand.u32 4294901760, %v13380_v11  ;;  %v13382_v29 = vld [vmem:[#allocation81_spill] sm:$0xff] }
 0x45b   : >> { %8538 = vmatpush3.bf16.msra.mxu1 %v11732_v61  ;;  %v13369_v61 = vld [vmem:[#allocation83_spill] sm:$0xff] }
 0x45c   : >> { %8540 = vmatprep.subr.bf16.mxu1 %v11736_v58 }
 0x45d   : >> { %7665 = vmatmul.mubr.f32.gmra.mrb[30].mxu1 %v3678_v6 }
 0x45e   : >> { %7699 = vmatprep.mubr.f32.mxu1 %v11825_v26 }
 0x461   : >> { %7700 = vmatmul.mubr.f32.vlgmr.msra.gmra.mrb[16].mxu1 %v11848_v3 }
 0x462   : >> { %8542 = vmatpush3.bf16.msra.mxu1 %v11736_v58  ;;  %7702 = vmatprep.mubr.f32.mxu1 %v11892_v5  ;;  %v13370_v58 = vand.u32 4294901760, %v13369_v61 }
 0x463   : >> { %8544 = vmatprep.subr.bf16.mxu1 %v11740_v9 }
 0x465   : >> { %7703 = vmatmul.mubr.f32.gmra.mrb[18].mxu1 %v11894_v22 }
 0x466   : >> { %8546 = vmatpush3.bf16.msra.mxu1 %v11740_v9  ;;  %7705 = vmatprep.mubr.f32.mxu1 %v11900_v14 }
 0x467   : >> { %8548 = vmatprep.subr.bf16.mxu1 %v11744_v34 }
 0x469   : >> { %7706 = vmatmul.mubr.f32.gmra.mrb[20].mxu1 %v11913_v12 }
 0x46a   : >> { %8550 = vmatpush3.bf16.msra.mxu1 %v11744_v34  ;;  %7708 = vmatprep.mubr.f32.mxu1 %v11915_v45  ;;  %v13367_v34 = vld [vmem:[#allocation85_spill] sm:$0xff] }
 0x46b   : >> { %8552 = vmatprep.subr.bf16.mxu1 %v11748_v46  ;;  %v13368_v40 = vand.u32 4294901760, %v13367_v34 }
 0x46d   : >> { %7709 = vmatmul.mubr.f32.gmra.mrb[22].mxu1 %v11919_v20  ;;  %v8603_v9 = vpack.c.bf16 %v13370_v58, %v13368_v40  ;;  %v13385_v40 = vand.u32 4294901760, %v11906_v60  ;;  %v13389_v58 = vld [vmem:[#allocation90_spill] sm:$0xff] }
 0x46e   : >> { %8554 = vmatpush3.bf16.msra.mxu1 %v11748_v46  ;;  %7711 = vmatprep.mubr.f32.mxu1 %v11921_v54  ;;  %v13371_v46 = vand.u32 4294901760, %v11842_v0 }
 0x46f   : >> { %8556 = vmatprep.subr.bf16.mxu1 %v11752_v37 }
 0x471   : >> { %7712 = vmatmul.mubr.f32.gmra.mrb[24].mxu1 %v11946_v39 }
 0x472   : >> { %8558 = vmatpush3.bf16.msra.mxu1 %v11752_v37  ;;  %7714 = vmatprep.mubr.f32.mxu1 %v11959_v43  ;;  %v13372_v37 = vld [vmem:[#allocation84_spill] sm:$0xff] }
 0x473   : >> { %8560 = vmatprep.subr.bf16.mxu1 %v11756_v57 }
 0x475   : >> { %7715 = vmatmul.mubr.f32.gmra.mrb[26].mxu1 %v11961_v50 }
 0x476   : >> { %8562 = vmatpush3.bf16.msra.mxu1 %v11756_v57  ;;  %7717 = vmatprep.mubr.f32.mxu1 %v11972_v44  ;;  %v13373_v57 = vand.u32 4294901760, %v13372_v37  ;;  %v13391_v37 = vld [vmem:[#allocation80_spill] sm:$0xff] }
 0x477   : >> { %8564 = vmatprep.subr.bf16.mxu1 %v11760_v25 }
 0x479   : >> { %7718 = vmatmul.mubr.f32.gmra.mrb[28].mxu1 %v11987_v53 }
 0x47a   : >> { %8566 = vmatpush3.bf16.msra.mxu1 %v11760_v25  ;;  %7720 = vmatprep.mubr.f32.mxu1 %v11993_v59  ;;  %v13374_v25 = vld [vmem:[#allocation86_spill] sm:$0xff] }
 0x47b   : >> { %8568 = vmatprep.subr.bf16.mxu1 %v11764_v55 }
 0x47d   : >> { %7721 = vmatmul.mubr.f32.gmra.mrb[30].mxu1 %v12006_v24 }
 0x47e   : >> { %8570 = vmatpush3.bf16.msra.mxu1 %v11764_v55  ;;  %7755 = vmatprep.mubr.f32.mxu1 %v11842_v0  ;;  %v13375_v55 = vand.u32 4294901760, %v13374_v25  ;;  %v8611_v0 = vpack.c.bf16 %v13381_v23, %v13379_v38  ;;  %v13399_v23 = vld [vmem:[#allocation91_spill] sm:$0xff] }
 0x47f   : >> { %8572 = vmatprep.subr.bf16.mxu1 %v11423_v10 }
 0x480   : >> { %v8607_v28 = vpack.c.bf16 %v13375_v55, %v13373_v57  ;;  %v13383_v55 = vld [vmem:[#allocation99_spill] sm:$0xff] }
 0x481   : >> { %7756 = vmatmul.mubr.f32.vlgmr.msra.gmra.mrb[16].mxu1 %v11866_v62  ;;  %v13384_v6 = vsub.f32 %v13382_v29, %v13383_v55  ;;  %v13386_v62 = vand.u32 4294901760, %v11909_v27  ;;  %v13400_v29 = vand.u32 4294901760, %v13399_v23  ;;  %v13415_v23 = vld [vmem:[#allocation76_spill] sm:$0xff] }
 0x482   : >> { %8574 = vmatpush3.bf16.msra.mxu1 %v11423_v10  ;;  %7758 = vmatprep.mubr.f32.mxu1 %v11903_v30  ;;  %v13387_v30 = vld [vmem:[#allocation89_spill] sm:$0xff] }
 0x483   : >> { %8576 = vmatprep.subr.bf16.mxu1 %v11468_v52  ;;  %v3283_v34 = vmul.f32 1.442695, %v13384_v6  ;;  %v13388_v61 = vand.u32 4294901760, %v13387_v30  ;;  %v13401_v6 = vld [vmem:[#allocation92_spill] sm:$0xff]  ;;  %v13404_v30 = vld [vmem:[#allocation102_spill] sm:$0xff] }
 0x485   : >> { %7759 = vmatmul.mubr.f32.gmra.mrb[18].mxu1 %v11906_v60  ;;  %9579 = vpow2.f32 %v3283_v34  ;;  %v13395_v60 = vand.u32 4294901760, %v11937_v19  ;;  %v13402_v34 = vand.u32 4294901760, %v13401_v6 }
 0x486   : >> { %8578 = vmatpush3.bf16.msra.mxu1 %v11468_v52  ;;  %7761 = vmatprep.mubr.f32.mxu1 %v11909_v27  ;;  %v13396_v27 = vld [vmem:[#allocation79_spill] sm:$0xff] }
 0x487   : >> { %8580 = vmatprep.subr.bf16.mxu1 %v11494_v8 }
 0x489   : >> { %7762 = vmatmul.mubr.f32.gmra.mrb[20].mxu1 %v11931_v36 }
 0x48a   : >> { %8582 = vmatpush3.bf16.msra.mxu1 %v11494_v8  ;;  %7764 = vmatprep.mubr.f32.mxu1 %v11937_v19  ;;  %v13407_v19 = vand.u32 4294901760, %v11943_v32 }
 0x48b   : >> { %8584 = vmatprep.subr.bf16.mxu1 %v11518_v15 }
 0x48d   : >> { %7765 = vmatmul.mubr.f32.gmra.mrb[22].mxu1 %v11940_v49 }
 0x48e   : >> { %8586 = vmatpush3.bf16.msra.mxu1 %v11518_v15  ;;  %7767 = vmatprep.mubr.f32.mxu1 %v11943_v32  ;;  %v13419_v32 = vand.u32 4294901760, %v11976_v63 }
 0x48f   : >> { %8588 = vmatprep.subr.bf16.mxu1 %v11532_v33 }
 0x491   : >> { %7768 = vmatmul.mubr.f32.gmra.mrb[24].mxu1 %v11957_v48 }
 0x492   : >> { %8590 = vmatpush3.bf16.msra.mxu1 %v11532_v33  ;;  %7770 = vmatprep.mubr.f32.mxu1 %v11976_v63  ;;  %v13430_v63 = vld [vmem:[#allocation65_spill] sm:$0xff] }
 0x493   : >> { %8592 = vmatprep.subr.bf16.mxu1 %v11545_v16 }
 0x495   : >> { %7771 = vmatmul.mubr.f32.gmra.mrb[26].mxu1 %v11979_v4 }
 0x496   : >> { %8594 = vmatpush3.bf16.msra.mxu1 %v11545_v16  ;;  %7773 = vmatprep.mubr.f32.mxu1 %v11983_v2 }
 0x497   : >> { %8596 = vmatprep.subr.bf16.mxu1 %v11561_v1 }
 0x499   : >> { %7774 = vmatmul.mubr.f32.gmra.mrb[28].mxu1 %v12000_v35 }
 0x49a   : >> { %8598 = vmatpush3.bf16.msra.mxu1 %v11561_v1  ;;  %7776 = vmatprep.mubr.f32.mxu1 %v12004_v13 }
 0x49b   : >> { %8600 = vmatprep.subr.bf16.mxu1 %v13366_v41 }
 0x49d   : >> { %7777 = vmatmul.mubr.f32.gmra.mrb[30].mxu1 %v12014_v17 }
 0x49e   : >> { %8602 = vmatpush3.bf16.msra.mxu1 %v13366_v41  ;;  %7811 = vmatprep.mubr.f32.mxu1 %v13371_v46 }
 0x49f   : >> { %8604 = vmatprep.subr.bf16.mxu1 %v8603_v9 }
 0x4a1   : >> { %7812 = vmatmul.mubr.f32.vlgmr.msra.gmra.mrb[16].mxu1 %v13376_v18  ;;  %v13392_v18 = vld [vmem:[#allocation100_spill] sm:$0xff] }
 0x4a2   : >> { %8606 = vmatpush3.bf16.msra.mxu1 %v8603_v9  ;;  %7814 = vmatprep.mubr.f32.mxu1 %v13377_v21  ;;  %v13390_v9 = vand.u32 4294901760, %v13389_v58  ;;  %v13393_v57 = vsub.f32 %v13391_v37, %v13392_v18  ;;  %v13394_v21 = vand.u32 4294901760, %v11931_v36  ;;  %v13408_v58 = vld [vmem:[#allocation77_spill] sm:$0xff] }
 0x4a3   : >> { %8608 = vmatprep.subr.bf16.mxu1 %v8607_v28 }
 0x4a4   : >> { %v8615_v46 = vpack.c.bf16 %v13390_v9, %v13388_v61  ;;  %v3285_v25 = vmul.f32 1.442695, %v13393_v57  ;;  %v13409_v9 = vld [vmem:[#allocation103_spill] sm:$0xff] }
 0x4a5   : >> { %7815 = vmatmul.mubr.f32.gmra.mrb[18].mxu1 %v13385_v40  ;;  %v8619_v40 = vpack.c.bf16 %v13402_v34, %v13400_v29  ;;  %v13410_v57 = vsub.f32 %v13408_v58, %v13409_v9  ;;  %v13416_v29 = vld [vmem:[#allocation104_spill] sm:$0xff]  ;;  %v13425_v9 = vld [vmem:[#allocation96_spill] sm:$0xff] }
 0x4a6   : >> { %8610 = vmatpush3.bf16.msra.mxu1 %v8607_v28  ;;  %7817 = vmatprep.mubr.f32.mxu1 %v13386_v62  ;;  %v13397_v28 = vld [vmem:[#allocation101_spill] sm:$0xff]  ;;  %9581 = vpow2.f32 %v3285_v25  ;;  %v13403_v62 = vld [vmem:[#allocation78_spill] sm:$0xff] }
 0x4a7   : >> { %8612 = vmatprep.subr.bf16.mxu1 %v8611_v0  ;;  %v13398_v51 = vsub.f32 %v13396_v27, %v13397_v28  ;;  %v13405_v61 = vsub.f32 %v13403_v62, %v13404_v30  ;;  %v13413_v25 = vld [vmem:[#allocation94_spill] sm:$0xff]  ;;  %v13420_v62 = vld [vmem:[#allocation75_spill] sm:$0xff] }
 0x4a8   : >> { %v13414_v28 = vand.u32 4294901760, %v13413_v25 }
 0x4a9   : >> { %7818 = vmatmul.mubr.f32.gmra.mrb[20].mxu1 %v13394_v21  ;;  %v3287_v11 = vmul.f32 1.442695, %v13398_v51  ;;  %v3289_v36 = vmul.f32 1.442695, %v13405_v61  ;;  %v3291_v21 = vmul.f32 1.442695, %v13410_v57 }
 0x4aa   : >> { %8614 = vmatpush3.bf16.msra.mxu1 %v8611_v0  ;;  %7820 = vmatprep.mubr.f32.mxu1 %v13395_v60  ;;  %v13406_v0 = vand.u32 4294901760, %v11940_v49  ;;  %v13411_v60 = vld [vmem:[#allocation93_spill] sm:$0xff]  ;;  %v13417_v49 = vsub.f32 %v13415_v23, %v13416_v29  ;;  %v13421_v61 = vld [vmem:[#allocation105_spill] sm:$0xff]  ;;  %v13426_v57 = vand.u32 4294901760, %v13425_v9  ;;  %v13442_v9 = vand.u32 4294901760, %v12004_v13  ;;  %v13449_v13 = vld [vmem:[#allocation70_spill] sm:$0xff] }
 0x4ab   : >> { %8616 = vmatprep.subr.bf16.mxu1 %v8615_v46  ;;  %9583 = vpow2.f32 %v3287_v11  ;;  %v13412_v27 = vand.u32 4294901760, %v13411_v60  ;;  %v12165_v11 = vpop.eup %9579  ;;  %v13432_v23 = vld [vmem:[#allocation107_spill] sm:$0xff] }
 0x4ac   : >> { %9585 = vpow2.f32 %v3289_v36  ;;  %v3293_v34 = vmul.f32 1.442695, %v13417_v49  ;;  %v13423_v36 = vld [vmem:[#allocation95_spill] sm:$0xff] }
 0x4ad   : >> { %7821 = vmatmul.mubr.f32.gmra.mrb[22].mxu1 %v13406_v0  ;;  %v8623_v51 = vpack.c.bf16 %v13414_v28, %v13412_v27  ;;  %9587 = vpow2.f32 %v3291_v21  ;;  %v13422_v0 = vsub.f32 %v13420_v62, %v13421_v61  ;;  %v13424_v58 = vand.u32 4294901760, %v13423_v36  ;;  %v13431_v28 = vld [vmem:[#allocation73_spill] sm:$0xff]  ;;  %v13436_v62 = vld [vmem:[#allocation98_spill] sm:$0xff] }
 0x4ae   : >> { %8618 = vmatpush3.bf16.msra.mxu1 %v8615_v46  ;;  %7823 = vmatprep.mubr.f32.mxu1 %v13407_v19  ;;  %v13418_v46 = vand.u32 4294901760, %v11957_v48  ;;  %9589 = vpow2.f32 %v3293_v34  ;;  %v13427_v48 = vld [vmem:[#allocation74_spill] sm:$0xff]  ;;  %v3363_v21 = vmul.f32 %v13430_v63, %v12165_v11  ;;  %v13433_v29 = vsub.f32 %v13431_v28, %v13432_v23  ;;  %v13434_v34 = vld [vmem:[#allocation97_spill] sm:$0xff] }
 0x4af   : >> { %8620 = vmatprep.subr.bf16.mxu1 %v8619_v40  ;;  %v3295_v19 = vmul.f32 1.442695, %v13422_v0  ;;  %v8627_v60 = vpack.c.bf16 %v13426_v57, %v13424_v58  ;;  %v13428_v57 = vld [vmem:[#allocation106_spill] sm:$0xff]  ;;  %v13437_v4 = vand.u32 4294901760, %v13436_v62  ;;  %v13439_v0 = vld [vmem:[#allocation72_spill] sm:$0xff]  ;;  %v13440_v36 = vld [vmem:[#allocation108_spill] sm:$0xff] }
 0x4b0   : >> { %v12183_v25 = vpop.eup %9581  ;;  %v3299_v49 = vmul.f32 1.442695, %v13433_v29  ;;  %v13441_v58 = vsub.f32 %v13439_v0, %v13440_v36 }
 0x4b1   : >> { %7824 = vmatmul.mubr.f32.gmra.mrb[24].mxu1 %v13418_v46  ;;  %9591 = vpow2.f32 %v3295_v19 }
 0x4b2   : >> { %8622 = vmatpush3.bf16.msra.mxu1 %v8619_v40  ;;  %7826 = vmatprep.mubr.f32.mxu1 %v13419_v32  ;;  %v13429_v40 = vsub.f32 %v13427_v48, %v13428_v57  ;;  %v13435_v32 = vand.u32 4294901760, %v13434_v34  ;;  %v3301_v19 = vmul.f32 1.442695, %v13441_v58  ;;  %v13443_v48 = vld [vmem:[#allocation64_spill] sm:$0xff]  ;;  %v4781_v57 = vld [vmem:[%s13029_s7 + $0x20] sm:$0xff] (%p12424_p7) }
 0x4b3   : >> { %8624 = vmatprep.subr.bf16.mxu1 %v8623_v51  ;;  %v13450_v34 = vld [vmem:[#allocation110_spill] sm:$0xff] }
 0x4b4   : >> { %v3297_v27 = vmul.f32 1.442695, %v13429_v40  ;;  %v3364_v40 = vmul.f32 %v13443_v48, %v12183_v25 }
 0x4b5   : >> { %7827 = vmatmul.mubr.f32.gmra.mrb[26].mxu1 %v3636_v31  ;;  %v8631_v31 = vpack.c.bf16 %v13437_v4, %v13435_v32  ;;  %v12194_v2 = vpop.eup %9583  ;;  %v13451_v32 = vsub.f32 %v13449_v13, %v13450_v34  ;;  %v4782_v34 = vld [vmem:[%s13029_s7 + $0x28] sm:$0xff] (%p12424_p7) }
 0x4b6   : >> { %8626 = vmatpush3.bf16.msra.mxu1 %v8623_v51  ;;  %7829 = vmatprep.mubr.f32.mxu1 %v3646_v42  ;;  %9593 = vpow2.f32 %v3297_v27  ;;  %v12205_v28 = vpop.eup %9585 }
 0x4b7   : >> { %8628 = vmatprep.subr.bf16.mxu1 %v8627_v60  ;;  %9595 = vpow2.f32 %v3299_v49  ;;  %v3305_v62 = vmul.f32 1.442695, %v13451_v32 }
 0x4b8   : >> { %9597 = vpow2.f32 %v3301_v19  ;;  %v13454_v19 = vld [vmem:[#allocation69_spill] sm:$0xff] }
 0x4b9   : >> { %v3380_v51 = vpop.xlane.xlu0 %3379  ;;  %7830 = vmatmul.mubr.f32.gmra.mrb[28].mxu1 %v3656_v7  ;;  %v13448_v7 = vld [vmem:[#allocation63_spill] sm:$0xff] }
 0x4ba   : >> { %v12192_v42 = vadd.f32 %v3380_v51, %v3363_v21   ;;  %8630 = vmatpush3.bf16.msra.mxu1 %v8627_v60  ;;  %7832 = vmatprep.mubr.f32.mxu1 %v13442_v9  ;;  %v13445_v21 = vld [vmem:[#allocation109_spill] sm:$0xff]  ;;  %v3365_v35 = vmul.f32 %v13448_v7, %v12194_v2  ;;  %v12214_v60 = vpop.eup %9587  ;;  %v13453_v51 = vld [vmem:[#allocation62_spill] sm:$0xff]  ;;  %v13455_v9 = vld [vmem:[#allocation111_spill] sm:$0xff] }
 0x4bb   : >> { %8632 = vmatprep.subr.bf16.mxu1 %v8631_v31  ;;  %v3366_v0 = vmul.f32 %v13453_v51, %v12205_v28  ;;  %v13456_v55 = vmov %v13455_v9  ;;  %v13467_v51 = vld [vmem:[#allocation113_spill] sm:$0xff] }
 0x4bc   : >> { %13438 = vst [vmem:[#allocation115_spill] sm:$0xff] %v12192_v42  ;;  %v13444_v42 = vld [vmem:[#allocation71_spill] sm:$0xff] }
 0x4bd   : >> { %v13446_v27 = vsub.f32 %v13444_v42, %v13445_v21  ;;  %v3382_v29 = vpop.xlane.xlu1 %3381  ;;  %7833 = vmatmul.mubr.f32.gmra.mrb[30].mxu1 %v3676_v56  ;;  %v13459_v56 = vld [vmem:[#allocation61_spill] sm:$0xff] }
 0x4be   : >> { %v12210_v36 = vadd.f32 %v3382_v29, %v3364_v40   ;;  %v3384_v49 = vpop.xlane.xlu0 %3383  ;;  %8634 = vmatpush3.bf16.msra.mxu1 %v8631_v31  ;;  %7867 = vmatprep.mubr.f32.mxu1 %v11825_v26  ;;  %v13457_v40 = vsub.f32 %v13454_v19, %v13455_v9  ;;  %v3367_v31 = vmul.f32 %v13459_v56, %v12214_v60  ;;  %v13461_v29 = vld [vmem:[#allocation112_spill] sm:$0xff] }
 0x4bf   : >> { %v3303_v23 = vmul.f32 1.442695, %v13446_v27  ;;  %v12222_v48 = vadd.f32 %v3384_v49, %v3365_v35   ;;  %8636 = vmatprep.subr.bf16.mxu1 %v11423_v10  ;;  %v13462_v18 = vmov %v13461_v29  ;;  %v13466_v49 = vld [vmem:[#allocation67_spill] sm:$0xff]  ;;  %v13468_v56 = vmov %v13467_v51 }
 0x4c0   : >> { %13447 = vst [vmem:[#allocation116_spill] sm:$0xff] %v12210_v36  ;;  %v12226_v36 = vpop.eup %9589  ;;  %v3307_v17 = vmul.f32 1.442695, %v13457_v40 }
 0x4c1   : >> { %13452 = vst [vmem:[#allocation117_spill] sm:$0xff] %v12222_v48  ;;  %9599 = vpow2.f32 %v3303_v23  ;;  %v12236_v42 = vpop.eup %9591  ;;  %v13460_v48 = vld [vmem:[#allocation68_spill] sm:$0xff]  ;;  %7868 = vmatmul.mubr.f32.vlgmr.msra.gmra.mrb[16].mxu1 %v11848_v3 }
 0x4c2   : >> { %v3386_v58 = vpop.xlane.xlu1 %3385  ;;  %9601 = vpow2.f32 %v3305_v62  ;;  %v13463_v7 = vsub.f32 %v13460_v48, %v13461_v29  ;;  %8638 = vmatpush3.bf16.msra.mxu1 %v11423_v10  ;;  %7870 = vmatprep.mubr.f32.mxu1 %v11892_v5  ;;  %v12248_v32 = vpop.eup %9593  ;;  %v13471_v10 = vld [vmem:[#allocation59_spill] sm:$0xff]  ;;  %v13472_v29 = vld [vmem:[#allocation66_spill] sm:$0xff] }
 0x4c3   : >> { %v12232_v27 = vadd.f32 %v3386_v58, %v3366_v0   ;;  %v3388_v23 = vpop.xlane.xlu0 %3387  ;;  %8640 = vmatprep.subr.bf16.mxu1 %v11468_v52  ;;  %9603 = vpow2.f32 %v3307_v17  ;;  %v13469_v0 = vsub.f32 %v13466_v49, %v13467_v51  ;;  %v3369_v48 = vmul.f32 %v13471_v10, %v12236_v42  ;;  %v13473_v10 = vld [vmem:[#allocation114_spill] sm:$0xff]  ;;  %v13476_v17 = vld [vmem:[#allocation58_spill] sm:$0xff] }
 0x4c4   : >> { %v3309_v35 = vmul.f32 1.442695, %v13463_v7  ;;  %v12244_v58 = vadd.f32 %v3388_v23, %v3367_v31   ;;  %v12258_v31 = vpop.eup %9595  ;;  %v13474_v7 = vsub.f32 %v13472_v29, %v13473_v10 }
 0x4c5   : >> { %13458 = vst [vmem:[#allocation118_spill] sm:$0xff] %v12232_v27  ;;  %v13465_v27 = vld [vmem:[#allocation60_spill] sm:$0xff]  ;;  %v3311_v9 = vmul.f32 1.442695, %v13469_v0  ;;  %7871 = vmatmul.mubr.f32.gmra.mrb[18].mxu1 %v11894_v22 }
 0x4c6   : >> { %13464 = vst [vmem:[#allocation119_spill] sm:$0xff] %v12244_v58  ;;  %v3368_v13 = vmul.f32 %v13465_v27, %v12226_v36  ;;  %v3390_v62 = vpop.xlane.xlu1 %3389  ;;  %9605 = vpow2.f32 %v3309_v35  ;;  %v3313_v23 = vmul.f32 1.442695, %v13474_v7  ;;  %8642 = vmatpush3.bf16.msra.mxu1 %v11468_v52  ;;  %7873 = vmatprep.mubr.f32.mxu1 %v11900_v14  ;;  %v3370_v27 = vmul.f32 %v13476_v17, %v12248_v32  ;;  %v13482_v7 = vld [vmem:[#allocation55_spill] sm:$0xff] }
 0x4c7   : >> { %v3392_v58 = vpop.xlane.xlu0 %3391  ;;  %8644 = vmatprep.subr.bf16.mxu1 %v11494_v8  ;;  %9607 = vpow2.f32 %v3311_v9 }
 0x4c8   : >> { %v12254_v40 = vadd.f32 %v3390_v62, %v3368_v13   ;;  %v12266_v49 = vadd.f32 %v3392_v58, %v3369_v48   ;;  %v12270_v13 = vpop.eup %9597  ;;  %v13478_v62 = vld [vmem:[#allocation57_spill] sm:$0xff]  ;;  %9609 = vpow2.f32 %v3313_v23  ;;  %v13480_v48 = vld [vmem:[#allocation56_spill] sm:$0xff] }
 0x4c9   : >> { %v3371_v51 = vmul.f32 %v13478_v62, %v12258_v31  ;;  %7874 = vmatmul.mubr.f32.gmra.mrb[20].mxu1 %v11913_v12  ;;  %v3372_v9 = vmul.f32 %v13480_v48, %v12270_v13 }
 0x4ca   : >> { %13470 = vst [vmem:[#allocation120_spill] sm:$0xff] %v12254_v40  ;;  %13475 = vst [vmem:[#allocation121_spill] sm:$0xff] %v12266_v49  ;;  %v3394_v35 = vpop.xlane.xlu1 %3393  ;;  %8646 = vmatpush3.bf16.msra.mxu1 %v11494_v8  ;;  %7876 = vmatprep.mubr.f32.mxu1 %v11915_v45 }
 0x4cb   : >> { %v12273_v52 = vadd.f32 %v3394_v35, %v3370_v27   ;;  %v12277_v0 = vpop.eup %9599  ;;  %v3396_v40 = vpop.xlane.xlu0 %3395  ;;  %8648 = vmatprep.subr.bf16.mxu1 %v11518_v15  ;;  %v13484_v35 = vld [vmem:[#allocation54_spill] sm:$0xff] }
 0x4cc   : >> { %v12282_v49 = vadd.f32 %v3396_v40, %v3371_v51   ;;  %v12286_v58 = vpop.eup %9601  ;;  %v3373_v17 = vmul.f32 %v13482_v7, %v12277_v0 }
 0x4cd   : >> { %13477 = vst [vmem:[#allocation122_spill] sm:$0xff] %v12273_v52  ;;  %7877 = vmatmul.mubr.f32.gmra.mrb[22].mxu1 %v11919_v20  ;;  %v12294_v23 = vpop.eup %9603  ;;  %v3374_v62 = vmul.f32 %v13484_v35, %v12286_v58 }
 0x4ce   : >> { %13479 = vst [vmem:[#allocation123_spill] sm:$0xff] %v12282_v49  ;;  %v3398_v52 = vpop.xlane.xlu1 %3397  ;;  %8650 = vmatpush3.bf16.msra.mxu1 %v11518_v15  ;;  %7879 = vmatprep.mubr.f32.mxu1 %v11921_v54  ;;  %v13486_v49 = vld [vmem:[#allocation53_spill] sm:$0xff] }
 0x4cf   : >> { %v12289_v29 = vadd.f32 %v3398_v52, %v3372_v9   ;;  %v3400_v8 = vpop.xlane.xlu0 %3399  ;;  %8652 = vmatprep.subr.bf16.mxu1 %v11532_v33  ;;  %v3375_v48 = vmul.f32 %v13486_v49, %v12294_v23  ;;  %v13487_v52 = vld [vmem:[#allocation52_spill] sm:$0xff] }
 0x4d0   : >> { %v12298_v27 = vadd.f32 %v3400_v8, %v3373_v17   ;;  %v12302_v51 = vpop.eup %9605 }
 0x4d1   : >> { %13481 = vst [vmem:[#allocation124_spill] sm:$0xff] %v12289_v29  ;;  %7880 = vmatmul.mubr.f32.gmra.mrb[24].mxu1 %v11946_v39  ;;  %v12310_v15 = vpop.eup %9607  ;;  %v3376_v29 = vmul.f32 %v13487_v52, %v12302_v51 }
 0x4d2   : >> { %13483 = vst [vmem:[#allocation125_spill] sm:$0xff] %v12298_v27  ;;  %v3402_v40 = vpop.xlane.xlu1 %3401  ;;  %8654 = vmatpush3.bf16.msra.mxu1 %v11532_v33  ;;  %7882 = vmatprep.mubr.f32.mxu1 %v11959_v43  ;;  %v12319_v8 = vpop.eup %9609  ;;  %v13490_v27 = vld [vmem:[#allocation51_spill] sm:$0xff] }
 0x4d3   : >> { %v12305_v62 = vadd.f32 %v3402_v40, %v3374_v62   ;;  %v3404_v9 = vpop.xlane.xlu0 %3403  ;;  %8656 = vmatprep.subr.bf16.mxu1 %v11545_v16  ;;  %v3377_v33 = vmul.f32 %v13490_v27, %v12310_v15  ;;  %v13510_v27 = vld [vmem:[#allocation40_spill] sm:$0xff] }
 0x4d4   : >> { %v12317_v7 = vadd.f32 %v3404_v9, %v3375_v48  }
 0x4d5   : >> { %13485 = vst [vmem:[#allocation126_spill] sm:$0xff] %v12305_v62  ;;  %7883 = vmatmul.mubr.f32.gmra.mrb[26].mxu1 %v11961_v50  ;;  %v13492_v62 = vld [vmem:[#allocation50_spill] sm:$0xff] }
 0x4d6   : >> { %13488 = vst [vmem:[#allocation127_spill] sm:$0xff] %v12317_v7  ;;  %v3406_v17 = vpop.xlane.xlu1 %3405  ;;  %8658 = vmatpush3.bf16.msra.mxu1 %v11545_v16  ;;  %7885 = vmatprep.mubr.f32.mxu1 %v11972_v44  ;;  %v3378_v40 = vmul.f32 %v13492_v62, %v12319_v8  ;;  %v13494_v16 = vld [vmem:[#allocation48_spill] sm:$0xff] }
 0x4d7   : >> { %v12321_v9 = vadd.f32 %v3406_v17, %v3376_v29   ;;  %v3408_v35 = vpop.xlane.xlu0 %3407  ;;  %8660 = vmatprep.subr.bf16.mxu1 %v11561_v1  ;;  %v13507_v29 = vld [vmem:[#allocation43_spill] sm:$0xff] }
 0x4d8   : >> { %v12329_v7 = vadd.f32 %v3408_v35, %v3377_v33  }
 0x4d9   : >> { %13489 = vst [vmem:[#allocation128_spill] sm:$0xff] %v12321_v9  ;;  %7886 = vmatmul.mubr.f32.gmra.mrb[28].mxu1 %v11987_v53  ;;  %v13506_v9 = vld [vmem:[#allocation42_spill] sm:$0xff] }
 0x4da   : >> { %13491 = vst [vmem:[#allocation129_spill] sm:$0xff] %v12329_v7  ;;  %v3410_v49 = vpop.xlane.xlu1 %3409  ;;  %8662 = vmatpush3.bf16.msra.mxu1 %v11561_v1  ;;  %7888 = vmatprep.mubr.f32.mxu1 %v11993_v59  ;;  %v3428_v1 = vmul.f32 %v13494_v16, %v12183_v25  ;;  %v3433_v7 = vmul.f32 %v13507_v29, %v12236_v42 }
 0x4db   : >> { %v12334_v48 = vadd.f32 %v3410_v49, %v3378_v40   ;;  %8664 = vmatprep.subr.bf16.mxu1 %v13366_v41 }
 0x4dd   : >> { %13493 = vst [vmem:[#allocation130_spill] sm:$0xff] %v12334_v48  ;;  %7889 = vmatmul.mubr.f32.gmra.mrb[30].mxu1 %v12006_v24  ;;  %v13515_v48 = vld [vmem:[#allocation39_spill] sm:$0xff] }
 0x4de   : >> { %8666 = vmatpush3.bf16.msra.mxu1 %v13366_v41  ;;  %7923 = vmatprep.mubr.f32.mxu1 %v11825_v26  ;;  %v13495_v26 = vld [vmem:[#allocation49_spill] sm:$0xff] }
 0x4e1   : >> { %7924 = vmatmul.mubr.f32.vlgmr.msra.gmra.mrb[16].mxu1 %v11848_v3 }
 0x4e2   : >> { %7926 = vmatprep.mubr.f32.mxu1 %v11892_v5  ;;  %v3427_v5 = vmul.f32 %v13495_v26, %v12165_v11 }
 0x4e5   : >> { %7927 = vmatmul.mubr.f32.gmra.mrb[18].mxu1 %v11894_v22 }
 0x4e6   : >> { %7929 = vmatprep.mubr.f32.mxu1 %v11900_v14 }
 0x4e9   : >> { %7930 = vmatmul.mubr.f32.gmra.mrb[20].mxu1 %v11913_v12 }
 0x4ea   : >> { %7932 = vmatprep.mubr.f32.mxu1 %v11915_v45  ;;  %v13499_v45 = vld [vmem:[#allocation47_spill] sm:$0xff] }
 0x4ed   : >> { %7933 = vmatmul.mubr.f32.gmra.mrb[22].mxu1 %v11919_v20  ;;  %v3429_v20 = vmul.f32 %v13499_v45, %v12194_v2  ;;  %v3434_v2 = vmul.f32 %v13506_v9, %v12248_v32  ;;  %v13514_v32 = vld [vmem:[#allocation38_spill] sm:$0xff]  ;;  %v13553_v9 = vld [vmem:[#allocation128_spill] sm:$0xff] }
 0x4ee   : >> { %7935 = vmatprep.mubr.f32.mxu1 %v11921_v54  ;;  %v3438_v42 = vmul.f32 %v13514_v32, %v12286_v58  ;;  %v13526_v58 = vld [vmem:[#allocation34_spill] sm:$0xff]  ;;  %v13584_v9 = vld [vmem:[#allocation118_spill] sm:$0xff] (%p12424_p7) }
 0x4f1   : >> { %7936 = vmatmul.mubr.f32.gmra.mrb[24].mxu1 %v11946_v39 }
 0x4f2   : >> { %7938 = vmatprep.mubr.f32.mxu1 %v11959_v43  ;;  %v13502_v43 = vld [vmem:[#allocation44_spill] sm:$0xff] }
 0x4f5   : >> { %7939 = vmatmul.mubr.f32.gmra.mrb[26].mxu1 %v11961_v50  ;;  %v3432_v50 = vmul.f32 %v13502_v43, %v12226_v36 }
 0x4f6   : >> { %7941 = vmatprep.mubr.f32.mxu1 %v11972_v44  ;;  %v13498_v44 = vld [vmem:[#allocation46_spill] sm:$0xff] }
 0x4f7   : >> { %v3430_v14 = vmul.f32 %v13498_v44, %v12205_v28 }
 0x4f9   : >> { %7942 = vmatmul.mubr.f32.gmra.mrb[28].mxu1 %v11987_v53 }
 0x4fa   : >> { %7944 = vmatprep.mubr.f32.mxu1 %v11993_v59 }
 0x4fd   : >> { %7945 = vmatmul.mubr.f32.gmra.mrb[30].mxu1 %v12006_v24 }
 0x5b4   : >> { %v7925_v3 = vpop.f32.mrb[16].mxu1 }
 0x5b5   : >> { %v12361_v53 = vadd.f32 %v7925_v3, %v3428_v1   ;;  %v4635_v22 = vpop.f32.mrb[17].mxu1  ;;  %v3437_v1 = vmul.f32 %v13515_v48, %v12277_v0  ;;  %v3442_v0 = vmul.f32 %v13526_v58, %v12319_v8  ;;  %v13562_v58 = vld [vmem:[#allocation119_spill] sm:$0xff]  ;;  %v13564_v48 = vld [vmem:[#allocation117_spill] sm:$0xff] }
 0x5b6   : >> { %v12363_v59 = vadd.f32 %v4635_v22, %v3427_v5   ;;  %v13520_v5 = vld [vmem:[#allocation36_spill] sm:$0xff]  ;;  %v13575_v8 = vld [vmem:[#allocation103_spill] sm:$0xff] }
 0x5b7   : >> { %v13496_v54 = vmov %v12361_v53  ;;  %v13503_v53 = vld [vmem:[#allocation45_spill] sm:$0xff]  ;;  %v13583_v8 = vld [vmem:[#allocation117_spill] sm:$0xff] (%p12424_p7) }
 0x5b8   : >> { %v13497_v37 = vmov %v12363_v59  ;;  %v7928_v12 = vpop.f32.mrb[18].mxu1  ;;  %v3431_v41 = vmul.f32 %v13503_v53, %v12214_v60  ;;  %v3436_v60 = vmul.f32 %v13510_v27, %v12270_v13  ;;  %v13549_v53 = vmov %v13496_v54  ;;  %v13563_v27 = vld [vmem:[#allocation118_spill] sm:$0xff] }
 0x5b9   : >> { %v12369_v35 = vadd.f32 %v7928_v12, %v3430_v14   ;;  %v4647_v39 = vpop.f32.mrb[19].mxu1  ;;  %v13521_v14 = vld [vmem:[#allocation37_spill] sm:$0xff]  ;;  %v13587_v27 = vld [vmem:[#allocation121_spill] sm:$0xff] (%p12424_p7) }
 0x5ba   : >> { %v12371_v40 = vadd.f32 %v4647_v39, %v3429_v20   ;;  %v13527_v39 = vld [vmem:[#allocation35_spill] sm:$0xff] }
 0x5bb   : >> { %v13500_v6 = vmov %v12369_v35  ;;  %v13511_v35 = vld [vmem:[#allocation41_spill] sm:$0xff]  ;;  %v3441_v43 = vmul.f32 %v13527_v39, %v12310_v15  ;;  %v13571_v39 = vld [vmem:[#allocation108_spill] sm:$0xff] }
 0x5bc   : >> { %v13501_v16 = vmov %v12371_v40  ;;  %v7931_v24 = vpop.f32.mrb[20].mxu1  ;;  %v3435_v62 = vmul.f32 %v13511_v35, %v12258_v31  ;;  %v3440_v31 = vmul.f32 %v13520_v5, %v12302_v51  ;;  %v13547_v35 = vmov %v13500_v6  ;;  %v13554_v51 = vld [vmem:[#allocation127_spill] sm:$0xff]  ;;  %v13557_v15 = vld [vmem:[#allocation124_spill] sm:$0xff] }
 0x5bd   : >> { %v12377_v59 = vadd.f32 %v7931_v24, %v3432_v50   ;;  %v4659_v25 = vpop.f32.mrb[21].mxu1  ;;  %v13558_v5 = vld [vmem:[#allocation123_spill] sm:$0xff]  ;;  %v13570_v50 = vld [vmem:[#allocation109_spill] sm:$0xff]  ;;  %v12606_v15 = vld [vmem:[%s13029_s7 + $0x38] sm:$0xff] (%p12424_p7) }
 0x5be   : >> { %v12379_v28 = vadd.f32 %v4659_v25, %v3431_v41   ;;  %v13569_v41 = vmov %v13456_v55  ;;  %v13579_v55 = vld [vmem:[#allocation99_spill] sm:$0xff]  ;;  %v12601_v51 = vld [vmem:[%s13029_s7 + $0x30] sm:$0xff] (%p12424_p7)  ;;  %v4862_v53 = vand.u32 (%p12424_p7), 4294901760, %v12606_v15 }
 0x5bf   : >> { %v13504_v11 = vmov %v12377_v59  ;;  %v13550_v59 = vmov %v13497_v37 }
 0x5c0   : >> { %v13505_v3 = vmov %v12379_v28  ;;  %v7934_v52 = vpop.f32.mrb[22].mxu1 }
 0x5c1   : >> { %v12385_v22 = vadd.f32 %v7934_v52, %v3434_v2   ;;  %v4671_v17 = vpop.f32.mrb[23].mxu1  ;;  %v13546_v32 = vmov %v13505_v3  ;;  %v13559_v52 = vld [vmem:[#allocation122_spill] sm:$0xff]  ;;  %v13576_v2 = vld [vmem:[#allocation102_spill] sm:$0xff] }
 0x5c2   : >> { %v12387_v36 = vadd.f32 %v4671_v17, %v3433_v7   ;;  %v13552_v7 = vld [vmem:[#allocation129_spill] sm:$0xff]  ;;  %v13573_v17 = vld [vmem:[#allocation105_spill] sm:$0xff] }
 0x5c3   : >> { %v13508_v44 = vmov %v12385_v22  ;;  %v13585_v52 = vld [vmem:[#allocation119_spill] sm:$0xff] (%p12424_p7) }
 0x5c4   : >> { %v13509_v61 = vmov %v12387_v36  ;;  %v7937_v33 = vpop.f32.mrb[24].mxu1  ;;  %v13565_v36 = vld [vmem:[#allocation116_spill] sm:$0xff] }
 0x5c5   : >> { %v12393_v12 = vadd.f32 %v7937_v33, %v3436_v60   ;;  %v4683_v40 = vpop.f32.mrb[25].mxu1  ;;  %v13551_v60 = vld [vmem:[#allocation130_spill] sm:$0xff] }
 0x5c6   : >> { %v12395_v13 = vadd.f32 %v4683_v40, %v3435_v62   ;;  %v13548_v40 = vmov %v13501_v16  ;;  %v13555_v62 = vld [vmem:[#allocation126_spill] sm:$0xff] }
 0x5c7   : >> { %v13512_v46 = vmov %v12393_v12  ;;  %v3439_v12 = vmul.f32 %v13521_v14, %v12294_v23  ;;  %v13544_v23 = vmov %v13509_v61  ;;  %v13577_v14 = vld [vmem:[#allocation101_spill] sm:$0xff]  ;;  %v13588_v62 = vld [vmem:[#allocation122_spill] sm:$0xff] (%p12424_p7) }
 0x5c8   : >> { %v13513_v63 = vmov %v12395_v13  ;;  %v7940_v49 = vpop.f32.mrb[26].mxu1  ;;  %v4853_v23 = vand.u32 (%p12424_p7), 4294901760, %v4781_v57 }
 0x5c9   : >> { %v12401_v33 = vadd.f32 %v7940_v49, %v3438_v42   ;;  %v4695_v26 = vpop.f32.mrb[27].mxu1  ;;  %v13560_v49 = vld [vmem:[#allocation121_spill] sm:$0xff]  ;;  %v13566_v42 = vld [vmem:[#allocation115_spill] sm:$0xff] }
 0x5ca   : >> { %v12403_v45 = vadd.f32 %v4695_v26, %v3437_v1   ;;  %v13561_v26 = vld [vmem:[#allocation120_spill] sm:$0xff]  ;;  %v13567_v1 = vmov %v13468_v56  ;;  %v12640_v17 = vsub.f32 (%p12424_p7), %v4781_v57, %v4853_v23  ;;  %v13589_v42 = vld [vmem:[#allocation123_spill] sm:$0xff] (%p12424_p7) }
 0x5cb   : >> { %13516 = vst [vmem:[#allocation131_spill] sm:$0xff] %v12401_v33  ;;  %v13517_v21 = vmov %v12401_v33  ;;  %v13572_v56 = vld [vmem:[#allocation107_spill] sm:$0xff] }
 0x5cc   : >> { %13518 = vst [vmem:[#allocation132_spill] sm:$0xff] %v12403_v45  ;;  %v13519_v47 = vmov %v12403_v45  ;;  %v7943_v22 = vpop.f32.mrb[28].mxu1  ;;  %v13539_v33 = vmov %v13517_v21  ;;  %v13582_v56 = vld [vmem:[#allocation116_spill] sm:$0xff] (%p12424_p7)  ;;  %v5104_v49 = vand.u32 (%p12424_p7), 4294901760, %v12640_v17 }
 0x5cd   : >> { %v12409_v28 = vadd.f32 %v7943_v22, %v3440_v31   ;;  %v4707_v13 = vpop.f32.mrb[29].mxu1  ;;  %v13543_v22 = vmov %v13508_v44  ;;  %v13545_v31 = vmov %v13504_v11 }
 0x5ce   : >> { %v12411_v29 = vadd.f32 %v4707_v13, %v3439_v12   ;;  %v13541_v12 = vmov %v13512_v46  ;;  %v13542_v13 = vmov %v13513_v63  ;;  %v13590_v31 = vld [vmem:[#allocation124_spill] sm:$0xff] (%p12424_p7) }
 0x5cf   : >> { %13522 = vst [vmem:[#allocation133_spill] sm:$0xff] %v12409_v28  ;;  %v13523_v4 = vmov %v12409_v28  ;;  %1752 = sbr.rel (!%p12424_p7) target bundleno = 355 (0x163), region = 107  ;;  %v5105_v13 = vsub.f32 (%p12424_p7), %v12640_v17, %v5104_v49 }
 0x5d0   : >> { %13524 = vst [vmem:[#allocation134_spill] sm:$0xff] %v12411_v29  ;;  %v7946_v20 = vpop.f32.mrb[30].mxu1  ;;  %v13536_v28 = vmov %v13523_v4  ;;  %v13537_v38 = vmov %v12411_v29  ;;  %v4779_v4 = vld [vmem:[%s13029_s7 + $0x10] sm:$0xff] (%p12424_p7) }
 0x5d1   : >> { %v12417_v24 = vadd.f32 %v7946_v20, %v3442_v0   ;;  %v4719_v45 = vpop.f32.mrb[31].mxu1  ;;  %v13538_v29 = vmov %v13537_v38  ;;  %v13556_v0 = vld [vmem:[#allocation125_spill] sm:$0xff]  ;;  %v13574_v20 = vld [vmem:[#allocation104_spill] sm:$0xff]  ;;  %v13581_v38 = vld [vmem:[#allocation115_spill] sm:$0xff] (%p12424_p7)  ;;  %v5106_v57 = vand.u32 (%p12424_p7), 4294901760, %v5105_v13 }
 0x5d2   : >> { %v12419_v25 = vadd.f32 %v4719_v45, %v3441_v43   ;;  %v13540_v45 = vmov %v13519_v47  ;;  %v13568_v43 = vmov %v13462_v18  ;;  %v13578_v18 = vld [vmem:[#allocation100_spill] sm:$0xff]  ;;  %9611 = vrcp.f32 (%p12424_p7), %v13581_v38  ;;  %v4780_v47 = vld [vmem:[%s13029_s7 + $0x18] sm:$0xff] (%p12424_p7) }
 0x5d3   : >> { %13528 = vst [vmem:[#allocation135_spill] sm:$0xff] %v12417_v24  ;;  %v13533_v30 = vmov %v12417_v24  ;;  %v4847_v18 = vand.u32 (%p12424_p7), 4294901760, %v4779_v4  ;;  %9613 = vrcp.f32 (%p12424_p7), %v13582_v56  ;;  %v4850_v10 = vand.u32 (%p12424_p7), 4294901760, %v4780_v47  ;;  %v13591_v45 = vld [vmem:[#allocation125_spill] sm:$0xff] (%p12424_p7) }
 0x5d4   : >> { %13530 = vst [vmem:[#allocation136_spill] sm:$0xff] %v12419_v25  ;;  %v13531_v19 = vmov %v12419_v25  ;;  %v13534_v24 = vmov %v13533_v30  ;;  %v4777_v30 = vld [vmem:[%s13029_s7] sm:$0xff] (%p12424_p7)  ;;  %v4856_v38 = vand.u32 (%p12424_p7), 4294901760, %v4782_v34  ;;  %9615 = vrcp.f32 (%p12424_p7), %v13583_v8 }
 0x5d5   : >> { %v13535_v25 = vmov %v13531_v19  ;;  %v4778_v19 = vld [vmem:[%s13029_s7 + $0x8] sm:$0xff] (%p12424_p7)  ;;  %v4841_v55 = vand.u32 (%p12424_p7), 4294901760, %v4777_v30  ;;  %v4859_v24 = vand.u32 (%p12424_p7), 4294901760, %v12601_v51  ;;  %v12615_v59 = vpack.c.bf16 (%p12424_p7), %v4850_v10, %v4847_v18 }
 0x5d6   : > { %v4844_v21 = vand.u32 4294901760, %v4778_v19  ;;  %v12617_v25 = vpack.c.bf16 %v4856_v38, %v4853_v23  ;;  %9617 = vrcp.f32 %v13584_v9  ;;  %v12632_v29 = vsub.f32 %v4779_v4, %v4847_v18  ;;  %v13592_v23 = vld [vmem:[#allocation126_spill] sm:$0xff] }
 0x5d7   : > { %v12613_v41 = vsub.f32 %v4777_v30, %v4841_v55  ;;  %v12628_v2 = vpack.c.bf16 %v4862_v53, %v4859_v24  ;;  %9619 = vrcp.f32 %v13585_v52  ;;  %v12638_v7 = vsub.f32 %v4780_v47, %v4850_v10 }
 0x5d8   : > { %v12609_v50 = vpack.c.bf16 %v4844_v21, %v4841_v55  ;;  %v12619_v28 = vsub.f32 %v4778_v19, %v4844_v21  ;;  %v13586_v19 = vld [vmem:[#allocation120_spill] sm:$0xff]  ;;  %v5090_v4 = vand.u32 4294901760, %v12632_v29  ;;  %v12647_v60 = vsub.f32 %v4782_v34, %v4856_v38 }
 0x5d9   : > { %v5076_v30 = vand.u32 4294901760, %v12613_v41  ;;  %9621 = vrcp.f32 %v13586_v19  ;;  %v5097_v47 = vand.u32 4294901760, %v12638_v7 }
 0x5da   : > { %8716 = vmatprep.subr.bf16.mxu0 %v12609_v50  ;;  %8668 = vmatprep.subr.bf16.mxu1 %v12609_v50  ;;  %v5083_v21 = vand.u32 4294901760, %v12619_v28  ;;  %9623 = vrcp.f32 %v13587_v27  ;;  %v5091_v32 = vsub.f32 %v12632_v29, %v5090_v4  ;;  %v5111_v58 = vand.u32 4294901760, %v12647_v60 }
 0x5db   : > { %8718 = vmatpush3.bf16.msra.mxu0 %v12609_v50  ;;  %8670 = vmatpush3.bf16.msra.mxu1 %v12609_v50  ;;  %v5077_v36 = vsub.f32 %v12613_v41, %v5076_v30  ;;  %9625 = vrcp.f32 %v13588_v62  ;;  %v5098_v26 = vsub.f32 %v12638_v7, %v5097_v47  ;;  %v12660_v5 = vpack.c.bf16 %v5097_v47, %v5090_v4 }
 0x5dc   : > { %8720 = vmatprep.subr.bf16.mxu0 %v12615_v59  ;;  %8672 = vmatprep.subr.bf16.mxu1 %v12615_v59  ;;  %v5084_v33 = vsub.f32 %v12619_v28, %v5083_v21  ;;  %v12650_v35 = vpack.c.bf16 %v5083_v21, %v5076_v30  ;;  %9627 = vrcp.f32 %v13589_v42  ;;  %v9612_v48 = vpop.eup %9611  ;;  %v5092_v12 = vand.u32 4294901760, %v5091_v32 }
 0x5dd   : > { %v5078_v40 = vand.u32 4294901760, %v5077_v36  ;;  %9629 = vrcp.f32 %v13590_v31  ;;  %v9614_v22 = vpop.eup %9613  ;;  %v4746_v14 = vmul.f32 %v9612_v48, %v13497_v37  ;;  %v5099_v43 = vand.u32 4294901760, %v5098_v26 }
 0x5de   : > { %v5085_v1 = vand.u32 4294901760, %v5084_v33  ;;  %v9616_v0 = vpop.eup %9615  ;;  %v4748_v20 = vmul.f32 %v9614_v22, %v13496_v54  ;;  %9631 = vrcp.f32 %v13591_v45  ;;  %v5112_v37 = vsub.f32 %v12647_v60, %v5111_v58 }
 0x5df   : > { %8722 = vmatpush3.bf16.msra.mxu0 %v12615_v59  ;;  %8674 = vmatpush3.bf16.msra.mxu1 %v12615_v59  ;;  %v4793_v55 = vsel %vm517_vm0, %v4746_v14, 0  ;;  %v4750_v18 = vmul.f32 %v9616_v0, %v13501_v16  ;;  %v12680_v10 = vpack.c.bf16 %v5099_v43, %v5092_v12  ;;  %9633 = vrcp.f32 %v13592_v23 }
 0x5e0   : > { %8724 = vmatprep.subr.bf16.mxu0 %v12617_v25  ;;  %8676 = vmatprep.subr.bf16.mxu1 %v12617_v25  ;;  %v12669_v39 = vpack.c.bf16 %v5085_v1, %v5078_v40  ;;  %v9618_v34 = vpop.eup %9617  ;;  %v12677_v56 = vand.u32 4294901760, %v4793_v55  ;;  %v4796_v54 = vsel %vm517_vm0, %v4748_v20, 0  ;;  %v5113_v30 = vand.u32 4294901760, %v5112_v37 }
 0x5e1   : > { %v9620_v38 = vpop.eup %9619  ;;  %v12685_v16 = vand.u32 4294901760, %v4796_v54  ;;  %v4799_v8 = vsel %vm517_vm0, %v4750_v18, 0  ;;  %v4752_v9 = vmul.f32 %v9618_v34, %v13500_v6  ;;  %v12695_v4 = vpack.c.bf16 %v5111_v58, %v5104_v49 }
 0x5e2   : > { %v12690_v21 = vsub.f32 %v4793_v55, %v12677_v56  ;;  %v12692_v19 = vand.u32 4294901760, %v4799_v8  ;;  %v4754_v36 = vmul.f32 %v9620_v38, %v13505_v3  ;;  %v12702_v6 = vpack.c.bf16 %v5113_v30, %v5106_v57 }
 0x5e3   : > { %8726 = vmatpush3.bf16.msra.mxu0 %v12617_v25  ;;  %8678 = vmatpush3.bf16.msra.mxu1 %v12617_v25  ;;  %v9622_v52 = vpop.eup %9621  ;;  %v12698_v33 = vsub.f32 %v4796_v54, %v12685_v16  ;;  %v4802_v47 = vsel %vm517_vm0, %v4752_v9, 0 }
 0x5e4   : > { %8728 = vmatprep.subr.bf16.mxu0 %v12628_v2  ;;  %8680 = vmatprep.subr.bf16.mxu1 %v12628_v2  ;;  %v9624_v27 = vpop.eup %9623  ;;  %v4756_v62 = vmul.f32 %v9622_v52, %v13504_v11  ;;  %v4915_v32 = vand.u32 4294901760, %v12690_v21  ;;  %v12708_v3 = vsub.f32 %v4799_v8, %v12692_v19  ;;  %v12710_v42 = vand.u32 4294901760, %v4802_v47 }
 0x5e5   : > { %v9626_v40 = vpop.eup %9625  ;;  %v4805_v49 = vsel %vm517_vm0, %v4754_v36, 0  ;;  %v4925_v1 = vand.u32 4294901760, %v12698_v33  ;;  %v4758_v31 = vmul.f32 %v9624_v27, %v13509_v61 }
 0x5e6   : > { %v9628_v48 = vpop.eup %9627  ;;  %v12716_v11 = vand.u32 4294901760, %v4805_v49  ;;  %v4808_v26 = vsel %vm517_vm0, %v4756_v62, 0  ;;  %8083 = vmatprep.mubr.f32.mxu0 %v4915_v32  ;;  %v4916_v14 = vsub.f32 %v12690_v21, %v4915_v32  ;;  %v4935_v12 = vand.u32 4294901760, %v12708_v3 }
 0x5e7   : > { %8730 = vmatpush3.bf16.msra.mxu0 %v12628_v2  ;;  %8682 = vmatpush3.bf16.msra.mxu1 %v12628_v2  ;;  %v9630_v22 = vpop.eup %9629  ;;  %v12723_v13 = vsub.f32 %v4802_v47, %v12710_v42  ;;  %v12725_v58 = vand.u32 4294901760, %v4808_v26  ;;  %v4926_v0 = vsub.f32 %v12698_v33, %v4925_v1  ;;  %v4811_v43 = vsel %vm517_vm0, %v4758_v31, 0  ;;  %v13593_v47 = vld [vmem:[#allocation127_spill] sm:$0xff] }
 0x5e8   : > { %8684 = vmatprep.subr.bf16.mxu1 %v12669_v39  ;;  %8732 = vmatprep.subr.bf16.mxu0 %v12650_v35  ;;  %v12729_v20 = vsub.f32 %v4805_v49, %v12716_v11  ;;  %v4760_v61 = vmul.f32 %v9626_v40, %v13508_v44  ;;  %v9632_v45 = vpop.eup %9631  ;;  %v4917_v55 = vand.u32 4294901760, %v4916_v14  ;;  %v4936_v57 = vsub.f32 %v12708_v3, %v4935_v12 }
 0x5e9   : > { %v4945_v18 = vand.u32 4294901760, %v12723_v13  ;;  %v12737_v37 = vsub.f32 %v4808_v26, %v12725_v58  ;;  %v4927_v34 = vand.u32 4294901760, %v4926_v0  ;;  %v12740_v23 = vand.u32 4294901760, %v4811_v43  ;;  %v9634_v44 = vpop.eup %9633 }
 0x5ea   : > { %8084 = vmatmul.mubr.f32.vlgmr.msra.gmra.mrb[0].mxu0 %v4925_v1  ;;  %v4955_v54 = vand.u32 4294901760, %v12729_v20  ;;  %v4814_v38 = vsel %vm517_vm0, %v4760_v61, 0  ;;  %7963 = vmatprep.mubr.f32.mxu1 %v4917_v55  ;;  %v4937_v8 = vand.u32 4294901760, %v4936_v57  ;;  %v4762_v27 = vmul.f32 %v9628_v48, %v13513_v63  ;;  %v13594_v48 = vld [vmem:[#allocation132_spill] sm:$0xff]  ;;  %v13595_v61 = vld [vmem:[#allocation131_spill] sm:$0xff] }
 0x5eb   : > { %8086 = vmatprep.mubr.f32.mxu0 %v4935_v12  ;;  %8734 = vmatpush3.bf16.msra.mxu0 %v12650_v35  ;;  %v4946_v9 = vsub.f32 %v12723_v13, %v4945_v18  ;;  %v4965_v35 = vand.u32 4294901760, %v12737_v37  ;;  %v12746_v30 = vand.u32 4294901760, %v4814_v38  ;;  %v12750_v36 = vsub.f32 %v4811_v43, %v12740_v23  ;;  %v13596_v57 = vld [vmem:[#allocation128_spill] sm:$0xff] }
 0x5ec   : > { %8736 = vmatprep.subr.bf16.mxu0 %v12660_v5  ;;  %7964 = vmatmul.mubr.f32.vlgmr.msra.gmra.mrb[0].mxu1 %v4927_v34  ;;  %v4956_v52 = vsub.f32 %v12729_v20, %v4955_v54  ;;  %9635 = vrcp.f32 %v13593_v47  ;;  %v4764_v49 = vmul.f32 %v9630_v22, %v13512_v46  ;;  %v4817_v63 = vsel %vm517_vm0, %v4762_v27, 0 }
 0x5ed   : > { %8686 = vmatpush3.bf16.msra.mxu1 %v12669_v39  ;;  %7966 = vmatprep.mubr.f32.mxu1 %v4937_v8  ;;  %v4947_v62 = vand.u32 4294901760, %v4946_v9  ;;  %v4966_v40 = vsub.f32 %v12737_v37, %v4965_v35  ;;  %v12757_v32 = vsub.f32 %v4814_v38, %v12746_v30  ;;  %v4975_v26 = vand.u32 4294901760, %v12750_v36 }
 0x5ee   : > { %8087 = vmatmul.mubr.f32.gmra.mrb[2].mxu0 %v4945_v18  ;;  %v4957_v1 = vand.u32 4294901760, %v4956_v52  ;;  %8688 = vmatprep.subr.bf16.mxu1 %v12680_v10  ;;  %v4766_v31 = vmul.f32 %v9632_v45, %v13594_v48  ;;  %v12766_v12 = vand.u32 4294901760, %v4817_v63  ;;  %v4820_v0 = vsel %vm517_vm0, %v4764_v49, 0 }
 0x5ef   : > { %8089 = vmatprep.mubr.f32.mxu0 %v4955_v54  ;;  %v4967_v39 = vand.u32 4294901760, %v4966_v40  ;;  %v4985_v14 = vand.u32 4294901760, %v12757_v32  ;;  %8738 = vmatpush3.bf16.msra.mxu0 %v12660_v5  ;;  %v4976_v46 = vsub.f32 %v12750_v36, %v4975_v26  ;;  %v12770_v22 = vand.u32 4294901760, %v4820_v0  ;;  %v13598_v40 = vld [vmem:[#allocation130_spill] sm:$0xff] }
 0x5f0   : > { %7967 = vmatmul.mubr.f32.gmra.mrb[2].mxu1 %v4947_v62  ;;  %v4823_v43 = vsel %vm517_vm0, %v4766_v31, 0  ;;  %v4768_v55 = vmul.f32 %v9634_v44, %v13595_v61  ;;  %v12775_v45 = vsub.f32 %v4817_v63, %v12766_v12  ;;  %9637 = vrcp.f32 %v13596_v57  ;;  %8740 = vmatprep.subr.bf16.mxu0 %v12695_v4  ;;  %v13599_v31 = vld [vmem:[#allocation134_spill] sm:$0xff] }
 0x5f1   : > { %7969 = vmatprep.mubr.f32.mxu1 %v4957_v1  ;;  %v4986_v5 = vsub.f32 %v12757_v32, %v4985_v14  ;;  %v12778_v18 = vand.u32 4294901760, %v4823_v43  ;;  %8690 = vmatpush3.bf16.msra.mxu1 %v12680_v10  ;;  %v4977_v34 = vand.u32 4294901760, %v4976_v46  ;;  %v12783_v54 = vsub.f32 %v4820_v0, %v12770_v22 }
 0x5f2   : > { %8090 = vmatmul.mubr.f32.gmra.mrb[4].mxu0 %v4965_v35  ;;  %v4826_v38 = vsel %vm517_vm0, %v4768_v55, 0  ;;  %v12790_v44 = vsub.f32 %v12601_v51, %v4859_v24  ;;  %v4995_v8 = vand.u32 4294901760, %v12775_v45  ;;  %8692 = vmatprep.subr.bf16.mxu1 %v12702_v6  ;;  %v12805_v51 = vsub.f32 %v12606_v15, %v4862_v53  ;;  %v13597_v24 = vld [vmem:[#allocation129_spill] sm:$0xff] }
 0x5f3   : > { %8092 = vmatprep.mubr.f32.mxu0 %v4975_v26  ;;  %v4987_v9 = vand.u32 4294901760, %v4986_v5  ;;  %v12795_v10 = vsub.f32 %v4823_v43, %v12778_v18  ;;  %v12797_v35 = vand.u32 4294901760, %v4826_v38  ;;  %8742 = vmatpush3.bf16.msra.mxu0 %v12695_v4  ;;  %v5005_v52 = vand.u32 4294901760, %v12783_v54 }
 0x5f4   : > { %7970 = vmatmul.mubr.f32.gmra.mrb[4].mxu1 %v4967_v39  ;;  %v5118_v27 = vand.u32 4294901760, %v12790_v44  ;;  %9639 = vrcp.f32 %v13597_v24  ;;  %v4996_v47 = vsub.f32 %v12775_v45, %v4995_v8  ;;  %v5125_v53 = vand.u32 4294901760, %v12805_v51 }
 0x5f5   : > { %7972 = vmatprep.mubr.f32.mxu1 %v4977_v34  ;;  %v5015_v62 = vand.u32 4294901760, %v12795_v10  ;;  %v12811_v4 = vsub.f32 %v4826_v38, %v12797_v35  ;;  %9641 = vrcp.f32 %v13598_v40  ;;  %v5006_v1 = vsub.f32 %v12783_v54, %v5005_v52  ;;  %8694 = vmatpush3.bf16.msra.mxu1 %v12702_v6 }
 0x5f6   : > { %8093 = vmatmul.mubr.f32.gmra.mrb[6].mxu0 %v4985_v14  ;;  %v9636_v49 = vpop.eup %9635  ;;  %v5119_v15 = vsub.f32 %v12790_v44, %v5118_v27  ;;  %v4997_v26 = vand.u32 4294901760, %v4996_v47  ;;  %v5126_v46 = vsub.f32 %v12805_v51, %v5125_v53  ;;  %v8743_v43 = vpack.c.bf16 %v5125_v53, %v5118_v27 }
 0x5f7   : > { %8095 = vmatprep.mubr.f32.mxu0 %v4995_v8  ;;  %v5025_v63 = vand.u32 4294901760, %v12811_v4  ;;  %v5016_v48 = vsub.f32 %v12795_v10, %v5015_v62  ;;  %v4770_v39 = vmul.f32 %v9636_v49, %v13599_v31  ;;  %v5007_v14 = vand.u32 4294901760, %v5006_v1 }
 0x5f8   : > { %7973 = vmatmul.mubr.f32.gmra.mrb[6].mxu1 %v4987_v9  ;;  %v5120_v0 = vand.u32 4294901760, %v5119_v15  ;;  %v5127_v57 = vand.u32 4294901760, %v5126_v46  ;;  %8744 = vmatprep.subr.bf16.mxu0 %v8743_v43  ;;  %v13600_v9 = vld [vmem:[#allocation133_spill] sm:$0xff]  ;;  %v8699_v24 = vpack.c.bf16 %v12619_v28, %v12613_v41  ;;  %v13601_v15 = vld [vmem:[#allocation136_spill] sm:$0xff] }
 0x5f9   : > { %7975 = vmatprep.mubr.f32.mxu1 %v4997_v26  ;;  %v5017_v6 = vand.u32 4294901760, %v5016_v48  ;;  %v4829_v61 = vsel %vm517_vm0, %v4770_v39, 0  ;;  %v5026_v55 = vsub.f32 %v12811_v4, %v5025_v63  ;;  %8746 = vmatpush3.bf16.msra.mxu0 %v8743_v43 }
 0x5fa   : > { %8096 = vmatmul.mubr.f32.gmra.mrb[8].mxu0 %v5005_v52  ;;  %v12824_v5 = vand.u32 4294901760, %v4829_v61  ;;  %v9638_v34 = vpop.eup %9637  ;;  %v8695_v27 = vpack.c.bf16 %v5127_v57, %v5120_v0  ;;  %8748 = vmatprep.subr.bf16.mxu0 %v12609_v50 }
 0x5fb   : > { %8098 = vmatprep.mubr.f32.mxu0 %v5015_v62  ;;  %v5027_v8 = vand.u32 4294901760, %v5026_v55  ;;  %v4772_v52 = vmul.f32 %v9638_v34, %v13600_v9 }
 0x5fc   : > { %7976 = vmatmul.mubr.f32.gmra.mrb[8].mxu1 %v5007_v14  ;;  %v12827_v38 = vsub.f32 %v4829_v61, %v12824_v5  ;;  %8696 = vmatprep.subr.bf16.mxu1 %v8695_v27 }
 0x5fd   : > { %7978 = vmatprep.mubr.f32.mxu1 %v5017_v6  ;;  %v4832_v40 = vsel %vm517_vm0, %v4772_v52, 0  ;;  %8698 = vmatpush3.bf16.msra.mxu1 %v8695_v27 }
 0x5fe   : > { %8099 = vmatmul.mubr.f32.gmra.mrb[10].mxu0 %v5025_v63  ;;  %v9640_v47 = vpop.eup %9639  ;;  %v5035_v62 = vand.u32 4294901760, %v12827_v38  ;;  %v12835_v1 = vand.u32 4294901760, %v4832_v40  ;;  %v13602_v63 = vld [vmem:[#allocation135_spill] sm:$0xff]  ;;  %8700 = vmatprep.subr.bf16.mxu1 %v8699_v24 }
 0x5ff   : > { %v9642_v49 = vpop.eup %9641  ;;  %v4774_v53 = vmul.f32 %v9640_v47, %v13601_v15  ;;  %v8703_v47 = vpack.c.bf16 %v12638_v7, %v12632_v29  ;;  %v12941_v29 = vld [vmem:[%s13030_s8] ss:$0 sm:$0xff] }
 0x600   : > { %8101 = vmatprep.mubr.f32.mxu0 %v5035_v62  ;;  %7979 = vmatmul.mubr.f32.gmra.mrb[10].mxu1 %v5027_v8  ;;  %v5036_v26 = vsub.f32 %v12827_v38, %v5035_v62  ;;  %v4776_v41 = vmul.f32 %v9642_v49, %v13602_v63  ;;  %v12841_v28 = vsub.f32 %v4832_v40, %v12835_v1  ;;  %v13607_v49 = vld [vmem:[#allocation7_spill] sm:$0xff]  ;;  %v13608_v63 = vld [vmem:[#allocation6_spill] sm:$0xff] }
 0x601   : > { %v4835_v48 = vsel %vm517_vm0, %v4774_v53, 0 }
 0x602   : > { %v5037_v31 = vand.u32 4294901760, %v5036_v26  ;;  %v12844_v39 = vand.u32 4294901760, %v4835_v48  ;;  %v4838_v14 = vsel %vm517_vm0, %v4776_v41, 0  ;;  %v5045_v0 = vand.u32 4294901760, %v12841_v28 }
 0x603   : > { %v12848_v46 = vand.u32 4294901760, %v4838_v14 }
 0x604   : > { %7981 = vmatprep.mubr.f32.mxu1 %v5037_v31  ;;  %v12851_v43 = vsub.f32 %v4835_v48, %v12844_v39  ;;  %8102 = vmatmul.mubr.f32.gmra.mrb[12].mxu0 %v5045_v0  ;;  %v5046_v6 = vsub.f32 %v12841_v28, %v5045_v0  ;;  %v13609_v0 = vld [vmem:[#allocation9_spill] sm:$0xff] }
 0x605   : > { %v12855_v61 = vsub.f32 %v4838_v14, %v12848_v46 }
 0x606   : > { %v5055_v55 = vand.u32 4294901760, %v12851_v43  ;;  %v5047_v57 = vand.u32 4294901760, %v5046_v6 }
 0x607   : > { %v5065_v34 = vand.u32 4294901760, %v12855_v61 }
 0x608   : > { %8104 = vmatprep.mubr.f32.mxu0 %v5055_v55  ;;  %v5056_v8 = vsub.f32 %v12851_v43, %v5055_v55  ;;  %7982 = vmatmul.mubr.f32.gmra.mrb[12].mxu1 %v5047_v57  ;;  %v13610_v55 = vld [vmem:[#allocation8_spill] sm:$0xff] }
 0x609   : > { %8105 = vmatmul.mubr.f32.gmra.mrb[14].mxu0 %v5065_v34  ;;  %v5066_v9 = vsub.f32 %v12855_v61, %v5065_v34 }
 0x60a   : > { %v5057_v52 = vand.u32 4294901760, %v5056_v8  ;;  %8123 = vmatprep.mubr.f32.mxu0 %v12677_v56 }
 0x60b   : > { %v5067_v27 = vand.u32 4294901760, %v5066_v9 }
 0x60c   : > { %7984 = vmatprep.mubr.f32.mxu1 %v5057_v52 }
 0x60d   : > { %7985 = vmatmul.mubr.f32.gmra.mrb[14].mxu1 %v5067_v27  ;;  %8124 = vmatmul.mubr.f32.vlgmr.msra.gmra.mrb[0].mxu0 %v12685_v16 }
 0x60e   : > { %8003 = vmatprep.mubr.f32.mxu1 %v12677_v56  ;;  %8126 = vmatprep.mubr.f32.mxu0 %v12692_v19 }
 0x60f   : > { %8750 = vmatpush3.bf16.msra.mxu0 %v12609_v50  ;;  %v8707_v50 = vpack.c.bf16 %v12647_v60, %v12640_v17 }
 0x610   : > { %8752 = vmatprep.subr.bf16.mxu0 %v12615_v59 }
 0x611   : > { %8004 = vmatmul.mubr.f32.vlgmr.msra.gmra.mrb[0].mxu1 %v12685_v16  ;;  %8127 = vmatmul.mubr.f32.gmra.mrb[2].mxu0 %v12710_v42 }
 0x612   : > { %8702 = vmatpush3.bf16.msra.mxu1 %v8699_v24  ;;  %8006 = vmatprep.mubr.f32.mxu1 %v12692_v19 }
 0x613   : > { %8129 = vmatprep.mubr.f32.mxu0 %v12716_v11  ;;  %8704 = vmatprep.subr.bf16.mxu1 %v8703_v47 }
 0x614   : > { %8754 = vmatpush3.bf16.msra.mxu0 %v12615_v59  ;;  %v8711_v59 = vpack.c.bf16 %v12805_v51, %v12790_v44  ;;  %v13606_v51 = vld [vmem:[#allocation4_spill] sm:$0xff] }
 0x615   : > { %8007 = vmatmul.mubr.f32.gmra.mrb[2].mxu1 %v12710_v42  ;;  %8130 = vmatmul.mubr.f32.gmra.mrb[4].mxu0 %v12725_v58 }
 0x616   : > { %8009 = vmatprep.mubr.f32.mxu1 %v12716_v11  ;;  %8132 = vmatprep.mubr.f32.mxu0 %v12740_v23 }
 0x617   : > { %8706 = vmatpush3.bf16.msra.mxu1 %v8703_v47  ;;  %8756 = vmatprep.subr.bf16.mxu0 %v12617_v25  ;;  %v13611_v47 = vld [vmem:[#allocation11_spill] sm:$0xff] }
 0x618   : > { %8708 = vmatprep.subr.bf16.mxu1 %v8707_v50  ;;  %8758 = vmatpush3.bf16.msra.mxu0 %v12617_v25 }
 0x619   : > { %8010 = vmatmul.mubr.f32.gmra.mrb[4].mxu1 %v12725_v58  ;;  %8133 = vmatmul.mubr.f32.gmra.mrb[6].mxu0 %v12746_v30 }
 0x61a   : > { %8012 = vmatprep.mubr.f32.mxu1 %v12740_v23  ;;  %8135 = vmatprep.mubr.f32.mxu0 %v12766_v12 }
 0x61b   : > { %8710 = vmatpush3.bf16.msra.mxu1 %v8707_v50  ;;  %8760 = vmatprep.subr.bf16.mxu0 %v12628_v2 }
 0x61c   : > { %8712 = vmatprep.subr.bf16.mxu1 %v8711_v59  ;;  %8762 = vmatpush3.bf16.msra.mxu0 %v12628_v2 }
 0x61d   : > { %8013 = vmatmul.mubr.f32.gmra.mrb[6].mxu1 %v12746_v30  ;;  %8136 = vmatmul.mubr.f32.gmra.mrb[8].mxu0 %v12770_v22 }
 0x61e   : > { %8015 = vmatprep.mubr.f32.mxu1 %v12766_v12  ;;  %8138 = vmatprep.mubr.f32.mxu0 %v12778_v18 }
 0x61f   : > { %8714 = vmatpush3.bf16.msra.mxu1 %v8711_v59 }
 0x621   : > { %8016 = vmatmul.mubr.f32.gmra.mrb[8].mxu1 %v12770_v22  ;;  %8139 = vmatmul.mubr.f32.gmra.mrb[10].mxu0 %v12797_v35 }
 0x622   : > { %8018 = vmatprep.mubr.f32.mxu1 %v12778_v18  ;;  %8141 = vmatprep.mubr.f32.mxu0 %v12824_v5 }
 0x625   : > { %8019 = vmatmul.mubr.f32.gmra.mrb[10].mxu1 %v12797_v35  ;;  %8142 = vmatmul.mubr.f32.gmra.mrb[12].mxu0 %v12835_v1 }
 0x626   : > { %8021 = vmatprep.mubr.f32.mxu1 %v12824_v5  ;;  %8144 = vmatprep.mubr.f32.mxu0 %v12844_v39 }
 0x629   : > { %8022 = vmatmul.mubr.f32.gmra.mrb[12].mxu1 %v12835_v1  ;;  %8145 = vmatmul.mubr.f32.gmra.mrb[14].mxu0 %v12848_v46 }
 0x62a   : > { %8024 = vmatprep.mubr.f32.mxu1 %v12844_v39  ;;  %8163 = vmatprep.mubr.f32.mxu0 %v12677_v56 }
 0x62d   : > { %8025 = vmatmul.mubr.f32.gmra.mrb[14].mxu1 %v12848_v46  ;;  %8164 = vmatmul.mubr.f32.vlgmr.msra.gmra.mrb[0].mxu0 %v12685_v16 }
 0x62e   : > { %8043 = vmatprep.mubr.f32.mxu1 %v12690_v21  ;;  %8166 = vmatprep.mubr.f32.mxu0 %v12692_v19 }
 0x631   : > { %8044 = vmatmul.mubr.f32.vlgmr.msra.gmra.mrb[0].mxu1 %v12698_v33  ;;  %8167 = vmatmul.mubr.f32.gmra.mrb[2].mxu0 %v12710_v42 }
 0x632   : > { %8046 = vmatprep.mubr.f32.mxu1 %v12708_v3  ;;  %8169 = vmatprep.mubr.f32.mxu0 %v12716_v11  ;;  %v13603_v11 = vld [vmem:[#allocation3_spill] sm:$0xff] }
 0x635   : > { %8047 = vmatmul.mubr.f32.gmra.mrb[2].mxu1 %v12723_v13  ;;  %8170 = vmatmul.mubr.f32.gmra.mrb[4].mxu0 %v12725_v58 }
 0x636   : > { %8049 = vmatprep.mubr.f32.mxu1 %v12729_v20  ;;  %8172 = vmatprep.mubr.f32.mxu0 %v12740_v23  ;;  %v13604_v23 = vld [vmem:[#allocation2_spill] sm:$0xff] }
 0x639   : > { %8050 = vmatmul.mubr.f32.gmra.mrb[4].mxu1 %v12737_v37  ;;  %8173 = vmatmul.mubr.f32.gmra.mrb[6].mxu0 %v12746_v30 }
 0x63a   : > { %8052 = vmatprep.mubr.f32.mxu1 %v12750_v36  ;;  %8175 = vmatprep.mubr.f32.mxu0 %v12766_v12 }
 0x63d   : > { %8053 = vmatmul.mubr.f32.gmra.mrb[6].mxu1 %v12757_v32  ;;  %8176 = vmatmul.mubr.f32.gmra.mrb[8].mxu0 %v12770_v22 }
 0x63e   : > { %8055 = vmatprep.mubr.f32.mxu1 %v12775_v45  ;;  %8178 = vmatprep.mubr.f32.mxu0 %v12778_v18  ;;  %v13605_v18 = vld [vmem:[#allocation5_spill] sm:$0xff] }
 0x641   : > { %8056 = vmatmul.mubr.f32.gmra.mrb[8].mxu1 %v12783_v54  ;;  %8179 = vmatmul.mubr.f32.gmra.mrb[10].mxu0 %v12797_v35 }
 0x642   : > { %8058 = vmatprep.mubr.f32.mxu1 %v12795_v10  ;;  %8181 = vmatprep.mubr.f32.mxu0 %v12824_v5 }
 0x645   : > { %8059 = vmatmul.mubr.f32.gmra.mrb[10].mxu1 %v12811_v4  ;;  %8182 = vmatmul.mubr.f32.gmra.mrb[12].mxu0 %v12835_v1 }
 0x646   : > { %8061 = vmatprep.mubr.f32.mxu1 %v12827_v38  ;;  %8184 = vmatprep.mubr.f32.mxu0 %v12844_v39 }
 0x649   : > { %8062 = vmatmul.mubr.f32.gmra.mrb[12].mxu1 %v12841_v28  ;;  %8185 = vmatmul.mubr.f32.gmra.mrb[14].mxu0 %v12848_v46 }
 0x64a   : > { %8064 = vmatprep.mubr.f32.mxu1 %v12851_v43 }
 0x64d   : > { %8065 = vmatmul.mubr.f32.gmra.mrb[14].mxu1 %v12855_v61 }
 0x700   : > { %v8165_v25 = vpop.f32.mrb[0].mxu0 }
 0x701   : > { %v5928_v2 = vpop.f32.mrb[1].mxu0 }
 0x704   : > { %v8045_v7 = vpop.f32.mrb[0].mxu1  ;;  %v8168_v17 = vpop.f32.mrb[2].mxu0 }
 0x705   : > { %v9019_v60 = vadd.f32 %v8045_v7, %v12941_v29  ;;  %v5358_v56 = vpop.f32.mrb[1].mxu1  ;;  %v5940_v16 = vpop.f32.mrb[3].mxu0  ;;  %v13612_v7 = vld [vmem:[#allocation10_spill] sm:$0xff] }
 0x706   : > { %v9021_v21 = vadd.f32 %v12941_v29, %v5358_v56 }
 0x707   : > { %v9020_v19 = vadd.f32 %v9019_v60, %v8165_v25 }
 0x708   : > { %v9022_v33 = vadd.f32 %v9021_v21, %v5928_v2  ;;  %v8048_v3 = vpop.f32.mrb[2].mxu1  ;;  %v8171_v42 = vpop.f32.mrb[4].mxu0 }
 0x709   : > { %v6023_v13 = vadd.f32 %v9020_v19, %v13603_v11  ;;  %v9023_v58 = vadd.f32 %v8048_v3, %v12941_v29  ;;  %v5372_v20 = vpop.f32.mrb[3].mxu1  ;;  %v5952_v37 = vpop.f32.mrb[5].mxu0 }
 0x70a   : > { %v6022_v30 = vadd.f32 %v9022_v33, %v13604_v23  ;;  %v9025_v36 = vadd.f32 %v12941_v29, %v5372_v20  ;;  %v13613_v33 = vld [vmem:[#allocation13_spill] sm:$0xff] }
 0x70b   : > { %6039 = vst.msk [vmem:[%s10264_s10 + $0x8] sm:$0xff] %vm517_vm0, %v6023_v13  ;;  %v9024_v32 = vadd.f32 %v9023_v58, %v8168_v17  ;;  %v13614_v58 = vld [vmem:[#allocation12_spill] sm:$0xff] }
 0x70c   : > { %6038 = vst.msk [vmem:[%s10264_s10] sm:$0xff] %vm517_vm0, %v6022_v30  ;;  %v9026_v12 = vadd.f32 %v9025_v36, %v5940_v16  ;;  %v8051_v22 = vpop.f32.mrb[4].mxu1  ;;  %v8174_v45 = vpop.f32.mrb[6].mxu0 }
 0x70d   : > { %v6025_v54 = vadd.f32 %v9024_v32, %v13605_v18  ;;  %v9027_v44 = vadd.f32 %v8051_v22, %v12941_v29  ;;  %v5386_v10 = vpop.f32.mrb[5].mxu1  ;;  %v5964_v35 = vpop.f32.mrb[7].mxu0  ;;  %v13615_v32 = vld [vmem:[#allocation15_spill] sm:$0xff]  ;;  %v13616_v18 = vld [vmem:[#allocation14_spill] sm:$0xff] }
 0x70e   : > { %v6024_v4 = vadd.f32 %v9026_v12, %v13606_v51  ;;  %v9029_v5 = vadd.f32 %v12941_v29, %v5386_v10  ;;  %v13617_v51 = vld [vmem:[#allocation17_spill] sm:$0xff] }
 0x70f   : > { %6041 = vst.msk [vmem:[%s10264_s10 + $0x18] sm:$0xff] %vm517_vm0, %v6025_v54  ;;  %v9028_v38 = vadd.f32 %v9027_v44, %v8171_v42 }
 0x710   : > { %6040 = vst.msk [vmem:[%s10264_s10 + $0x10] sm:$0xff] %vm517_vm0, %v6024_v4  ;;  %v9030_v24 = vadd.f32 %v9029_v5, %v5952_v37  ;;  %v8054_v62 = vpop.f32.mrb[6].mxu1  ;;  %v8177_v40 = vpop.f32.mrb[8].mxu0  ;;  %v13618_v5 = vld [vmem:[#allocation16_spill] sm:$0xff] }
 0x711   : > { %v6027_v1 = vadd.f32 %v9028_v38, %v13607_v49  ;;  %v9031_v15 = vadd.f32 %v8054_v62, %v12941_v29  ;;  %v5400_v53 = vpop.f32.mrb[7].mxu1  ;;  %v5976_v26 = vpop.f32.mrb[9].mxu0 }
 0x712   : > { %v6026_v41 = vadd.f32 %v9030_v24, %v13608_v63  ;;  %v9033_v28 = vadd.f32 %v12941_v29, %v5400_v53 }
 0x713   : > { %6043 = vst.msk [vmem:[%s10264_s10 + $0x28] sm:$0xff] %vm517_vm0, %v6027_v1  ;;  %v9032_v48 = vadd.f32 %v9031_v15, %v8174_v45 }
 0x714   : > { %6042 = vst.msk [vmem:[%s10264_s10 + $0x20] sm:$0xff] %vm517_vm0, %v6026_v41  ;;  %v9034_v31 = vadd.f32 %v9033_v28, %v5964_v35  ;;  %v8057_v39 = vpop.f32.mrb[8].mxu1  ;;  %v8180_v14 = vpop.f32.mrb[10].mxu0 }
 0x715   : > { %v6029_v46 = vadd.f32 %v9032_v48, %v13609_v0  ;;  %v9035_v43 = vadd.f32 %v8057_v39, %v12941_v29  ;;  %v5414_v6 = vpop.f32.mrb[9].mxu1  ;;  %v5988_v61 = vpop.f32.mrb[11].mxu0 }
 0x716   : > { %v6028_v57 = vadd.f32 %v9034_v31, %v13610_v55  ;;  %v9037_v34 = vadd.f32 %v12941_v29, %v5414_v6 }
 0x717   : > { %6045 = vst.msk [vmem:[%s10264_s10 + $0x38] sm:$0xff] %vm517_vm0, %v6029_v46  ;;  %v9036_v8 = vadd.f32 %v9035_v43, %v8177_v40 }
 0x718   : > { %6044 = vst.msk [vmem:[%s10264_s10 + $0x30] sm:$0xff] %vm517_vm0, %v6028_v57  ;;  %v9038_v9 = vadd.f32 %v9037_v34, %v5976_v26  ;;  %v8060_v52 = vpop.f32.mrb[10].mxu1  ;;  %v8183_v27 = vpop.f32.mrb[12].mxu0 }
 0x719   : > { %v6031_v50 = vadd.f32 %v9036_v8, %v13611_v47  ;;  %v9039_v59 = vadd.f32 %v8060_v52, %v12941_v29  ;;  %v5428_v25 = vpop.f32.mrb[11].mxu1  ;;  %v6000_v2 = vpop.f32.mrb[13].mxu0 }
 0x71a   : > { %v6030_v17 = vadd.f32 %v9038_v9, %v13612_v7  ;;  %v9041_v60 = vadd.f32 %v12941_v29, %v5428_v25 }
 0x71b   : > { %6047 = vst.msk [vmem:[%s10264_s10 + $0x48] sm:$0xff] %vm517_vm0, %v6031_v50  ;;  %v9040_v56 = vadd.f32 %v9039_v59, %v8180_v14 }
 0x71c   : > { %6046 = vst.msk [vmem:[%s10264_s10 + $0x40] sm:$0xff] %vm517_vm0, %v6030_v17  ;;  %v9042_v16 = vadd.f32 %v9041_v60, %v5988_v61  ;;  %v8063_v21 = vpop.f32.mrb[12].mxu1  ;;  %v8186_v19 = vpop.f32.mrb[14].mxu0 }
 0x71d   : > { %v6033_v3 = vadd.f32 %v9040_v56, %v13613_v33  ;;  %v9043_v42 = vadd.f32 %v8063_v21, %v12941_v29  ;;  %v5442_v11 = vpop.f32.mrb[13].mxu1  ;;  %v6012_v13 = vpop.f32.mrb[15].mxu0 }
 0x71e   : > { %v6032_v20 = vadd.f32 %v9042_v16, %v13614_v58  ;;  %v9045_v37 = vadd.f32 %v12941_v29, %v5442_v11 }
 0x71f   : > { %6049 = vst.msk [vmem:[%s10264_s10 + $0x58] sm:$0xff] %vm517_vm0, %v6033_v3  ;;  %v9044_v23 = vadd.f32 %v9043_v42, %v8183_v27 }
 0x720   : > { %6048 = vst.msk [vmem:[%s10264_s10 + $0x50] sm:$0xff] %vm517_vm0, %v6032_v20  ;;  %v9046_v30 = vadd.f32 %v9045_v37, %v6000_v2  ;;  %v8066_v36 = vpop.f32.mrb[14].mxu1 }
 0x721   : > { %v6035_v12 = vadd.f32 %v9044_v23, %v13615_v32  ;;  %v9047_v22 = vadd.f32 %v8066_v36, %v12941_v29  ;;  %v5456_v45 = vpop.f32.mrb[15].mxu1 }
 0x722   : > { %v6034_v54 = vadd.f32 %v9046_v30, %v13616_v18  ;;  %v9049_v44 = vadd.f32 %v12941_v29, %v5456_v45 }
 0x723   : > { %6051 = vst.msk [vmem:[%s10264_s10 + $0x68] sm:$0xff] %vm517_vm0, %v6035_v12  ;;  %v9048_v10 = vadd.f32 %v9047_v22, %v8186_v19 }
 0x724   : > { %6050 = vst.msk [vmem:[%s10264_s10 + $0x60] sm:$0xff] %vm517_vm0, %v6034_v54  ;;  %v9050_v35 = vadd.f32 %v9049_v44, %v6012_v13 }
 0x725   : > { %v6037_v4 = vadd.f32 %v9048_v10, %v13617_v51 }
 0x726   : > { %v6036_v38 = vadd.f32 %v9050_v35, %v13618_v5 }
 0x727   : > { %6053 = vst.msk [vmem:[%s10264_s10 + $0x78] sm:$0xff] %vm517_vm0, %v6037_v4 }
 0x728   : > { %6052 = vst.msk [vmem:[%s10264_s10 + $0x70] sm:$0xff] %vm517_vm0, %v6036_v38 }
 0x729 PF: > { %s19_s13 = sadd.s32 1, %s9877_s13   ;;  %s13619_s30 = smov %s9869_s11 }
 0x72a   : > { %p16_p8 = scmp.ge.s32.totalorder %s19_s13, 6   ;;  %s13620_s10 = smov %s9873_s12 }
 0x72b   : > { %s13621_s11 = smov %s13624_s14  ;;  %s13622_s12 = smov %s13628_s15 }
 0x72c   :  { %18 = sbr.rel (!%p16_p8) target bundleno = 3 (0x3), region = 118 }

</bundles_post_ra>
